<compile_context>
chip_gen: v5e
topology: v5e:2x2
jax: 0.10.0
libtpu: 0.0.40
codegen_flags: <defaults>
</compile_context>

<pallas_src>
import jax
import jax.numpy as jnp
from jax.experimental import pallas as pl
from jax.experimental.pallas import tpu as pltpu

EPS_NORM = 1e-8
EPS_LN = 1e-5
VMEM_LIMIT_BYTES = 32 * 1024 * 1024
IO_DTYPE = jnp.bfloat16      # HBM <-> VMEM activation dtype (math stays f32)


# ---------------------------------------------------------------------------
# In-kernel building blocks (channel-major: scalars (C, R), vectors 3 x (C, R))
# ---------------------------------------------------------------------------
def _dot(a, b):
    return jnp.dot(a, b, preferred_element_type=jnp.float32)


def _gvp(s_list, Ws_list, v_list, Wh_list, Wvn, bs, Wv, use_act):
    """One Geometric Vector Perceptron, channel-major, f32 math.

    s_list : list of (si_k, R) scalar inputs; Ws_list : matching (so, si_k)
    v_list : list of 3-tuples of (vi_k, R) planes; Wh_list : matching (h, vi_k)
    Wvn : (so, h)   bs : (so, 1)   Wv : (vo, h)
    """
    vh = []
    for c in range(3):
        acc = _dot(Wh_list[0], v_list[0][c])
        for Wh, v in zip(Wh_list[1:], v_list[1:]):
            acc = acc + _dot(Wh, v[c])
        vh.append(acc)                                                # (h, R)

    # _norm_no_nan over the 3 coordinates
    vn = jnp.sqrt(jnp.maximum(vh[0] * vh[0] + vh[1] * vh[1] + vh[2] * vh[2],
                              EPS_NORM))                              # (h, R)

    # split ws: s_out = sum_k Ws_k @ s_k + Wvn @ vn + bs   (no concat temp)
    s = _dot(Ws_list[0], s_list[0])
    for Ws, sk in zip(Ws_list[1:], s_list[1:]):
        s = s + _dot(Ws, sk)
    s = s + _dot(Wvn, vn) + bs                                        # (so, R)

    vo = [_dot(Wv, vh[c]) for c in range(3)]                          # (vo, R)

    if use_act:
        nrm = jnp.sqrt(jnp.maximum(vo[0] * vo[0] + vo[1] * vo[1] + vo[2] * vo[2],
                                   EPS_NORM))
        gate = jax.nn.sigmoid(nrm)                                    # EUP
        vo = [vc * gate for vc in vo]
        s = jax.nn.relu(s)
    return s, vo


def _scalar_ln(s, g, b):
    # s : (ns, R); g, b : (ns, 1); normalize over the channel (sublane) axis
    mu = jnp.mean(s, axis=0, keepdims=True)
    d = s - mu
    var = jnp.mean(d * d, axis=0, keepdims=True)
    return d * jax.lax.rsqrt(var + EPS_LN) * g + b


def _vec_ln(v):
    # v : 3 x (nv, R); RMS of per-channel L2 norms (GVP LayerNorm vector part)
    ch = jnp.maximum(v[0] * v[0] + v[1] * v[1] + v[2] * v[2], EPS_NORM)
    rn = jax.lax.rsqrt(jnp.mean(ch, axis=0, keepdims=True))           # (1, R)
    return [v[0] * rn, v[1] * rn, v[2] * rn]


def _load_s(ref):
    return ref[...].astype(jnp.float32)


def _load_v(ref):
    return [ref[0].astype(jnp.float32),
            ref[1].astype(jnp.float32),
            ref[2].astype(jnp.float32)]


# ---------------------------------------------------------------------------
# Pallas kernels
# ---------------------------------------------------------------------------
def _message_kernel(sj_ref, se_ref, si_ref, vj_ref, ve_ref, vi_ref,
                    w0hj, w0he, w0hi, w0sj, w0se, w0si, w0vn, w0b, w0v,
                    w1h, w1s, w1vn, w1b, w1v,
                    w2h, w2s, w2vn, w2b, w2v,
                    s_out_ref, v_out_ref):
    sj, se, si = _load_s(sj_ref), _load_s(se_ref), _load_s(si_ref)
    vj, ve, vi = _load_v(vj_ref), _load_v(ve_ref), _load_v(vi_ref)

    # GVP 0: message input cat((s_j, v_j), edge_attr, (s_i, v_i)) realized via
    # split weights + accumulating matmuls (no concatenated tensor anywhere).
    s, v = _gvp([sj, se, si], [w0sj[...], w0se[...], w0si[...]],
                [vj, ve, vi], [w0hj[...], w0he[...], w0hi[...]],
                w0vn[...], w0b[...], w0v[...], use_act=True)
    s, v = _gvp([s], [w1s[...]], [v], [w1h[...]],
                w1vn[...], w1b[...], w1v[...], use_act=True)
    s, v = _gvp([s], [w2s[...]], [v], [w2h[...]],
                w2vn[...], w2b[...], w2v[...], use_act=False)

    s_out_ref[...] = s.astype(s_out_ref.dtype)
    v_out_ref[0] = v[0].astype(v_out_ref.dtype)
    v_out_ref[1] = v[1].astype(v_out_ref.dtype)
    v_out_ref[2] = v[2].astype(v_out_ref.dtype)


def _node_kernel(xs_ref, xv_ref, dhs_ref, dhv_ref,
                 g0_ref, b0_ref,
                 f0h, f0s, f0vn, f0b, f0v,
                 f1h, f1s, f1vn, f1b, f1v,
                 g1_ref, b1_ref,
                 s_out_ref, v_out_ref):
    xs, dhs = _load_s(xs_ref), _load_s(dhs_ref)
    xv, dhv = _load_v(xv_ref), _load_v(dhv_ref)

    s = _scalar_ln(xs + dhs, g0_ref[...], b0_ref[...])
    v = _vec_ln([xv[0] + dhv[0], xv[1] + dhv[1], xv[2] + dhv[2]])

    s2, v2 = _gvp([s], [f0s[...]], [v], [f0h[...]],
                  f0vn[...], f0b[...], f0v[...], use_act=True)
    s2, v2 = _gvp([s2], [f1s[...]], [v2], [f1h[...]],
                  f1vn[...], f1b[...], f1v[...], use_act=False)

    s_out_ref[...] = _scalar_ln(s + s2, g1_ref[...], b1_ref[...]).astype(s_out_ref.dtype)
    vf = _vec_ln([v[0] + v2[0], v[1] + v2[1], v[2] + v2[2]])
    v_out_ref[0] = vf[0].astype(v_out_ref.dtype)
    v_out_ref[1] = vf[1].astype(v_out_ref.dtype)
    v_out_ref[2] = vf[2].astype(v_out_ref.dtype)


# ---------------------------------------------------------------------------
# pallas_call wrappers
# ---------------------------------------------------------------------------
def _full_spec(shape):
    nd = len(shape)
    return pl.BlockSpec(tuple(shape), lambda i, nd=nd: (0,) * nd)


def _row_spec(shape, tile):
    # tile the trailing (row / lane) axis; all channel axes full
    nd = len(shape)
    blk = tuple(shape[:-1]) + (tile,)
    return pl.BlockSpec(blk, lambda i, nd=nd: (0,) * (nd - 1) + (i,))


def _round_up(x, m):
    return ((x + m - 1) // m) * m


def _choose_grid(rows, max_tile):
    """Return (tile, padded_rows): tile % 128 == 0, padded % tile == 0, and
    >= 2 grid steps whenever rows allow it (keeps both v7x TensorCores busy).
    Padding granularity stays small instead of a full max_tile."""
    max_tile = max(128, (max_tile // 128) * 128)
    rows = max(int(rows), 1)
    padded = _round_up(rows, 128)
    if padded <= 128:
        return 128, 128
    steps = max(2, -(-padded // max_tile))
    tile = _round_up(-(-padded // steps), 128)
    padded = _round_up(padded, tile)
    return tile, padded


def _split_ws(p):
    """Split the fused ws weight (so, si+h) into (Ws, Wvn); removes the
    in-kernel [s | vn] concat."""
    h = p["Wh"].shape[0]
    return p["Wcat"][:, :-h], p["Wcat"][:, -h:]


def _gvp_weights(p):
    ws, wvn = _split_ws(p)
    return [p["Wh"], ws, wvn, p["bs"], p["Wv"]]


def message_pallas(params, s_j, s_e, s_i, v_j, v_e, v_i, tile, dims):
    ns, nv, se_dim, ve_dim = dims
    Ep = s_j.shape[-1]

    p0 = params["m0"]
    w0s, w0vn = _split_ws(p0)
    # split the first GVP's weights to match the (src, edge, dst) input split
    w0hj = p0["Wh"][:, :nv]
    w0he = p0["Wh"][:, nv:nv + ve_dim]
    w0hi = p0["Wh"][:, nv + ve_dim:]
    w0sj = w0s[:, :ns]
    w0se = w0s[:, ns:ns + se_dim]
    w0si = w0s[:, ns + se_dim:]

    weights = ([w0hj, w0he, w0hi, w0sj, w0se, w0si, w0vn, p0["bs"], p0["Wv"]]
               + _gvp_weights(params["m1"]) + _gvp_weights(params["m2"]))
    acts = [s_j, s_e, s_i, v_j, v_e, v_i]

    in_specs = ([_row_spec(a.shape, tile) for a in acts]
                + [_full_spec(w.shape) for w in weights])
    out_shape = (jax.ShapeDtypeStruct((ns, Ep), IO_DTYPE),
                 jax.ShapeDtypeStruct((3, nv, Ep), IO_DTYPE))
    out_specs = (_row_spec((ns, Ep), tile), _row_spec((3, nv, Ep), tile))

    return pl.pallas_call(
        _message_kernel,
        grid=(Ep // tile,),
        in_specs=in_specs,
        out_specs=out_specs,
        out_shape=out_shape,
        compiler_params=pltpu.CompilerParams(
            dimension_semantics=("parallel",),
            vmem_limit_bytes=VMEM_LIMIT_BYTES),
    )(*acts, *weights)


def node_pallas(params, x_s, x_v, dh_s, dh_v, tile):
    ns, Np = x_s.shape
    nv = x_v.shape[1]
    args = ([x_s, x_v, dh_s, dh_v, params["ln0_g"], params["ln0_b"]]
            + _gvp_weights(params["f0"]) + _gvp_weights(params["f1"])
            + [params["ln1_g"], params["ln1_b"]])

    in_specs = ([_row_spec(a.shape, tile) for a in args[:4]]
                + [_full_spec(a.shape) for a in args[4:]])
    out_shape = (jax.ShapeDtypeStruct((ns, Np), IO_DTYPE),
                 jax.ShapeDtypeStruct((3, nv, Np), IO_DTYPE))
    out_specs = (_row_spec((ns, Np), tile), _row_spec((3, nv, Np), tile))

    return pl.pallas_call(
        _node_kernel,
        grid=(Np // tile,),
        in_specs=in_specs,
        out_specs=out_specs,
        out_shape=out_shape,
        compiler_params=pltpu.CompilerParams(
            dimension_semantics=("parallel",),
            vmem_limit_bytes=VMEM_LIMIT_BYTES),
    )(*args)


# ---------------------------------------------------------------------------
# Full GVPConvLayer forward (glue in JAX, hot path in Pallas)
# ---------------------------------------------------------------------------
def gvp_conv_layer(params, x_s, x_v, edge_index, edge_s, edge_v, max_tile=8192):
    N, ns = x_s.shape
    nv = x_v.shape[1]
    se_dim = edge_s.shape[1]
    ve_dim = edge_v.shape[1]
    E = edge_index.shape[1]
    src, dst = edge_index[0], edge_index[1]

    # channel-major bf16 layouts: scalars (C, rows), vectors (3, C, rows)
    xs_cm = x_s.T.astype(IO_DTYPE)                               # (ns, N)
    xv_cm = jnp.transpose(x_v, (2, 1, 0)).astype(IO_DTYPE)       # (3, nv, N)
    es_cm = edge_s.T.astype(IO_DTYPE)                            # (se, E)
    ev_cm = jnp.transpose(edge_v, (2, 1, 0)).astype(IO_DTYPE)    # (3, ve, E)

    # per-edge message inputs, kept UN-concatenated: (src feats | edge | dst feats)
    # TODO(synk): gather stays in XLA; in-kernel gather via scalar prefetch would
    #             avoid materializing the (C, E) gathered tensors entirely.
    s_j = xs_cm[:, src]
    s_i = xs_cm[:, dst]
    v_j = xv_cm[:, :, src]
    v_i = xv_cm[:, :, dst]

    tile_e, Ep = _choose_grid(E, max_tile)
    pad_e = Ep - E
    pad2 = ((0, 0), (0, pad_e))
    pad3 = ((0, 0), (0, 0), (0, pad_e))
    s_j = jnp.pad(s_j, pad2)
    s_e = jnp.pad(es_cm, pad2)
    s_i = jnp.pad(s_i, pad2)
    v_j = jnp.pad(v_j, pad3)
    v_e = jnp.pad(ev_cm, pad3)
    v_i = jnp.pad(v_i, pad3)

    # ---- Pallas kernel 1: 3-GVP message stack over edges ----
    m_s, m_v = message_pallas(params, s_j, s_e, s_i, v_j, v_e, v_i, tile_e,
                              (ns, nv, se_dim, ve_dim))           # bf16 outputs

    # mean aggregation at destination nodes (f32 accumulation; XLA scatter glue)
    valid = (jnp.arange(Ep) < E).astype(jnp.float32)
    dst_p = jnp.pad(dst, (0, pad_e))
    m_sf = m_s.astype(jnp.float32) * valid[None, :]
    m_vf = m_v.astype(jnp.float32) * valid[None, None, :]
    count = jnp.maximum(jnp.zeros((N,), jnp.float32).at[dst_p].add(valid), 1.0)
    dh_s = jnp.zeros((ns, N), jnp.float32).at[:, dst_p].add(m_sf) / count[None, :]
    dh_v = (jnp.zeros((3, nv, N), jnp.float32).at[:, :, dst_p].add(m_vf)
            / count[None, None, :])

    tile_n, Np = _choose_grid(N, max_tile)
    pad_n = Np - N
    xs_p = jnp.pad(xs_cm, ((0, 0), (0, pad_n)))
    xv_p = jnp.pad(xv_cm, ((0, 0), (0, 0), (0, pad_n)))
    dhs_p = jnp.pad(dh_s.astype(IO_DTYPE), ((0, 0), (0, pad_n)))
    dhv_p = jnp.pad(dh_v.astype(IO_DTYPE), ((0, 0), (0, 0), (0, pad_n)))

    # ---- Pallas kernel 2: residual + LN + feed-forward GVPs + LN ----
    out_s_cm, out_v_cm = node_pallas(params, xs_p, xv_p, dhs_p, dhv_p, tile_n)

    out_s = out_s_cm[:, :N].astype(jnp.float32).T                        # (N, ns)
    out_v = jnp.transpose(out_v_cm[:, :, :N].astype(jnp.float32), (2, 1, 0))
    return out_s, out_v


# ---------------------------------------------------------------------------
# Deterministic parameter construction (channel-major weight layout)
# ---------------------------------------------------------------------------
def make_gvp_params(key, si, vi, so, vo):
    h = max(vi, vo)
    ks = jax.random.split(key, 4)
    init = lambda kk, shape: 0.2 * jax.random.normal(kk, shape, jnp.float32)
    return dict(
        Wh=init(ks[0], (h, vi)),          # wh : Linear(vi, h, bias=False)
        Wcat=init(ks[1], (so, si + h)),   # ws : Linear(si+h, so); cols = [s | vn]
        bs=init(ks[2], (so, 1)),          # ws bias
        Wv=init(ks[3], (vo, h)),          # wv : Linear(h, vo, bias=False)
    )


def make_params(key, ns, nv, se, ve):
    ks = jax.random.split(key, 9)
    p = {}
    p["m0"] = make_gvp_params(ks[0], 2 * ns + se, 2 * nv + ve, ns, nv)
    p["m1"] = make_gvp_params(ks[1], ns, nv, ns, nv)
    p["m2"] = make_gvp_params(ks[2], ns, nv, ns, nv)
    p["f0"] = make_gvp_params(ks[3], ns, nv, 4 * ns, 2 * nv)
    p["f1"] = make_gvp_params(ks[4], 4 * ns, 2 * nv, ns, nv)
    p["ln0_g"] = 1.0 + 0.05 * jax.random.normal(ks[5], (ns, 1), jnp.float32)
    p["ln0_b"] = 0.05 * jax.random.normal(ks[6], (ns, 1), jnp.float32)
    p["ln1_g"] = 1.0 + 0.05 * jax.random.normal(ks[7], (ns, 1), jnp.float32)
    p["ln1_b"] = 0.05 * jax.random.normal(ks[8], (ns, 1), jnp.float32)
    return p


# ---------------------------------------------------------------------------
# Pure-JAX f32 reference (mirrors the PyTorch forward), for validation
# ---------------------------------------------------------------------------
def _mm(a, b):
    return jnp.matmul(a, b, precision=jax.lax.Precision.HIGHEST)


def gvp_ref(s, v, p, use_act):
    # s : (M, si), v : (M, vi, 3)  (natural PyTorch layout)
    vt = jnp.swapaxes(v, -1, -2)                                   # (M, 3, vi)
    vh = _mm(vt, p["Wh"].T)                                        # (M, 3, h)
    vn = jnp.sqrt(jnp.maximum(jnp.sum(vh ** 2, axis=-2), EPS_NORM))
    s_out = _mm(jnp.concatenate([s, vn], -1), p["Wcat"].T) + p["bs"][:, 0]
    v_out = jnp.swapaxes(_mm(vh, p["Wv"].T), -1, -2)               # (M, vo, 3)
    if use_act:
        nrm = jnp.sqrt(jnp.maximum(jnp.sum(v_out ** 2, -1, keepdims=True), EPS_NORM))
        v_out = v_out * jax.nn.sigmoid(nrm)
        s_out = jax.nn.relu(s_out)
    return s_out, v_out


def ref_forward(params, x_s, x_v, edge_index, edge_s, edge_v):
    src, dst = edge_index[0], edge_index[1]
    N = x_s.shape[0]
    s_m = jnp.concatenate([x_s[src], edge_s, x_s[dst]], axis=-1)
    v_m = jnp.concatenate([x_v[src], edge_v, x_v[dst]], axis=-2)
    s_m, v_m = gvp_ref(s_m, v_m, params["m0"], True)
    s_m, v_m = gvp_ref(s_m, v_m, params["m1"], True)
    s_m, v_m = gvp_ref(s_m, v_m, params["m2"], False)

    ones = jnp.ones((edge_index.shape[1],), jnp.float32)
    count = jnp.maximum(jax.ops.segment_sum(ones, dst, num_segments=N), 1.0)
    dh_s = jax.ops.segment_sum(s_m, dst, num_segments=N) / count[:, None]
    dh_v = jax.ops.segment_sum(v_m, dst, num_segments=N) / count[:, None, None]

    def ln(s, v, g, b):
        mu = s.mean(-1, keepdims=True)
        var = ((s - mu) ** 2).mean(-1, keepdims=True)
        s = (s - mu) / jnp.sqrt(var + EPS_LN) * g[:, 0] + b[:, 0]
        vn2 = jnp.maximum(jnp.sum(v ** 2, -1, keepdims=True), EPS_NORM)
        vn = jnp.sqrt(jnp.mean(vn2, axis=-2, keepdims=True))
        return s, v / vn

    s1, v1 = ln(x_s + dh_s, x_v + dh_v, params["ln0_g"], params["ln0_b"])
    s2, v2 = gvp_ref(s1, v1, params["f0"], True)
    s2, v2 = gvp_ref(s2, v2, params["f1"], False)
    return ln(s1 + s2, v1 + v2, params["ln1_g"], params["ln1_b"])


# ---------------------------------------------------------------------------
if __name__ == "__main__":
    key = jax.random.PRNGKey(0)
    N, E = 256, 768            # nodes, edges
    ns, nv = 16, 4             # node dims (n_scalar, n_vector)
    se, ve = 8, 2              # edge dims (n_scalar, n_vector)

    keys = jax.random.split(key, 6)
    x_s = jax.random.normal(keys[0], (N, ns), jnp.float32)
    x_v = jax.random.normal(keys[1], (N, nv, 3), jnp.float32)
    edge_index = jax.random.randint(keys[2], (2, E), 0, N, dtype=jnp.int32)
    edge_s = jax.random.normal(keys[3], (E, se), jnp.float32)
    edge_v = jax.random.normal(keys[4], (E, ve, 3), jnp.float32)
    params = make_params(keys[5], ns, nv, se, ve)

    fwd = jax.jit(gvp_conv_layer)
    out_s, out_v = fwd(params, x_s, x_v, edge_index, edge_s, edge_v)
    jax.block_until_ready((out_s, out_v))

    ref_s, ref_v = ref_forward(params, x_s, x_v, edge_index, edge_s, edge_v)
    assert out_s.shape == (N, ns) and out_v.shape == (N, nv, 3)
    # tolerance loosened vs. pure-f32 because activations cross the pallas_call
    # boundaries in bf16 (all in-kernel math is f32)
    assert bool(jnp.allclose(out_s, ref_s, rtol=4e-2, atol=4e-2))
    assert bool(jnp.allclose(out_v, ref_v, rtol=4e-2, atol=4e-2))
    print("KERNEL_OK")
</pallas_src>

<mosaic_0001>
module attributes {stable_mosaic.version = 11 : i64} {
  func.func @_message_kernel(%arg0: i32, %arg1: memref<16x384xbf16, #tpu.memory_space<vmem>>, %arg2: memref<8x384xbf16, #tpu.memory_space<vmem>>, %arg3: memref<16x384xbf16, #tpu.memory_space<vmem>>, %arg4: memref<3x4x384xbf16, #tpu.memory_space<vmem>>, %arg5: memref<3x2x384xbf16, #tpu.memory_space<vmem>>, %arg6: memref<3x4x384xbf16, #tpu.memory_space<vmem>>, %arg7: memref<10x4xf32, #tpu.memory_space<vmem>>, %arg8: memref<10x2xf32, #tpu.memory_space<vmem>>, %arg9: memref<10x4xf32, #tpu.memory_space<vmem>>, %arg10: memref<16x16xf32, #tpu.memory_space<vmem>>, %arg11: memref<16x8xf32, #tpu.memory_space<vmem>>, %arg12: memref<16x16xf32, #tpu.memory_space<vmem>>, %arg13: memref<16x10xf32, #tpu.memory_space<vmem>>, %arg14: memref<16x1xf32, #tpu.memory_space<vmem>>, %arg15: memref<4x10xf32, #tpu.memory_space<vmem>>, %arg16: memref<4x4xf32, #tpu.memory_space<vmem>>, %arg17: memref<16x16xf32, #tpu.memory_space<vmem>>, %arg18: memref<16x4xf32, #tpu.memory_space<vmem>>, %arg19: memref<16x1xf32, #tpu.memory_space<vmem>>, %arg20: memref<4x4xf32, #tpu.memory_space<vmem>>, %arg21: memref<4x4xf32, #tpu.memory_space<vmem>>, %arg22: memref<16x16xf32, #tpu.memory_space<vmem>>, %arg23: memref<16x4xf32, #tpu.memory_space<vmem>>, %arg24: memref<16x1xf32, #tpu.memory_space<vmem>>, %arg25: memref<4x4xf32, #tpu.memory_space<vmem>>, %arg26: memref<16x384xbf16, #tpu.memory_space<vmem>>, %arg27: memref<3x4x384xbf16, #tpu.memory_space<vmem>>) attributes {dimension_semantics = [#tpu.dimension_semantics<parallel>], iteration_bounds = array<i64: 2>, scalar_prefetch = 0 : i64, scratch_operands = 0 : i64, tpu.core_type = #tpu.core_type<tc>, window_params = [{transform_indices = @transform_0, window_bounds = array<i64: 16, 384>}, {transform_indices = @transform_1, window_bounds = array<i64: 8, 384>}, {transform_indices = @transform_2, window_bounds = array<i64: 16, 384>}, {transform_indices = @transform_3, window_bounds = array<i64: 3, 4, 384>}, {transform_indices = @transform_4, window_bounds = array<i64: 3, 2, 384>}, {transform_indices = @transform_5, window_bounds = array<i64: 3, 4, 384>}, {pipeline_mode = #tpu.pipeline_mode<synchronous>, transform_indices = @transform_6, window_bounds = array<i64: 10, 4>}, {pipeline_mode = #tpu.pipeline_mode<synchronous>, transform_indices = @transform_7, window_bounds = array<i64: 10, 2>}, {pipeline_mode = #tpu.pipeline_mode<synchronous>, transform_indices = @transform_8, window_bounds = array<i64: 10, 4>}, {pipeline_mode = #tpu.pipeline_mode<synchronous>, transform_indices = @transform_9, window_bounds = array<i64: 16, 16>}, {pipeline_mode = #tpu.pipeline_mode<synchronous>, transform_indices = @transform_10, window_bounds = array<i64: 16, 8>}, {pipeline_mode = #tpu.pipeline_mode<synchronous>, transform_indices = @transform_11, window_bounds = array<i64: 16, 16>}, {pipeline_mode = #tpu.pipeline_mode<synchronous>, transform_indices = @transform_12, window_bounds = array<i64: 16, 10>}, {pipeline_mode = #tpu.pipeline_mode<synchronous>, transform_indices = @transform_13, window_bounds = array<i64: 16, 1>}, {pipeline_mode = #tpu.pipeline_mode<synchronous>, transform_indices = @transform_14, window_bounds = array<i64: 4, 10>}, {pipeline_mode = #tpu.pipeline_mode<synchronous>, transform_indices = @transform_15, window_bounds = array<i64: 4, 4>}, {pipeline_mode = #tpu.pipeline_mode<synchronous>, transform_indices = @transform_16, window_bounds = array<i64: 16, 16>}, {pipeline_mode = #tpu.pipeline_mode<synchronous>, transform_indices = @transform_17, window_bounds = array<i64: 16, 4>}, {pipeline_mode = #tpu.pipeline_mode<synchronous>, transform_indices = @transform_18, window_bounds = array<i64: 16, 1>}, {pipeline_mode = #tpu.pipeline_mode<synchronous>, transform_indices = @transform_19, window_bounds = array<i64: 4, 4>}, {pipeline_mode = #tpu.pipeline_mode<synchronous>, transform_indices = @transform_20, window_bounds = array<i64: 4, 4>}, {pipeline_mode = #tpu.pipeline_mode<synchronous>, transform_indices = @transform_21, window_bounds = array<i64: 16, 16>}, {pipeline_mode = #tpu.pipeline_mode<synchronous>, transform_indices = @transform_22, window_bounds = array<i64: 16, 4>}, {pipeline_mode = #tpu.pipeline_mode<synchronous>, transform_indices = @transform_23, window_bounds = array<i64: 16, 1>}, {pipeline_mode = #tpu.pipeline_mode<synchronous>, transform_indices = @transform_24, window_bounds = array<i64: 4, 4>}, {transform_indices = @transform_25, window_bounds = array<i64: 16, 384>}, {transform_indices = @transform_26, window_bounds = array<i64: 3, 4, 384>}]} {
    %c0 = arith.constant 0 : index
    %c0_0 = arith.constant 0 : index
    %0 = vector.load %arg1[%c0, %c0_0] : memref<16x384xbf16, #tpu.memory_space<vmem>>, vector<16x384xbf16>
    %1 = arith.extf %0 : vector<16x384xbf16> to vector<16x384xf32>
    %c0_1 = arith.constant 0 : index
    %c0_2 = arith.constant 0 : index
    %2 = vector.load %arg2[%c0_1, %c0_2] : memref<8x384xbf16, #tpu.memory_space<vmem>>, vector<8x384xbf16>
    %3 = arith.extf %2 : vector<8x384xbf16> to vector<8x384xf32>
    %c0_3 = arith.constant 0 : index
    %c0_4 = arith.constant 0 : index
    %4 = vector.load %arg3[%c0_3, %c0_4] : memref<16x384xbf16, #tpu.memory_space<vmem>>, vector<16x384xbf16>
    %5 = arith.extf %4 : vector<16x384xbf16> to vector<16x384xf32>
    %c0_5 = arith.constant 0 : index
    %c0_6 = arith.constant 0 : index
    %c0_7 = arith.constant 0 : index
    %6 = vector.load %arg4[%c0_5, %c0_6, %c0_7] : memref<3x4x384xbf16, #tpu.memory_space<vmem>>, vector<1x4x384xbf16>
    %7 = vector.shape_cast %6 : vector<1x4x384xbf16> to vector<4x384xbf16>
    %8 = arith.extf %7 : vector<4x384xbf16> to vector<4x384xf32>
    %c1 = arith.constant 1 : index
    %c0_8 = arith.constant 0 : index
    %c0_9 = arith.constant 0 : index
    %9 = vector.load %arg4[%c1, %c0_8, %c0_9] : memref<3x4x384xbf16, #tpu.memory_space<vmem>>, vector<1x4x384xbf16>
    %10 = vector.shape_cast %9 : vector<1x4x384xbf16> to vector<4x384xbf16>
    %11 = arith.extf %10 : vector<4x384xbf16> to vector<4x384xf32>
    %c2 = arith.constant 2 : index
    %c0_10 = arith.constant 0 : index
    %c0_11 = arith.constant 0 : index
    %12 = vector.load %arg4[%c2, %c0_10, %c0_11] : memref<3x4x384xbf16, #tpu.memory_space<vmem>>, vector<1x4x384xbf16>
    %13 = vector.shape_cast %12 : vector<1x4x384xbf16> to vector<4x384xbf16>
    %14 = arith.extf %13 : vector<4x384xbf16> to vector<4x384xf32>
    %c0_12 = arith.constant 0 : index
    %c0_13 = arith.constant 0 : index
    %c0_14 = arith.constant 0 : index
    %15 = vector.load %arg5[%c0_12, %c0_13, %c0_14] : memref<3x2x384xbf16, #tpu.memory_space<vmem>>, vector<1x2x384xbf16>
    %16 = vector.shape_cast %15 : vector<1x2x384xbf16> to vector<2x384xbf16>
    %17 = arith.extf %16 : vector<2x384xbf16> to vector<2x384xf32>
    %c1_15 = arith.constant 1 : index
    %c0_16 = arith.constant 0 : index
    %c0_17 = arith.constant 0 : index
    %18 = vector.load %arg5[%c1_15, %c0_16, %c0_17] : memref<3x2x384xbf16, #tpu.memory_space<vmem>>, vector<1x2x384xbf16>
    %19 = vector.shape_cast %18 : vector<1x2x384xbf16> to vector<2x384xbf16>
    %20 = arith.extf %19 : vector<2x384xbf16> to vector<2x384xf32>
    %c2_18 = arith.constant 2 : index
    %c0_19 = arith.constant 0 : index
    %c0_20 = arith.constant 0 : index
    %21 = vector.load %arg5[%c2_18, %c0_19, %c0_20] : memref<3x2x384xbf16, #tpu.memory_space<vmem>>, vector<1x2x384xbf16>
    %22 = vector.shape_cast %21 : vector<1x2x384xbf16> to vector<2x384xbf16>
    %23 = arith.extf %22 : vector<2x384xbf16> to vector<2x384xf32>
    %c0_21 = arith.constant 0 : index
    %c0_22 = arith.constant 0 : index
    %c0_23 = arith.constant 0 : index
    %24 = vector.load %arg6[%c0_21, %c0_22, %c0_23] : memref<3x4x384xbf16, #tpu.memory_space<vmem>>, vector<1x4x384xbf16>
    %25 = vector.shape_cast %24 : vector<1x4x384xbf16> to vector<4x384xbf16>
    %26 = arith.extf %25 : vector<4x384xbf16> to vector<4x384xf32>
    %c1_24 = arith.constant 1 : index
    %c0_25 = arith.constant 0 : index
    %c0_26 = arith.constant 0 : index
    %27 = vector.load %arg6[%c1_24, %c0_25, %c0_26] : memref<3x4x384xbf16, #tpu.memory_space<vmem>>, vector<1x4x384xbf16>
    %28 = vector.shape_cast %27 : vector<1x4x384xbf16> to vector<4x384xbf16>
    %29 = arith.extf %28 : vector<4x384xbf16> to vector<4x384xf32>
    %c2_27 = arith.constant 2 : index
    %c0_28 = arith.constant 0 : index
    %c0_29 = arith.constant 0 : index
    %30 = vector.load %arg6[%c2_27, %c0_28, %c0_29] : memref<3x4x384xbf16, #tpu.memory_space<vmem>>, vector<1x4x384xbf16>
    %31 = vector.shape_cast %30 : vector<1x4x384xbf16> to vector<4x384xbf16>
    %32 = arith.extf %31 : vector<4x384xbf16> to vector<4x384xf32>
    %c0_30 = arith.constant 0 : index
    %c0_31 = arith.constant 0 : index
    %33 = vector.load %arg10[%c0_30, %c0_31] : memref<16x16xf32, #tpu.memory_space<vmem>>, vector<16x16xf32>
    %c0_32 = arith.constant 0 : index
    %c0_33 = arith.constant 0 : index
    %34 = vector.load %arg11[%c0_32, %c0_33] : memref<16x8xf32, #tpu.memory_space<vmem>>, vector<16x8xf32>
    %c0_34 = arith.constant 0 : index
    %c0_35 = arith.constant 0 : index
    %35 = vector.load %arg12[%c0_34, %c0_35] : memref<16x16xf32, #tpu.memory_space<vmem>>, vector<16x16xf32>
    %c0_36 = arith.constant 0 : index
    %c0_37 = arith.constant 0 : index
    %36 = vector.load %arg7[%c0_36, %c0_37] : memref<10x4xf32, #tpu.memory_space<vmem>>, vector<10x4xf32>
    %c0_38 = arith.constant 0 : index
    %c0_39 = arith.constant 0 : index
    %37 = vector.load %arg8[%c0_38, %c0_39] : memref<10x2xf32, #tpu.memory_space<vmem>>, vector<10x2xf32>
    %c0_40 = arith.constant 0 : index
    %c0_41 = arith.constant 0 : index
    %38 = vector.load %arg9[%c0_40, %c0_41] : memref<10x4xf32, #tpu.memory_space<vmem>>, vector<10x4xf32>
    %c0_42 = arith.constant 0 : index
    %c0_43 = arith.constant 0 : index
    %39 = vector.load %arg13[%c0_42, %c0_43] : memref<16x10xf32, #tpu.memory_space<vmem>>, vector<16x10xf32>
    %c0_44 = arith.constant 0 : index
    %c0_45 = arith.constant 0 : index
    %40 = vector.load %arg14[%c0_44, %c0_45] : memref<16x1xf32, #tpu.memory_space<vmem>>, vector<16x1xf32>
    %c0_46 = arith.constant 0 : index
    %c0_47 = arith.constant 0 : index
    %41 = vector.load %arg15[%c0_46, %c0_47] : memref<4x10xf32, #tpu.memory_space<vmem>>, vector<4x10xf32>
    %cst = arith.constant dense<0.000000e+00> : vector<10x384xf32>
    %42 = tpu.matmul %36, %8, %cst {dimension_numbers = #tpu.dot_dimension_numbers<[1], [0], [0], [1], [0, 0, 1, 1], [], []>} : vector<10x4xf32>, vector<4x384xf32>, vector<10x384xf32> -> vector<10x384xf32>
    %cst_48 = arith.constant dense<0.000000e+00> : vector<10x384xf32>
    %43 = tpu.matmul %37, %17, %cst_48 {dimension_numbers = #tpu.dot_dimension_numbers<[1], [0], [0], [1], [0, 0, 1, 1], [], []>} : vector<10x2xf32>, vector<2x384xf32>, vector<10x384xf32> -> vector<10x384xf32>
    %44 = arith.addf %42, %43 : vector<10x384xf32>
    %cst_49 = arith.constant dense<0.000000e+00> : vector<10x384xf32>
    %45 = tpu.matmul %38, %26, %cst_49 {dimension_numbers = #tpu.dot_dimension_numbers<[1], [0], [0], [1], [0, 0, 1, 1], [], []>} : vector<10x4xf32>, vector<4x384xf32>, vector<10x384xf32> -> vector<10x384xf32>
    %46 = arith.addf %44, %45 : vector<10x384xf32>
    %cst_50 = arith.constant dense<0.000000e+00> : vector<10x384xf32>
    %47 = tpu.matmul %36, %11, %cst_50 {dimension_numbers = #tpu.dot_dimension_numbers<[1], [0], [0], [1], [0, 0, 1, 1], [], []>} : vector<10x4xf32>, vector<4x384xf32>, vector<10x384xf32> -> vector<10x384xf32>
    %cst_51 = arith.constant dense<0.000000e+00> : vector<10x384xf32>
    %48 = tpu.matmul %37, %20, %cst_51 {dimension_numbers = #tpu.dot_dimension_numbers<[1], [0], [0], [1], [0, 0, 1, 1], [], []>} : vector<10x2xf32>, vector<2x384xf32>, vector<10x384xf32> -> vector<10x384xf32>
    %49 = arith.addf %47, %48 : vector<10x384xf32>
    %cst_52 = arith.constant dense<0.000000e+00> : vector<10x384xf32>
    %50 = tpu.matmul %38, %29, %cst_52 {dimension_numbers = #tpu.dot_dimension_numbers<[1], [0], [0], [1], [0, 0, 1, 1], [], []>} : vector<10x4xf32>, vector<4x384xf32>, vector<10x384xf32> -> vector<10x384xf32>
    %51 = arith.addf %49, %50 : vector<10x384xf32>
    %cst_53 = arith.constant dense<0.000000e+00> : vector<10x384xf32>
    %52 = tpu.matmul %36, %14, %cst_53 {dimension_numbers = #tpu.dot_dimension_numbers<[1], [0], [0], [1], [0, 0, 1, 1], [], []>} : vector<10x4xf32>, vector<4x384xf32>, vector<10x384xf32> -> vector<10x384xf32>
    %cst_54 = arith.constant dense<0.000000e+00> : vector<10x384xf32>
    %53 = tpu.matmul %37, %23, %cst_54 {dimension_numbers = #tpu.dot_dimension_numbers<[1], [0], [0], [1], [0, 0, 1, 1], [], []>} : vector<10x2xf32>, vector<2x384xf32>, vector<10x384xf32> -> vector<10x384xf32>
    %54 = arith.addf %52, %53 : vector<10x384xf32>
    %cst_55 = arith.constant dense<0.000000e+00> : vector<10x384xf32>
    %55 = tpu.matmul %38, %32, %cst_55 {dimension_numbers = #tpu.dot_dimension_numbers<[1], [0], [0], [1], [0, 0, 1, 1], [], []>} : vector<10x4xf32>, vector<4x384xf32>, vector<10x384xf32> -> vector<10x384xf32>
    %56 = arith.addf %54, %55 : vector<10x384xf32>
    %57 = arith.mulf %46, %46 : vector<10x384xf32>
    %58 = arith.mulf %51, %51 : vector<10x384xf32>
    %59 = arith.addf %57, %58 : vector<10x384xf32>
    %60 = arith.mulf %56, %56 : vector<10x384xf32>
    %61 = arith.addf %59, %60 : vector<10x384xf32>
    %cst_56 = arith.constant 9.99999993E-9 : f32
    %62 = vector.broadcast %cst_56 : f32 to vector<10x384xf32>
    %63 = arith.maximumf %61, %62 : vector<10x384xf32>
    %64 = math.sqrt %63 : vector<10x384xf32>
    %cst_57 = arith.constant dense<0.000000e+00> : vector<16x384xf32>
    %65 = tpu.matmul %33, %1, %cst_57 {dimension_numbers = #tpu.dot_dimension_numbers<[1], [0], [0], [1], [0, 0, 1, 1], [], []>} : vector<16x16xf32>, vector<16x384xf32>, vector<16x384xf32> -> vector<16x384xf32>
    %cst_58 = arith.constant dense<0.000000e+00> : vector<16x384xf32>
    %66 = tpu.matmul %34, %3, %cst_58 {dimension_numbers = #tpu.dot_dimension_numbers<[1], [0], [0], [1], [0, 0, 1, 1], [], []>} : vector<16x8xf32>, vector<8x384xf32>, vector<16x384xf32> -> vector<16x384xf32>
    %67 = arith.addf %65, %66 : vector<16x384xf32>
    %cst_59 = arith.constant dense<0.000000e+00> : vector<16x384xf32>
    %68 = tpu.matmul %35, %5, %cst_59 {dimension_numbers = #tpu.dot_dimension_numbers<[1], [0], [0], [1], [0, 0, 1, 1], [], []>} : vector<16x16xf32>, vector<16x384xf32>, vector<16x384xf32> -> vector<16x384xf32>
    %69 = arith.addf %67, %68 : vector<16x384xf32>
    %cst_60 = arith.constant dense<0.000000e+00> : vector<16x384xf32>
    %70 = tpu.matmul %39, %64, %cst_60 {dimension_numbers = #tpu.dot_dimension_numbers<[1], [0], [0], [1], [0, 0, 1, 1], [], []>} : vector<16x10xf32>, vector<10x384xf32>, vector<16x384xf32> -> vector<16x384xf32>
    %71 = arith.addf %69, %70 : vector<16x384xf32>
    %72 = vector.broadcast %40 : vector<16x1xf32> to vector<16x384xf32>
    %73 = arith.addf %71, %72 : vector<16x384xf32>
    %cst_61 = arith.constant dense<0.000000e+00> : vector<4x384xf32>
    %74 = tpu.matmul %41, %46, %cst_61 {dimension_numbers = #tpu.dot_dimension_numbers<[1], [0], [0], [1], [0, 0, 1, 1], [], []>} : vector<4x10xf32>, vector<10x384xf32>, vector<4x384xf32> -> vector<4x384xf32>
    %cst_62 = arith.constant dense<0.000000e+00> : vector<4x384xf32>
    %75 = tpu.matmul %41, %51, %cst_62 {dimension_numbers = #tpu.dot_dimension_numbers<[1], [0], [0], [1], [0, 0, 1, 1], [], []>} : vector<4x10xf32>, vector<10x384xf32>, vector<4x384xf32> -> vector<4x384xf32>
    %cst_63 = arith.constant dense<0.000000e+00> : vector<4x384xf32>
    %76 = tpu.matmul %41, %56, %cst_63 {dimension_numbers = #tpu.dot_dimension_numbers<[1], [0], [0], [1], [0, 0, 1, 1], [], []>} : vector<4x10xf32>, vector<10x384xf32>, vector<4x384xf32> -> vector<4x384xf32>
    %77 = arith.mulf %74, %74 : vector<4x384xf32>
    %78 = arith.mulf %75, %75 : vector<4x384xf32>
    %79 = arith.addf %77, %78 : vector<4x384xf32>
    %80 = arith.mulf %76, %76 : vector<4x384xf32>
    %81 = arith.addf %79, %80 : vector<4x384xf32>
    %cst_64 = arith.constant 9.99999993E-9 : f32
    %82 = vector.broadcast %cst_64 : f32 to vector<4x384xf32>
    %83 = arith.maximumf %81, %82 : vector<4x384xf32>
    %84 = math.sqrt %83 : vector<4x384xf32>
    %85 = arith.negf %84 : vector<4x384xf32>
    %86 = math.exp %85 : vector<4x384xf32>
    %cst_65 = arith.constant 1.000000e+00 : f32
    %87 = vector.broadcast %cst_65 : f32 to vector<4x384xf32>
    %88 = arith.addf %87, %86 : vector<4x384xf32>
    %89 = arith.divf %87, %88 : vector<4x384xf32>
    %90 = arith.mulf %74, %89 : vector<4x384xf32>
    %91 = arith.mulf %75, %89 : vector<4x384xf32>
    %92 = arith.mulf %76, %89 : vector<4x384xf32>
    %cst_66 = arith.constant 0.000000e+00 : f32
    %93 = vector.broadcast %cst_66 : f32 to vector<16x384xf32>
    %94 = arith.maximumf %73, %93 : vector<16x384xf32>
    %c0_67 = arith.constant 0 : index
    %c0_68 = arith.constant 0 : index
    %95 = vector.load %arg17[%c0_67, %c0_68] : memref<16x16xf32, #tpu.memory_space<vmem>>, vector<16x16xf32>
    %c0_69 = arith.constant 0 : index
    %c0_70 = arith.constant 0 : index
    %96 = vector.load %arg16[%c0_69, %c0_70] : memref<4x4xf32, #tpu.memory_space<vmem>>, vector<4x4xf32>
    %c0_71 = arith.constant 0 : index
    %c0_72 = arith.constant 0 : index
    %97 = vector.load %arg18[%c0_71, %c0_72] : memref<16x4xf32, #tpu.memory_space<vmem>>, vector<16x4xf32>
    %c0_73 = arith.constant 0 : index
    %c0_74 = arith.constant 0 : index
    %98 = vector.load %arg19[%c0_73, %c0_74] : memref<16x1xf32, #tpu.memory_space<vmem>>, vector<16x1xf32>
    %c0_75 = arith.constant 0 : index
    %c0_76 = arith.constant 0 : index
    %99 = vector.load %arg20[%c0_75, %c0_76] : memref<4x4xf32, #tpu.memory_space<vmem>>, vector<4x4xf32>
    %cst_77 = arith.constant dense<0.000000e+00> : vector<4x384xf32>
    %100 = tpu.matmul %96, %90, %cst_77 {dimension_numbers = #tpu.dot_dimension_numbers<[1], [0], [0], [1], [0, 0, 1, 1], [], []>} : vector<4x4xf32>, vector<4x384xf32>, vector<4x384xf32> -> vector<4x384xf32>
    %cst_78 = arith.constant dense<0.000000e+00> : vector<4x384xf32>
    %101 = tpu.matmul %96, %91, %cst_78 {dimension_numbers = #tpu.dot_dimension_numbers<[1], [0], [0], [1], [0, 0, 1, 1], [], []>} : vector<4x4xf32>, vector<4x384xf32>, vector<4x384xf32> -> vector<4x384xf32>
    %cst_79 = arith.constant dense<0.000000e+00> : vector<4x384xf32>
    %102 = tpu.matmul %96, %92, %cst_79 {dimension_numbers = #tpu.dot_dimension_numbers<[1], [0], [0], [1], [0, 0, 1, 1], [], []>} : vector<4x4xf32>, vector<4x384xf32>, vector<4x384xf32> -> vector<4x384xf32>
    %103 = arith.mulf %100, %100 : vector<4x384xf32>
    %104 = arith.mulf %101, %101 : vector<4x384xf32>
    %105 = arith.addf %103, %104 : vector<4x384xf32>
    %106 = arith.mulf %102, %102 : vector<4x384xf32>
    %107 = arith.addf %105, %106 : vector<4x384xf32>
    %cst_80 = arith.constant 9.99999993E-9 : f32
    %108 = vector.broadcast %cst_80 : f32 to vector<4x384xf32>
    %109 = arith.maximumf %107, %108 : vector<4x384xf32>
    %110 = math.sqrt %109 : vector<4x384xf32>
    %cst_81 = arith.constant dense<0.000000e+00> : vector<16x384xf32>
    %111 = tpu.matmul %95, %94, %cst_81 {dimension_numbers = #tpu.dot_dimension_numbers<[1], [0], [0], [1], [0, 0, 1, 1], [], []>} : vector<16x16xf32>, vector<16x384xf32>, vector<16x384xf32> -> vector<16x384xf32>
    %cst_82 = arith.constant dense<0.000000e+00> : vector<16x384xf32>
    %112 = tpu.matmul %97, %110, %cst_82 {dimension_numbers = #tpu.dot_dimension_numbers<[1], [0], [0], [1], [0, 0, 1, 1], [], []>} : vector<16x4xf32>, vector<4x384xf32>, vector<16x384xf32> -> vector<16x384xf32>
    %113 = arith.addf %111, %112 : vector<16x384xf32>
    %114 = vector.broadcast %98 : vector<16x1xf32> to vector<16x384xf32>
    %115 = arith.addf %113, %114 : vector<16x384xf32>
    %cst_83 = arith.constant dense<0.000000e+00> : vector<4x384xf32>
    %116 = tpu.matmul %99, %100, %cst_83 {dimension_numbers = #tpu.dot_dimension_numbers<[1], [0], [0], [1], [0, 0, 1, 1], [], []>} : vector<4x4xf32>, vector<4x384xf32>, vector<4x384xf32> -> vector<4x384xf32>
    %cst_84 = arith.constant dense<0.000000e+00> : vector<4x384xf32>
    %117 = tpu.matmul %99, %101, %cst_84 {dimension_numbers = #tpu.dot_dimension_numbers<[1], [0], [0], [1], [0, 0, 1, 1], [], []>} : vector<4x4xf32>, vector<4x384xf32>, vector<4x384xf32> -> vector<4x384xf32>
    %cst_85 = arith.constant dense<0.000000e+00> : vector<4x384xf32>
    %118 = tpu.matmul %99, %102, %cst_85 {dimension_numbers = #tpu.dot_dimension_numbers<[1], [0], [0], [1], [0, 0, 1, 1], [], []>} : vector<4x4xf32>, vector<4x384xf32>, vector<4x384xf32> -> vector<4x384xf32>
    %119 = arith.mulf %116, %116 : vector<4x384xf32>
    %120 = arith.mulf %117, %117 : vector<4x384xf32>
    %121 = arith.addf %119, %120 : vector<4x384xf32>
    %122 = arith.mulf %118, %118 : vector<4x384xf32>
    %123 = arith.addf %121, %122 : vector<4x384xf32>
    %cst_86 = arith.constant 9.99999993E-9 : f32
    %124 = vector.broadcast %cst_86 : f32 to vector<4x384xf32>
    %125 = arith.maximumf %123, %124 : vector<4x384xf32>
    %126 = math.sqrt %125 : vector<4x384xf32>
    %127 = arith.negf %126 : vector<4x384xf32>
    %128 = math.exp %127 : vector<4x384xf32>
    %cst_87 = arith.constant 1.000000e+00 : f32
    %129 = vector.broadcast %cst_87 : f32 to vector<4x384xf32>
    %130 = arith.addf %129, %128 : vector<4x384xf32>
    %131 = arith.divf %129, %130 : vector<4x384xf32>
    %132 = arith.mulf %116, %131 : vector<4x384xf32>
    %133 = arith.mulf %117, %131 : vector<4x384xf32>
    %134 = arith.mulf %118, %131 : vector<4x384xf32>
    %cst_88 = arith.constant 0.000000e+00 : f32
    %135 = vector.broadcast %cst_88 : f32 to vector<16x384xf32>
    %136 = arith.maximumf %115, %135 : vector<16x384xf32>
    %c0_89 = arith.constant 0 : index
    %c0_90 = arith.constant 0 : index
    %137 = vector.load %arg22[%c0_89, %c0_90] : memref<16x16xf32, #tpu.memory_space<vmem>>, vector<16x16xf32>
    %c0_91 = arith.constant 0 : index
    %c0_92 = arith.constant 0 : index
    %138 = vector.load %arg21[%c0_91, %c0_92] : memref<4x4xf32, #tpu.memory_space<vmem>>, vector<4x4xf32>
    %c0_93 = arith.constant 0 : index
    %c0_94 = arith.constant 0 : index
    %139 = vector.load %arg23[%c0_93, %c0_94] : memref<16x4xf32, #tpu.memory_space<vmem>>, vector<16x4xf32>
    %c0_95 = arith.constant 0 : index
    %c0_96 = arith.constant 0 : index
    %140 = vector.load %arg24[%c0_95, %c0_96] : memref<16x1xf32, #tpu.memory_space<vmem>>, vector<16x1xf32>
    %c0_97 = arith.constant 0 : index
    %c0_98 = arith.constant 0 : index
    %141 = vector.load %arg25[%c0_97, %c0_98] : memref<4x4xf32, #tpu.memory_space<vmem>>, vector<4x4xf32>
    %cst_99 = arith.constant dense<0.000000e+00> : vector<4x384xf32>
    %142 = tpu.matmul %138, %132, %cst_99 {dimension_numbers = #tpu.dot_dimension_numbers<[1], [0], [0], [1], [0, 0, 1, 1], [], []>} : vector<4x4xf32>, vector<4x384xf32>, vector<4x384xf32> -> vector<4x384xf32>
    %cst_100 = arith.constant dense<0.000000e+00> : vector<4x384xf32>
    %143 = tpu.matmul %138, %133, %cst_100 {dimension_numbers = #tpu.dot_dimension_numbers<[1], [0], [0], [1], [0, 0, 1, 1], [], []>} : vector<4x4xf32>, vector<4x384xf32>, vector<4x384xf32> -> vector<4x384xf32>
    %cst_101 = arith.constant dense<0.000000e+00> : vector<4x384xf32>
    %144 = tpu.matmul %138, %134, %cst_101 {dimension_numbers = #tpu.dot_dimension_numbers<[1], [0], [0], [1], [0, 0, 1, 1], [], []>} : vector<4x4xf32>, vector<4x384xf32>, vector<4x384xf32> -> vector<4x384xf32>
    %145 = arith.mulf %142, %142 : vector<4x384xf32>
    %146 = arith.mulf %143, %143 : vector<4x384xf32>
    %147 = arith.addf %145, %146 : vector<4x384xf32>
    %148 = arith.mulf %144, %144 : vector<4x384xf32>
    %149 = arith.addf %147, %148 : vector<4x384xf32>
    %cst_102 = arith.constant 9.99999993E-9 : f32
    %150 = vector.broadcast %cst_102 : f32 to vector<4x384xf32>
    %151 = arith.maximumf %149, %150 : vector<4x384xf32>
    %152 = math.sqrt %151 : vector<4x384xf32>
    %cst_103 = arith.constant dense<0.000000e+00> : vector<16x384xf32>
    %153 = tpu.matmul %137, %136, %cst_103 {dimension_numbers = #tpu.dot_dimension_numbers<[1], [0], [0], [1], [0, 0, 1, 1], [], []>} : vector<16x16xf32>, vector<16x384xf32>, vector<16x384xf32> -> vector<16x384xf32>
    %cst_104 = arith.constant dense<0.000000e+00> : vector<16x384xf32>
    %154 = tpu.matmul %139, %152, %cst_104 {dimension_numbers = #tpu.dot_dimension_numbers<[1], [0], [0], [1], [0, 0, 1, 1], [], []>} : vector<16x4xf32>, vector<4x384xf32>, vector<16x384xf32> -> vector<16x384xf32>
    %155 = arith.addf %153, %154 : vector<16x384xf32>
    %156 = vector.broadcast %140 : vector<16x1xf32> to vector<16x384xf32>
    %157 = arith.addf %155, %156 : vector<16x384xf32>
    %cst_105 = arith.constant dense<0.000000e+00> : vector<4x384xf32>
    %158 = tpu.matmul %141, %142, %cst_105 {dimension_numbers = #tpu.dot_dimension_numbers<[1], [0], [0], [1], [0, 0, 1, 1], [], []>} : vector<4x4xf32>, vector<4x384xf32>, vector<4x384xf32> -> vector<4x384xf32>
    %cst_106 = arith.constant dense<0.000000e+00> : vector<4x384xf32>
    %159 = tpu.matmul %141, %143, %cst_106 {dimension_numbers = #tpu.dot_dimension_numbers<[1], [0], [0], [1], [0, 0, 1, 1], [], []>} : vector<4x4xf32>, vector<4x384xf32>, vector<4x384xf32> -> vector<4x384xf32>
    %cst_107 = arith.constant dense<0.000000e+00> : vector<4x384xf32>
    %160 = tpu.matmul %141, %144, %cst_107 {dimension_numbers = #tpu.dot_dimension_numbers<[1], [0], [0], [1], [0, 0, 1, 1], [], []>} : vector<4x4xf32>, vector<4x384xf32>, vector<4x384xf32> -> vector<4x384xf32>
    %161 = arith.truncf %157 : vector<16x384xf32> to vector<16x384xbf16>
    %c0_108 = arith.constant 0 : index
    %c0_109 = arith.constant 0 : index
    %162 = vector.load %arg26[%c0_108, %c0_109] : memref<16x384xbf16, #tpu.memory_space<vmem>>, vector<16x384xbf16>
    tpu.vector_store %arg26[%c0_108, %c0_109], %161 {strides = array<i32>} : memref<16x384xbf16, #tpu.memory_space<vmem>>, vector<16x384xbf16>,
    %163 = arith.truncf %158 : vector<4x384xf32> to vector<4x384xbf16>
    %c0_110 = arith.constant 0 : index
    %c0_111 = arith.constant 0 : index
    %c0_112 = arith.constant 0 : index
    %164 = vector.load %arg27[%c0_110, %c0_111, %c0_112] : memref<3x4x384xbf16, #tpu.memory_space<vmem>>, vector<1x4x384xbf16>
    %165 = vector.shape_cast %164 : vector<1x4x384xbf16> to vector<4x384xbf16>
    %166 = vector.shape_cast %163 : vector<4x384xbf16> to vector<1x4x384xbf16>
    tpu.vector_store %arg27[%c0_110, %c0_111, %c0_112], %166 {strides = array<i32>} : memref<3x4x384xbf16, #tpu.memory_space<vmem>>, vector<1x4x384xbf16>,
    %167 = arith.truncf %159 : vector<4x384xf32> to vector<4x384xbf16>
    %c1_113 = arith.constant 1 : index
    %c0_114 = arith.constant 0 : index
    %c0_115 = arith.constant 0 : index
    %168 = vector.load %arg27[%c1_113, %c0_114, %c0_115] : memref<3x4x384xbf16, #tpu.memory_space<vmem>>, vector<1x4x384xbf16>
    %169 = vector.shape_cast %168 : vector<1x4x384xbf16> to vector<4x384xbf16>
    %170 = vector.shape_cast %167 : vector<4x384xbf16> to vector<1x4x384xbf16>
    tpu.vector_store %arg27[%c1_113, %c0_114, %c0_115], %170 {strides = array<i32>} : memref<3x4x384xbf16, #tpu.memory_space<vmem>>, vector<1x4x384xbf16>,
    %171 = arith.truncf %160 : vector<4x384xf32> to vector<4x384xbf16>
    %c2_116 = arith.constant 2 : index
    %c0_117 = arith.constant 0 : index
    %c0_118 = arith.constant 0 : index
    %172 = vector.load %arg27[%c2_116, %c0_117, %c0_118] : memref<3x4x384xbf16, #tpu.memory_space<vmem>>, vector<1x4x384xbf16>
    %173 = vector.shape_cast %172 : vector<1x4x384xbf16> to vector<4x384xbf16>
    %174 = vector.shape_cast %171 : vector<4x384xbf16> to vector<1x4x384xbf16>
    tpu.vector_store %arg27[%c2_116, %c0_117, %c0_118], %174 {strides = array<i32>} : memref<3x4x384xbf16, #tpu.memory_space<vmem>>, vector<1x4x384xbf16>,
    return
  }
  func.func @transform_0(%arg0: i32) -> (i32, i32) {
    %c0_i32 = arith.constant 0 : i32
    %c0_i32_0 = arith.constant 0 : i32
    return %c0_i32, %arg0 : i32, i32
  }
  func.func @transform_1(%arg0: i32) -> (i32, i32) {
    %c0_i32 = arith.constant 0 : i32
    %c0_i32_0 = arith.constant 0 : i32
    return %c0_i32, %arg0 : i32, i32
  }
  func.func @transform_2(%arg0: i32) -> (i32, i32) {
    %c0_i32 = arith.constant 0 : i32
    %c0_i32_0 = arith.constant 0 : i32
    return %c0_i32, %arg0 : i32, i32
  }
  func.func @transform_3(%arg0: i32) -> (i32, i32, i32) {
    %c0_i32 = arith.constant 0 : i32
    %c0_i32_0 = arith.constant 0 : i32
    %c0_i32_1 = arith.constant 0 : i32
    return %c0_i32, %c0_i32_0, %arg0 : i32, i32, i32
  }
  func.func @transform_4(%arg0: i32) -> (i32, i32, i32) {
    %c0_i32 = arith.constant 0 : i32
    %c0_i32_0 = arith.constant 0 : i32
    %c0_i32_1 = arith.constant 0 : i32
    return %c0_i32, %c0_i32_0, %arg0 : i32, i32, i32
  }
  func.func @transform_5(%arg0: i32) -> (i32, i32, i32) {
    %c0_i32 = arith.constant 0 : i32
    %c0_i32_0 = arith.constant 0 : i32
    %c0_i32_1 = arith.constant 0 : i32
    return %c0_i32, %c0_i32_0, %arg0 : i32, i32, i32
  }
  func.func @transform_6(%arg0: i32) -> (i32, i32) {
    %c0_i32 = arith.constant 0 : i32
    %c0_i32_0 = arith.constant 0 : i32
    %c0_i32_1 = arith.constant 0 : i32
    return %c0_i32, %c0_i32_0 : i32, i32
  }
  func.func @transform_7(%arg0: i32) -> (i32, i32) {
    %c0_i32 = arith.constant 0 : i32
    %c0_i32_0 = arith.constant 0 : i32
    %c0_i32_1 = arith.constant 0 : i32
    return %c0_i32, %c0_i32_0 : i32, i32
  }
  func.func @transform_8(%arg0: i32) -> (i32, i32) {
    %c0_i32 = arith.constant 0 : i32
    %c0_i32_0 = arith.constant 0 : i32
    %c0_i32_1 = arith.constant 0 : i32
    return %c0_i32, %c0_i32_0 : i32, i32
  }
  func.func @transform_9(%arg0: i32) -> (i32, i32) {
    %c0_i32 = arith.constant 0 : i32
    %c0_i32_0 = arith.constant 0 : i32
    %c0_i32_1 = arith.constant 0 : i32
    return %c0_i32, %c0_i32_0 : i32, i32
  }
  func.func @transform_10(%arg0: i32) -> (i32, i32) {
    %c0_i32 = arith.constant 0 : i32
    %c0_i32_0 = arith.constant 0 : i32
    %c0_i32_1 = arith.constant 0 : i32
    return %c0_i32, %c0_i32_0 : i32, i32
  }
  func.func @transform_11(%arg0: i32) -> (i32, i32) {
    %c0_i32 = arith.constant 0 : i32
    %c0_i32_0 = arith.constant 0 : i32
    %c0_i32_1 = arith.constant 0 : i32
    return %c0_i32, %c0_i32_0 : i32, i32
  }
  func.func @transform_12(%arg0: i32) -> (i32, i32) {
    %c0_i32 = arith.constant 0 : i32
    %c0_i32_0 = arith.constant 0 : i32
    %c0_i32_1 = arith.constant 0 : i32
    return %c0_i32, %c0_i32_0 : i32, i32
  }
  func.func @transform_13(%arg0: i32) -> (i32, i32) {
    %c0_i32 = arith.constant 0 : i32
    %c0_i32_0 = arith.constant 0 : i32
    %c0_i32_1 = arith.constant 0 : i32
    return %c0_i32, %c0_i32_0 : i32, i32
  }
  func.func @transform_14(%arg0: i32) -> (i32, i32) {
    %c0_i32 = arith.constant 0 : i32
    %c0_i32_0 = arith.constant 0 : i32
    %c0_i32_1 = arith.constant 0 : i32
    return %c0_i32, %c0_i32_0 : i32, i32
  }
  func.func @transform_15(%arg0: i32) -> (i32, i32) {
    %c0_i32 = arith.constant 0 : i32
    %c0_i32_0 = arith.constant 0 : i32
    %c0_i32_1 = arith.constant 0 : i32
    return %c0_i32, %c0_i32_0 : i32, i32
  }
  func.func @transform_16(%arg0: i32) -> (i32, i32) {
    %c0_i32 = arith.constant 0 : i32
    %c0_i32_0 = arith.constant 0 : i32
    %c0_i32_1 = arith.constant 0 : i32
    return %c0_i32, %c0_i32_0 : i32, i32
  }
  func.func @transform_17(%arg0: i32) -> (i32, i32) {
    %c0_i32 = arith.constant 0 : i32
    %c0_i32_0 = arith.constant 0 : i32
    %c0_i32_1 = arith.constant 0 : i32
    return %c0_i32, %c0_i32_0 : i32, i32
  }
  func.func @transform_18(%arg0: i32) -> (i32, i32) {
    %c0_i32 = arith.constant 0 : i32
    %c0_i32_0 = arith.constant 0 : i32
    %c0_i32_1 = arith.constant 0 : i32
    return %c0_i32, %c0_i32_0 : i32, i32
  }
  func.func @transform_19(%arg0: i32) -> (i32, i32) {
    %c0_i32 = arith.constant 0 : i32
    %c0_i32_0 = arith.constant 0 : i32
    %c0_i32_1 = arith.constant 0 : i32
    return %c0_i32, %c0_i32_0 : i32, i32
  }
  func.func @transform_20(%arg0: i32) -> (i32, i32) {
    %c0_i32 = arith.constant 0 : i32
    %c0_i32_0 = arith.constant 0 : i32
    %c0_i32_1 = arith.constant 0 : i32
    return %c0_i32, %c0_i32_0 : i32, i32
  }
  func.func @transform_21(%arg0: i32) -> (i32, i32) {
    %c0_i32 = arith.constant 0 : i32
    %c0_i32_0 = arith.constant 0 : i32
    %c0_i32_1 = arith.constant 0 : i32
    return %c0_i32, %c0_i32_0 : i32, i32
  }
  func.func @transform_22(%arg0: i32) -> (i32, i32) {
    %c0_i32 = arith.constant 0 : i32
    %c0_i32_0 = arith.constant 0 : i32
    %c0_i32_1 = arith.constant 0 : i32
    return %c0_i32, %c0_i32_0 : i32, i32
  }
  func.func @transform_23(%arg0: i32) -> (i32, i32) {
    %c0_i32 = arith.constant 0 : i32
    %c0_i32_0 = arith.constant 0 : i32
    %c0_i32_1 = arith.constant 0 : i32
    return %c0_i32, %c0_i32_0 : i32, i32
  }
  func.func @transform_24(%arg0: i32) -> (i32, i32) {
    %c0_i32 = arith.constant 0 : i32
    %c0_i32_0 = arith.constant 0 : i32
    %c0_i32_1 = arith.constant 0 : i32
    return %c0_i32, %c0_i32_0 : i32, i32
  }
  func.func @transform_25(%arg0: i32) -> (i32, i32) {
    %c0_i32 = arith.constant 0 : i32
    %c0_i32_0 = arith.constant 0 : i32
    return %c0_i32, %arg0 : i32, i32
  }
  func.func @transform_26(%arg0: i32) -> (i32, i32, i32) {
    %c0_i32 = arith.constant 0 : i32
    %c0_i32_0 = arith.constant 0 : i32
    %c0_i32_1 = arith.constant 0 : i32
    return %c0_i32, %c0_i32_0, %arg0 : i32, i32, i32
  }
}

module attributes {stable_mosaic.version = 11 : i64} {
  func.func @_node_kernel(%arg0: i32, %arg1: memref<16x128xbf16, #tpu.memory_space<vmem>>, %arg2: memref<3x4x128xbf16, #tpu.memory_space<vmem>>, %arg3: memref<16x128xbf16, #tpu.memory_space<vmem>>, %arg4: memref<3x4x128xbf16, #tpu.memory_space<vmem>>, %arg5: memref<16x1xf32, #tpu.memory_space<vmem>>, %arg6: memref<16x1xf32, #tpu.memory_space<vmem>>, %arg7: memref<8x4xf32, #tpu.memory_space<vmem>>, %arg8: memref<64x16xf32, #tpu.memory_space<vmem>>, %arg9: memref<64x8xf32, #tpu.memory_space<vmem>>, %arg10: memref<64x1xf32, #tpu.memory_space<vmem>>, %arg11: memref<8x8xf32, #tpu.memory_space<vmem>>, %arg12: memref<8x8xf32, #tpu.memory_space<vmem>>, %arg13: memref<16x64xf32, #tpu.memory_space<vmem>>, %arg14: memref<16x8xf32, #tpu.memory_space<vmem>>, %arg15: memref<16x1xf32, #tpu.memory_space<vmem>>, %arg16: memref<4x8xf32, #tpu.memory_space<vmem>>, %arg17: memref<16x1xf32, #tpu.memory_space<vmem>>, %arg18: memref<16x1xf32, #tpu.memory_space<vmem>>, %arg19: memref<16x128xbf16, #tpu.memory_space<vmem>>, %arg20: memref<3x4x128xbf16, #tpu.memory_space<vmem>>) attributes {dimension_semantics = [#tpu.dimension_semantics<parallel>], iteration_bounds = array<i64: 2>, scalar_prefetch = 0 : i64, scratch_operands = 0 : i64, tpu.core_type = #tpu.core_type<tc>, window_params = [{transform_indices = @transform_0, window_bounds = array<i64: 16, 128>}, {transform_indices = @transform_1, window_bounds = array<i64: 3, 4, 128>}, {transform_indices = @transform_2, window_bounds = array<i64: 16, 128>}, {transform_indices = @transform_3, window_bounds = array<i64: 3, 4, 128>}, {pipeline_mode = #tpu.pipeline_mode<synchronous>, transform_indices = @transform_4, window_bounds = array<i64: 16, 1>}, {pipeline_mode = #tpu.pipeline_mode<synchronous>, transform_indices = @transform_5, window_bounds = array<i64: 16, 1>}, {pipeline_mode = #tpu.pipeline_mode<synchronous>, transform_indices = @transform_6, window_bounds = array<i64: 8, 4>}, {pipeline_mode = #tpu.pipeline_mode<synchronous>, transform_indices = @transform_7, window_bounds = array<i64: 64, 16>}, {pipeline_mode = #tpu.pipeline_mode<synchronous>, transform_indices = @transform_8, window_bounds = array<i64: 64, 8>}, {pipeline_mode = #tpu.pipeline_mode<synchronous>, transform_indices = @transform_9, window_bounds = array<i64: 64, 1>}, {pipeline_mode = #tpu.pipeline_mode<synchronous>, transform_indices = @transform_10, window_bounds = array<i64: 8, 8>}, {pipeline_mode = #tpu.pipeline_mode<synchronous>, transform_indices = @transform_11, window_bounds = array<i64: 8, 8>}, {pipeline_mode = #tpu.pipeline_mode<synchronous>, transform_indices = @transform_12, window_bounds = array<i64: 16, 64>}, {pipeline_mode = #tpu.pipeline_mode<synchronous>, transform_indices = @transform_13, window_bounds = array<i64: 16, 8>}, {pipeline_mode = #tpu.pipeline_mode<synchronous>, transform_indices = @transform_14, window_bounds = array<i64: 16, 1>}, {pipeline_mode = #tpu.pipeline_mode<synchronous>, transform_indices = @transform_15, window_bounds = array<i64: 4, 8>}, {pipeline_mode = #tpu.pipeline_mode<synchronous>, transform_indices = @transform_16, window_bounds = array<i64: 16, 1>}, {pipeline_mode = #tpu.pipeline_mode<synchronous>, transform_indices = @transform_17, window_bounds = array<i64: 16, 1>}, {transform_indices = @transform_18, window_bounds = array<i64: 16, 128>}, {transform_indices = @transform_19, window_bounds = array<i64: 3, 4, 128>}]} {
    %c0 = arith.constant 0 : index
    %c0_0 = arith.constant 0 : index
    %0 = vector.load %arg1[%c0, %c0_0] : memref<16x128xbf16, #tpu.memory_space<vmem>>, vector<16x128xbf16>
    %1 = arith.extf %0 : vector<16x128xbf16> to vector<16x128xf32>
    %c0_1 = arith.constant 0 : index
    %c0_2 = arith.constant 0 : index
    %2 = vector.load %arg3[%c0_1, %c0_2] : memref<16x128xbf16, #tpu.memory_space<vmem>>, vector<16x128xbf16>
    %3 = arith.extf %2 : vector<16x128xbf16> to vector<16x128xf32>
    %c0_3 = arith.constant 0 : index
    %c0_4 = arith.constant 0 : index
    %c0_5 = arith.constant 0 : index
    %4 = vector.load %arg2[%c0_3, %c0_4, %c0_5] : memref<3x4x128xbf16, #tpu.memory_space<vmem>>, vector<1x4x128xbf16>
    %5 = vector.shape_cast %4 : vector<1x4x128xbf16> to vector<4x128xbf16>
    %6 = arith.extf %5 : vector<4x128xbf16> to vector<4x128xf32>
    %c1 = arith.constant 1 : index
    %c0_6 = arith.constant 0 : index
    %c0_7 = arith.constant 0 : index
    %7 = vector.load %arg2[%c1, %c0_6, %c0_7] : memref<3x4x128xbf16, #tpu.memory_space<vmem>>, vector<1x4x128xbf16>
    %8 = vector.shape_cast %7 : vector<1x4x128xbf16> to vector<4x128xbf16>
    %9 = arith.extf %8 : vector<4x128xbf16> to vector<4x128xf32>
    %c2 = arith.constant 2 : index
    %c0_8 = arith.constant 0 : index
    %c0_9 = arith.constant 0 : index
    %10 = vector.load %arg2[%c2, %c0_8, %c0_9] : memref<3x4x128xbf16, #tpu.memory_space<vmem>>, vector<1x4x128xbf16>
    %11 = vector.shape_cast %10 : vector<1x4x128xbf16> to vector<4x128xbf16>
    %12 = arith.extf %11 : vector<4x128xbf16> to vector<4x128xf32>
    %c0_10 = arith.constant 0 : index
    %c0_11 = arith.constant 0 : index
    %c0_12 = arith.constant 0 : index
    %13 = vector.load %arg4[%c0_10, %c0_11, %c0_12] : memref<3x4x128xbf16, #tpu.memory_space<vmem>>, vector<1x4x128xbf16>
    %14 = vector.shape_cast %13 : vector<1x4x128xbf16> to vector<4x128xbf16>
    %15 = arith.extf %14 : vector<4x128xbf16> to vector<4x128xf32>
    %c1_13 = arith.constant 1 : index
    %c0_14 = arith.constant 0 : index
    %c0_15 = arith.constant 0 : index
    %16 = vector.load %arg4[%c1_13, %c0_14, %c0_15] : memref<3x4x128xbf16, #tpu.memory_space<vmem>>, vector<1x4x128xbf16>
    %17 = vector.shape_cast %16 : vector<1x4x128xbf16> to vector<4x128xbf16>
    %18 = arith.extf %17 : vector<4x128xbf16> to vector<4x128xf32>
    %c2_16 = arith.constant 2 : index
    %c0_17 = arith.constant 0 : index
    %c0_18 = arith.constant 0 : index
    %19 = vector.load %arg4[%c2_16, %c0_17, %c0_18] : memref<3x4x128xbf16, #tpu.memory_space<vmem>>, vector<1x4x128xbf16>
    %20 = vector.shape_cast %19 : vector<1x4x128xbf16> to vector<4x128xbf16>
    %21 = arith.extf %20 : vector<4x128xbf16> to vector<4x128xf32>
    %22 = arith.addf %1, %3 : vector<16x128xf32>
    %c0_19 = arith.constant 0 : index
    %c0_20 = arith.constant 0 : index
    %23 = vector.load %arg5[%c0_19, %c0_20] : memref<16x1xf32, #tpu.memory_space<vmem>>, vector<16x1xf32>
    %c0_21 = arith.constant 0 : index
    %c0_22 = arith.constant 0 : index
    %24 = vector.load %arg6[%c0_21, %c0_22] : memref<16x1xf32, #tpu.memory_space<vmem>>, vector<16x1xf32>
    %cst = arith.constant dense<0.000000e+00> : vector<128xf32>
    %25 = vector.multi_reduction <add>, %22, %cst [0] : vector<16x128xf32> to vector<128xf32>
    %26 = vector.shape_cast %25 : vector<128xf32> to vector<1x128xf32>
    %cst_23 = arith.constant 1.600000e+01 : f32
    %27 = vector.broadcast %cst_23 : f32 to vector<1x128xf32>
    %28 = arith.divf %26, %27 : vector<1x128xf32>
    %29 = vector.broadcast %28 : vector<1x128xf32> to vector<16x128xf32>
    %30 = arith.subf %22, %29 : vector<16x128xf32>
    %31 = arith.mulf %30, %30 : vector<16x128xf32>
    %cst_24 = arith.constant dense<0.000000e+00> : vector<128xf32>
    %32 = vector.multi_reduction <add>, %31, %cst_24 [0] : vector<16x128xf32> to vector<128xf32>
    %33 = vector.shape_cast %32 : vector<128xf32> to vector<1x128xf32>
    %cst_25 = arith.constant 1.600000e+01 : f32
    %34 = vector.broadcast %cst_25 : f32 to vector<1x128xf32>
    %35 = arith.divf %33, %34 : vector<1x128xf32>
    %cst_26 = arith.constant 9.99999974E-6 : f32
    %36 = vector.broadcast %cst_26 : f32 to vector<1x128xf32>
    %37 = arith.addf %35, %36 : vector<1x128xf32>
    %38 = math.rsqrt %37 : vector<1x128xf32>
    %39 = vector.broadcast %38 : vector<1x128xf32> to vector<16x128xf32>
    %40 = arith.mulf %30, %39 : vector<16x128xf32>
    %41 = vector.broadcast %23 : vector<16x1xf32> to vector<16x128xf32>
    %42 = arith.mulf %40, %41 : vector<16x128xf32>
    %43 = vector.broadcast %24 : vector<16x1xf32> to vector<16x128xf32>
    %44 = arith.addf %42, %43 : vector<16x128xf32>
    %45 = arith.addf %6, %15 : vector<4x128xf32>
    %46 = arith.addf %9, %18 : vector<4x128xf32>
    %47 = arith.addf %12, %21 : vector<4x128xf32>
    %48 = arith.mulf %45, %45 : vector<4x128xf32>
    %49 = arith.mulf %46, %46 : vector<4x128xf32>
    %50 = arith.addf %48, %49 : vector<4x128xf32>
    %51 = arith.mulf %47, %47 : vector<4x128xf32>
    %52 = arith.addf %50, %51 : vector<4x128xf32>
    %cst_27 = arith.constant 9.99999993E-9 : f32
    %53 = vector.broadcast %cst_27 : f32 to vector<4x128xf32>
    %54 = arith.maximumf %52, %53 : vector<4x128xf32>
    %cst_28 = arith.constant dense<0.000000e+00> : vector<128xf32>
    %55 = vector.multi_reduction <add>, %54, %cst_28 [0] : vector<4x128xf32> to vector<128xf32>
    %56 = vector.shape_cast %55 : vector<128xf32> to vector<1x128xf32>
    %cst_29 = arith.constant 4.000000e+00 : f32
    %57 = vector.broadcast %cst_29 : f32 to vector<1x128xf32>
    %58 = arith.divf %56, %57 : vector<1x128xf32>
    %59 = math.rsqrt %58 : vector<1x128xf32>
    %60 = vector.broadcast %59 : vector<1x128xf32> to vector<4x128xf32>
    %61 = arith.mulf %45, %60 : vector<4x128xf32>
    %62 = vector.broadcast %59 : vector<1x128xf32> to vector<4x128xf32>
    %63 = arith.mulf %46, %62 : vector<4x128xf32>
    %64 = vector.broadcast %59 : vector<1x128xf32> to vector<4x128xf32>
    %65 = arith.mulf %47, %64 : vector<4x128xf32>
    %c0_30 = arith.constant 0 : index
    %c0_31 = arith.constant 0 : index
    %66 = vector.load %arg8[%c0_30, %c0_31] : memref<64x16xf32, #tpu.memory_space<vmem>>, vector<64x16xf32>
    %c0_32 = arith.constant 0 : index
    %c0_33 = arith.constant 0 : index
    %67 = vector.load %arg7[%c0_32, %c0_33] : memref<8x4xf32, #tpu.memory_space<vmem>>, vector<8x4xf32>
    %c0_34 = arith.constant 0 : index
    %c0_35 = arith.constant 0 : index
    %68 = vector.load %arg9[%c0_34, %c0_35] : memref<64x8xf32, #tpu.memory_space<vmem>>, vector<64x8xf32>
    %c0_36 = arith.constant 0 : index
    %c0_37 = arith.constant 0 : index
    %69 = vector.load %arg10[%c0_36, %c0_37] : memref<64x1xf32, #tpu.memory_space<vmem>>, vector<64x1xf32>
    %c0_38 = arith.constant 0 : index
    %c0_39 = arith.constant 0 : index
    %70 = vector.load %arg11[%c0_38, %c0_39] : memref<8x8xf32, #tpu.memory_space<vmem>>, vector<8x8xf32>
    %cst_40 = arith.constant dense<0.000000e+00> : vector<8x128xf32>
    %71 = tpu.matmul %67, %61, %cst_40 {dimension_numbers = #tpu.dot_dimension_numbers<[1], [0], [0], [1], [0, 0, 1, 1], [], []>} : vector<8x4xf32>, vector<4x128xf32>, vector<8x128xf32> -> vector<8x128xf32>
    %cst_41 = arith.constant dense<0.000000e+00> : vector<8x128xf32>
    %72 = tpu.matmul %67, %63, %cst_41 {dimension_numbers = #tpu.dot_dimension_numbers<[1], [0], [0], [1], [0, 0, 1, 1], [], []>} : vector<8x4xf32>, vector<4x128xf32>, vector<8x128xf32> -> vector<8x128xf32>
    %cst_42 = arith.constant dense<0.000000e+00> : vector<8x128xf32>
    %73 = tpu.matmul %67, %65, %cst_42 {dimension_numbers = #tpu.dot_dimension_numbers<[1], [0], [0], [1], [0, 0, 1, 1], [], []>} : vector<8x4xf32>, vector<4x128xf32>, vector<8x128xf32> -> vector<8x128xf32>
    %74 = arith.mulf %71, %71 : vector<8x128xf32>
    %75 = arith.mulf %72, %72 : vector<8x128xf32>
    %76 = arith.addf %74, %75 : vector<8x128xf32>
    %77 = arith.mulf %73, %73 : vector<8x128xf32>
    %78 = arith.addf %76, %77 : vector<8x128xf32>
    %cst_43 = arith.constant 9.99999993E-9 : f32
    %79 = vector.broadcast %cst_43 : f32 to vector<8x128xf32>
    %80 = arith.maximumf %78, %79 : vector<8x128xf32>
    %81 = math.sqrt %80 : vector<8x128xf32>
    %cst_44 = arith.constant dense<0.000000e+00> : vector<64x128xf32>
    %82 = tpu.matmul %66, %44, %cst_44 {dimension_numbers = #tpu.dot_dimension_numbers<[1], [0], [0], [1], [0, 0, 1, 1], [], []>} : vector<64x16xf32>, vector<16x128xf32>, vector<64x128xf32> -> vector<64x128xf32>
    %cst_45 = arith.constant dense<0.000000e+00> : vector<64x128xf32>
    %83 = tpu.matmul %68, %81, %cst_45 {dimension_numbers = #tpu.dot_dimension_numbers<[1], [0], [0], [1], [0, 0, 1, 1], [], []>} : vector<64x8xf32>, vector<8x128xf32>, vector<64x128xf32> -> vector<64x128xf32>
    %84 = arith.addf %82, %83 : vector<64x128xf32>
    %85 = vector.broadcast %69 : vector<64x1xf32> to vector<64x128xf32>
    %86 = arith.addf %84, %85 : vector<64x128xf32>
    %cst_46 = arith.constant dense<0.000000e+00> : vector<8x128xf32>
    %87 = tpu.matmul %70, %71, %cst_46 {dimension_numbers = #tpu.dot_dimension_numbers<[1], [0], [0], [1], [0, 0, 1, 1], [], []>} : vector<8x8xf32>, vector<8x128xf32>, vector<8x128xf32> -> vector<8x128xf32>
    %cst_47 = arith.constant dense<0.000000e+00> : vector<8x128xf32>
    %88 = tpu.matmul %70, %72, %cst_47 {dimension_numbers = #tpu.dot_dimension_numbers<[1], [0], [0], [1], [0, 0, 1, 1], [], []>} : vector<8x8xf32>, vector<8x128xf32>, vector<8x128xf32> -> vector<8x128xf32>
    %cst_48 = arith.constant dense<0.000000e+00> : vector<8x128xf32>
    %89 = tpu.matmul %70, %73, %cst_48 {dimension_numbers = #tpu.dot_dimension_numbers<[1], [0], [0], [1], [0, 0, 1, 1], [], []>} : vector<8x8xf32>, vector<8x128xf32>, vector<8x128xf32> -> vector<8x128xf32>
    %90 = arith.mulf %87, %87 : vector<8x128xf32>
    %91 = arith.mulf %88, %88 : vector<8x128xf32>
    %92 = arith.addf %90, %91 : vector<8x128xf32>
    %93 = arith.mulf %89, %89 : vector<8x128xf32>
    %94 = arith.addf %92, %93 : vector<8x128xf32>
    %cst_49 = arith.constant 9.99999993E-9 : f32
    %95 = vector.broadcast %cst_49 : f32 to vector<8x128xf32>
    %96 = arith.maximumf %94, %95 : vector<8x128xf32>
    %97 = math.sqrt %96 : vector<8x128xf32>
    %98 = arith.negf %97 : vector<8x128xf32>
    %99 = math.exp %98 : vector<8x128xf32>
    %cst_50 = arith.constant 1.000000e+00 : f32
    %100 = vector.broadcast %cst_50 : f32 to vector<8x128xf32>
    %101 = arith.addf %100, %99 : vector<8x128xf32>
    %102 = arith.divf %100, %101 : vector<8x128xf32>
    %103 = arith.mulf %87, %102 : vector<8x128xf32>
    %104 = arith.mulf %88, %102 : vector<8x128xf32>
    %105 = arith.mulf %89, %102 : vector<8x128xf32>
    %cst_51 = arith.constant 0.000000e+00 : f32
    %106 = vector.broadcast %cst_51 : f32 to vector<64x128xf32>
    %107 = arith.maximumf %86, %106 : vector<64x128xf32>
    %c0_52 = arith.constant 0 : index
    %c0_53 = arith.constant 0 : index
    %108 = vector.load %arg13[%c0_52, %c0_53] : memref<16x64xf32, #tpu.memory_space<vmem>>, vector<16x64xf32>
    %c0_54 = arith.constant 0 : index
    %c0_55 = arith.constant 0 : index
    %109 = vector.load %arg12[%c0_54, %c0_55] : memref<8x8xf32, #tpu.memory_space<vmem>>, vector<8x8xf32>
    %c0_56 = arith.constant 0 : index
    %c0_57 = arith.constant 0 : index
    %110 = vector.load %arg14[%c0_56, %c0_57] : memref<16x8xf32, #tpu.memory_space<vmem>>, vector<16x8xf32>
    %c0_58 = arith.constant 0 : index
    %c0_59 = arith.constant 0 : index
    %111 = vector.load %arg15[%c0_58, %c0_59] : memref<16x1xf32, #tpu.memory_space<vmem>>, vector<16x1xf32>
    %c0_60 = arith.constant 0 : index
    %c0_61 = arith.constant 0 : index
    %112 = vector.load %arg16[%c0_60, %c0_61] : memref<4x8xf32, #tpu.memory_space<vmem>>, vector<4x8xf32>
    %cst_62 = arith.constant dense<0.000000e+00> : vector<8x128xf32>
    %113 = tpu.matmul %109, %103, %cst_62 {dimension_numbers = #tpu.dot_dimension_numbers<[1], [0], [0], [1], [0, 0, 1, 1], [], []>} : vector<8x8xf32>, vector<8x128xf32>, vector<8x128xf32> -> vector<8x128xf32>
    %cst_63 = arith.constant dense<0.000000e+00> : vector<8x128xf32>
    %114 = tpu.matmul %109, %104, %cst_63 {dimension_numbers = #tpu.dot_dimension_numbers<[1], [0], [0], [1], [0, 0, 1, 1], [], []>} : vector<8x8xf32>, vector<8x128xf32>, vector<8x128xf32> -> vector<8x128xf32>
    %cst_64 = arith.constant dense<0.000000e+00> : vector<8x128xf32>
    %115 = tpu.matmul %109, %105, %cst_64 {dimension_numbers = #tpu.dot_dimension_numbers<[1], [0], [0], [1], [0, 0, 1, 1], [], []>} : vector<8x8xf32>, vector<8x128xf32>, vector<8x128xf32> -> vector<8x128xf32>
    %116 = arith.mulf %113, %113 : vector<8x128xf32>
    %117 = arith.mulf %114, %114 : vector<8x128xf32>
    %118 = arith.addf %116, %117 : vector<8x128xf32>
    %119 = arith.mulf %115, %115 : vector<8x128xf32>
    %120 = arith.addf %118, %119 : vector<8x128xf32>
    %cst_65 = arith.constant 9.99999993E-9 : f32
    %121 = vector.broadcast %cst_65 : f32 to vector<8x128xf32>
    %122 = arith.maximumf %120, %121 : vector<8x128xf32>
    %123 = math.sqrt %122 : vector<8x128xf32>
    %cst_66 = arith.constant dense<0.000000e+00> : vector<16x128xf32>
    %124 = tpu.matmul %108, %107, %cst_66 {dimension_numbers = #tpu.dot_dimension_numbers<[1], [0], [0], [1], [0, 0, 1, 1], [], []>} : vector<16x64xf32>, vector<64x128xf32>, vector<16x128xf32> -> vector<16x128xf32>
    %cst_67 = arith.constant dense<0.000000e+00> : vector<16x128xf32>
    %125 = tpu.matmul %110, %123, %cst_67 {dimension_numbers = #tpu.dot_dimension_numbers<[1], [0], [0], [1], [0, 0, 1, 1], [], []>} : vector<16x8xf32>, vector<8x128xf32>, vector<16x128xf32> -> vector<16x128xf32>
    %126 = arith.addf %124, %125 : vector<16x128xf32>
    %127 = vector.broadcast %111 : vector<16x1xf32> to vector<16x128xf32>
    %128 = arith.addf %126, %127 : vector<16x128xf32>
    %cst_68 = arith.constant dense<0.000000e+00> : vector<4x128xf32>
    %129 = tpu.matmul %112, %113, %cst_68 {dimension_numbers = #tpu.dot_dimension_numbers<[1], [0], [0], [1], [0, 0, 1, 1], [], []>} : vector<4x8xf32>, vector<8x128xf32>, vector<4x128xf32> -> vector<4x128xf32>
    %cst_69 = arith.constant dense<0.000000e+00> : vector<4x128xf32>
    %130 = tpu.matmul %112, %114, %cst_69 {dimension_numbers = #tpu.dot_dimension_numbers<[1], [0], [0], [1], [0, 0, 1, 1], [], []>} : vector<4x8xf32>, vector<8x128xf32>, vector<4x128xf32> -> vector<4x128xf32>
    %cst_70 = arith.constant dense<0.000000e+00> : vector<4x128xf32>
    %131 = tpu.matmul %112, %115, %cst_70 {dimension_numbers = #tpu.dot_dimension_numbers<[1], [0], [0], [1], [0, 0, 1, 1], [], []>} : vector<4x8xf32>, vector<8x128xf32>, vector<4x128xf32> -> vector<4x128xf32>
    %132 = arith.addf %44, %128 : vector<16x128xf32>
    %c0_71 = arith.constant 0 : index
    %c0_72 = arith.constant 0 : index
    %133 = vector.load %arg17[%c0_71, %c0_72] : memref<16x1xf32, #tpu.memory_space<vmem>>, vector<16x1xf32>
    %c0_73 = arith.constant 0 : index
    %c0_74 = arith.constant 0 : index
    %134 = vector.load %arg18[%c0_73, %c0_74] : memref<16x1xf32, #tpu.memory_space<vmem>>, vector<16x1xf32>
    %cst_75 = arith.constant dense<0.000000e+00> : vector<128xf32>
    %135 = vector.multi_reduction <add>, %132, %cst_75 [0] : vector<16x128xf32> to vector<128xf32>
    %136 = vector.shape_cast %135 : vector<128xf32> to vector<1x128xf32>
    %cst_76 = arith.constant 1.600000e+01 : f32
    %137 = vector.broadcast %cst_76 : f32 to vector<1x128xf32>
    %138 = arith.divf %136, %137 : vector<1x128xf32>
    %139 = vector.broadcast %138 : vector<1x128xf32> to vector<16x128xf32>
    %140 = arith.subf %132, %139 : vector<16x128xf32>
    %141 = arith.mulf %140, %140 : vector<16x128xf32>
    %cst_77 = arith.constant dense<0.000000e+00> : vector<128xf32>
    %142 = vector.multi_reduction <add>, %141, %cst_77 [0] : vector<16x128xf32> to vector<128xf32>
    %143 = vector.shape_cast %142 : vector<128xf32> to vector<1x128xf32>
    %cst_78 = arith.constant 1.600000e+01 : f32
    %144 = vector.broadcast %cst_78 : f32 to vector<1x128xf32>
    %145 = arith.divf %143, %144 : vector<1x128xf32>
    %cst_79 = arith.constant 9.99999974E-6 : f32
    %146 = vector.broadcast %cst_79 : f32 to vector<1x128xf32>
    %147 = arith.addf %145, %146 : vector<1x128xf32>
    %148 = math.rsqrt %147 : vector<1x128xf32>
    %149 = vector.broadcast %148 : vector<1x128xf32> to vector<16x128xf32>
    %150 = arith.mulf %140, %149 : vector<16x128xf32>
    %151 = vector.broadcast %133 : vector<16x1xf32> to vector<16x128xf32>
    %152 = arith.mulf %150, %151 : vector<16x128xf32>
    %153 = vector.broadcast %134 : vector<16x1xf32> to vector<16x128xf32>
    %154 = arith.addf %152, %153 : vector<16x128xf32>
    %155 = arith.truncf %154 : vector<16x128xf32> to vector<16x128xbf16>
    %c0_80 = arith.constant 0 : index
    %c0_81 = arith.constant 0 : index
    %156 = vector.load %arg19[%c0_80, %c0_81] : memref<16x128xbf16, #tpu.memory_space<vmem>>, vector<16x128xbf16>
    tpu.vector_store %arg19[%c0_80, %c0_81], %155 {strides = array<i32>} : memref<16x128xbf16, #tpu.memory_space<vmem>>, vector<16x128xbf16>,
    %157 = arith.addf %61, %129 : vector<4x128xf32>
    %158 = arith.addf %63, %130 : vector<4x128xf32>
    %159 = arith.addf %65, %131 : vector<4x128xf32>
    %160 = arith.mulf %157, %157 : vector<4x128xf32>
    %161 = arith.mulf %158, %158 : vector<4x128xf32>
    %162 = arith.addf %160, %161 : vector<4x128xf32>
    %163 = arith.mulf %159, %159 : vector<4x128xf32>
    %164 = arith.addf %162, %163 : vector<4x128xf32>
    %cst_82 = arith.constant 9.99999993E-9 : f32
    %165 = vector.broadcast %cst_82 : f32 to vector<4x128xf32>
    %166 = arith.maximumf %164, %165 : vector<4x128xf32>
    %cst_83 = arith.constant dense<0.000000e+00> : vector<128xf32>
    %167 = vector.multi_reduction <add>, %166, %cst_83 [0] : vector<4x128xf32> to vector<128xf32>
    %168 = vector.shape_cast %167 : vector<128xf32> to vector<1x128xf32>
    %cst_84 = arith.constant 4.000000e+00 : f32
    %169 = vector.broadcast %cst_84 : f32 to vector<1x128xf32>
    %170 = arith.divf %168, %169 : vector<1x128xf32>
    %171 = math.rsqrt %170 : vector<1x128xf32>
    %172 = vector.broadcast %171 : vector<1x128xf32> to vector<4x128xf32>
    %173 = arith.mulf %157, %172 : vector<4x128xf32>
    %174 = vector.broadcast %171 : vector<1x128xf32> to vector<4x128xf32>
    %175 = arith.mulf %158, %174 : vector<4x128xf32>
    %176 = vector.broadcast %171 : vector<1x128xf32> to vector<4x128xf32>
    %177 = arith.mulf %159, %176 : vector<4x128xf32>
    %178 = arith.truncf %173 : vector<4x128xf32> to vector<4x128xbf16>
    %c0_85 = arith.constant 0 : index
    %c0_86 = arith.constant 0 : index
    %c0_87 = arith.constant 0 : index
    %179 = vector.load %arg20[%c0_85, %c0_86, %c0_87] : memref<3x4x128xbf16, #tpu.memory_space<vmem>>, vector<1x4x128xbf16>
    %180 = vector.shape_cast %179 : vector<1x4x128xbf16> to vector<4x128xbf16>
    %181 = vector.shape_cast %178 : vector<4x128xbf16> to vector<1x4x128xbf16>
    tpu.vector_store %arg20[%c0_85, %c0_86, %c0_87], %181 {strides = array<i32>} : memref<3x4x128xbf16, #tpu.memory_space<vmem>>, vector<1x4x128xbf16>,
    %182 = arith.truncf %175 : vector<4x128xf32> to vector<4x128xbf16>
    %c1_88 = arith.constant 1 : index
    %c0_89 = arith.constant 0 : index
    %c0_90 = arith.constant 0 : index
    %183 = vector.load %arg20[%c1_88, %c0_89, %c0_90] : memref<3x4x128xbf16, #tpu.memory_space<vmem>>, vector<1x4x128xbf16>
    %184 = vector.shape_cast %183 : vector<1x4x128xbf16> to vector<4x128xbf16>
    %185 = vector.shape_cast %182 : vector<4x128xbf16> to vector<1x4x128xbf16>
    tpu.vector_store %arg20[%c1_88, %c0_89, %c0_90], %185 {strides = array<i32>} : memref<3x4x128xbf16, #tpu.memory_space<vmem>>, vector<1x4x128xbf16>,
    %186 = arith.truncf %177 : vector<4x128xf32> to vector<4x128xbf16>
    %c2_91 = arith.constant 2 : index
    %c0_92 = arith.constant 0 : index
    %c0_93 = arith.constant 0 : index
    %187 = vector.load %arg20[%c2_91, %c0_92, %c0_93] : memref<3x4x128xbf16, #tpu.memory_space<vmem>>, vector<1x4x128xbf16>
    %188 = vector.shape_cast %187 : vector<1x4x128xbf16> to vector<4x128xbf16>
    %189 = vector.shape_cast %186 : vector<4x128xbf16> to vector<1x4x128xbf16>
    tpu.vector_store %arg20[%c2_91, %c0_92, %c0_93], %189 {strides = array<i32>} : memref<3x4x128xbf16, #tpu.memory_space<vmem>>, vector<1x4x128xbf16>,
    return
  }
  func.func @transform_0(%arg0: i32) -> (i32, i32) {
    %c0_i32 = arith.constant 0 : i32
    %c0_i32_0 = arith.constant 0 : i32
    return %c0_i32, %arg0 : i32, i32
  }
  func.func @transform_1(%arg0: i32) -> (i32, i32, i32) {
    %c0_i32 = arith.constant 0 : i32
    %c0_i32_0 = arith.constant 0 : i32
    %c0_i32_1 = arith.constant 0 : i32
    return %c0_i32, %c0_i32_0, %arg0 : i32, i32, i32
  }
  func.func @transform_2(%arg0: i32) -> (i32, i32) {
    %c0_i32 = arith.constant 0 : i32
    %c0_i32_0 = arith.constant 0 : i32
    return %c0_i32, %arg0 : i32, i32
  }
  func.func @transform_3(%arg0: i32) -> (i32, i32, i32) {
    %c0_i32 = arith.constant 0 : i32
    %c0_i32_0 = arith.constant 0 : i32
    %c0_i32_1 = arith.constant 0 : i32
    return %c0_i32, %c0_i32_0, %arg0 : i32, i32, i32
  }
  func.func @transform_4(%arg0: i32) -> (i32, i32) {
    %c0_i32 = arith.constant 0 : i32
    %c0_i32_0 = arith.constant 0 : i32
    %c0_i32_1 = arith.constant 0 : i32
    return %c0_i32, %c0_i32_0 : i32, i32
  }
  func.func @transform_5(%arg0: i32) -> (i32, i32) {
    %c0_i32 = arith.constant 0 : i32
    %c0_i32_0 = arith.constant 0 : i32
    %c0_i32_1 = arith.constant 0 : i32
    return %c0_i32, %c0_i32_0 : i32, i32
  }
  func.func @transform_6(%arg0: i32) -> (i32, i32) {
    %c0_i32 = arith.constant 0 : i32
    %c0_i32_0 = arith.constant 0 : i32
    %c0_i32_1 = arith.constant 0 : i32
    return %c0_i32, %c0_i32_0 : i32, i32
  }
  func.func @transform_7(%arg0: i32) -> (i32, i32) {
    %c0_i32 = arith.constant 0 : i32
    %c0_i32_0 = arith.constant 0 : i32
    %c0_i32_1 = arith.constant 0 : i32
    return %c0_i32, %c0_i32_0 : i32, i32
  }
  func.func @transform_8(%arg0: i32) -> (i32, i32) {
    %c0_i32 = arith.constant 0 : i32
    %c0_i32_0 = arith.constant 0 : i32
    %c0_i32_1 = arith.constant 0 : i32
    return %c0_i32, %c0_i32_0 : i32, i32
  }
  func.func @transform_9(%arg0: i32) -> (i32, i32) {
    %c0_i32 = arith.constant 0 : i32
    %c0_i32_0 = arith.constant 0 : i32
    %c0_i32_1 = arith.constant 0 : i32
    return %c0_i32, %c0_i32_0 : i32, i32
  }
  func.func @transform_10(%arg0: i32) -> (i32, i32) {
    %c0_i32 = arith.constant 0 : i32
    %c0_i32_0 = arith.constant 0 : i32
    %c0_i32_1 = arith.constant 0 : i32
    return %c0_i32, %c0_i32_0 : i32, i32
  }
  func.func @transform_11(%arg0: i32) -> (i32, i32) {
    %c0_i32 = arith.constant 0 : i32
    %c0_i32_0 = arith.constant 0 : i32
    %c0_i32_1 = arith.constant 0 : i32
    return %c0_i32, %c0_i32_0 : i32, i32
  }
  func.func @transform_12(%arg0: i32) -> (i32, i32) {
    %c0_i32 = arith.constant 0 : i32
    %c0_i32_0 = arith.constant 0 : i32
    %c0_i32_1 = arith.constant 0 : i32
    return %c0_i32, %c0_i32_0 : i32, i32
  }
  func.func @transform_13(%arg0: i32) -> (i32, i32) {
    %c0_i32 = arith.constant 0 : i32
    %c0_i32_0 = arith.constant 0 : i32
    %c0_i32_1 = arith.constant 0 : i32
    return %c0_i32, %c0_i32_0 : i32, i32
  }
  func.func @transform_14(%arg0: i32) -> (i32, i32) {
    %c0_i32 = arith.constant 0 : i32
    %c0_i32_0 = arith.constant 0 : i32
    %c0_i32_1 = arith.constant 0 : i32
    return %c0_i32, %c0_i32_0 : i32, i32
  }
  func.func @transform_15(%arg0: i32) -> (i32, i32) {
    %c0_i32 = arith.constant 0 : i32
    %c0_i32_0 = arith.constant 0 : i32
    %c0_i32_1 = arith.constant 0 : i32
    return %c0_i32, %c0_i32_0 : i32, i32
  }
  func.func @transform_16(%arg0: i32) -> (i32, i32) {
    %c0_i32 = arith.constant 0 : i32
    %c0_i32_0 = arith.constant 0 : i32
    %c0_i32_1 = arith.constant 0 : i32
    return %c0_i32, %c0_i32_0 : i32, i32
  }
  func.func @transform_17(%arg0: i32) -> (i32, i32) {
    %c0_i32 = arith.constant 0 : i32
    %c0_i32_0 = arith.constant 0 : i32
    %c0_i32_1 = arith.constant 0 : i32
    return %c0_i32, %c0_i32_0 : i32, i32
  }
  func.func @transform_18(%arg0: i32) -> (i32, i32) {
    %c0_i32 = arith.constant 0 : i32
    %c0_i32_0 = arith.constant 0 : i32
    return %c0_i32, %arg0 : i32, i32
  }
  func.func @transform_19(%arg0: i32) -> (i32, i32, i32) {
    %c0_i32 = arith.constant 0 : i32
    %c0_i32_0 = arith.constant 0 : i32
    %c0_i32_1 = arith.constant 0 : i32
    return %c0_i32, %c0_i32_0, %arg0 : i32, i32, i32
  }
}

</mosaic_0001>

<bundles_post_ra>
// kernel: gvp_conv_layer.2
= control target key start
LH: loop header
LB: loop body
LE: loop exit
PB: predicated region body
PF: predicated region fallthrough
CT: control target
= control target key end

     0   :  { %s6133_s0 = inlined_call_operand.vmem [shape: bf16[16,768], index: 0, kind: input, shape index: {}]   ;;  %s6134_s1 = inlined_call_operand.vmem [shape: bf16[8,768], index: 1, kind: input, shape index: {}]   ;;  %s6135_s2 = inlined_call_operand.vmem [shape: bf16[16,768], index: 2, kind: input, shape index: {}]   ;;  %s6136_s3 = inlined_call_operand.vmem [shape: bf16[3,4,768], index: 3, kind: input, shape index: {}]   ;;  %s6137_s4 = inlined_call_operand.vmem [shape: bf16[3,2,768], index: 4, kind: input, shape index: {}]   ;;  %s6138_s5 = inlined_call_operand.vmem [shape: bf16[3,4,768], index: 5, kind: input, shape index: {}]   ;;  %s6139_s6 = inlined_call_operand.vmem [shape: f32[10,4], index: 6, kind: input, shape index: {}]   ;;  %s6140_s7 = inlined_call_operand.vmem [shape: f32[10,2], index: 7, kind: input, shape index: {}]   ;;  %s6141_s8 = inlined_call_operand.vmem [shape: f32[10,4], index: 8, kind: input, shape index: {}]   ;;  %s6142_s9 = inlined_call_operand.vmem [shape: f32[16,16], index: 9, kind: input, shape index: {}]   ;;  %s6143_s10 = inlined_call_operand.vmem [shape: f32[16,8], index: 10, kind: input, shape index: {}]   ;;  %s6144_s11 = inlined_call_operand.vmem [shape: f32[16,16], index: 11, kind: input, shape index: {}]   ;;  %s6145_s12 = inlined_call_operand.vmem [shape: f32[16,10], index: 12, kind: input, shape index: {}]   ;;  %s6146_s13 = inlined_call_operand.vmem [shape: f32[16,1], index: 13, kind: input, shape index: {}]   ;;  %s6147_s14 = inlined_call_operand.vmem [shape: f32[4,10], index: 14, kind: input, shape index: {}]   ;;  %s6148_s15 = inlined_call_operand.vmem [shape: f32[4,4], index: 15, kind: input, shape index: {}]   ;;  %s6149_s16 = inlined_call_operand.vmem [shape: f32[16,16], index: 16, kind: input, shape index: {}]   ;;  %s6150_s17 = inlined_call_operand.vmem [shape: f32[16,4], index: 17, kind: input, shape index: {}]   ;;  %s6151_s18 = inlined_call_operand.vmem [shape: f32[16,1], index: 18, kind: input, shape index: {}]   ;;  %s6152_s19 = inlined_call_operand.vmem [shape: f32[4,4], index: 19, kind: input, shape index: {}]   ;;  %s6153_s20 = inlined_call_operand.vmem [shape: f32[4,4], index: 20, kind: input, shape index: {}]   ;;  %s6154_s21 = inlined_call_operand.vmem [shape: f32[16,16], index: 21, kind: input, shape index: {}]   ;;  %s6155_s22 = inlined_call_operand.vmem [shape: f32[16,4], index: 22, kind: input, shape index: {}]   ;;  %s6156_s23 = inlined_call_operand.vmem [shape: f32[16,1], index: 23, kind: input, shape index: {}]   ;;  %s6157_s24 = inlined_call_operand.vmem [shape: f32[4,4], index: 24, kind: input, shape index: {}]   ;;  %s6158_s25 = inlined_call_operand.vmem [shape: bf16[16,768], index: 25, kind: output, shape index: {0}]   ;;  %s6159_s26 = inlined_call_operand.vmem [shape: bf16[3,4,768], index: 26, kind: output, shape index: {1}]  }
   0x1   :  { %6168 = sst [smem:[#allocation12_spill]] %s6133_s0 }
   0x2   :  { %6169 = sst [smem:[#allocation13_spill]] %s6134_s1 }
   0x3   :  { %6170 = sst [smem:[#allocation14_spill]] %s6135_s2 }
   0x4   :  { %6171 = sst [smem:[#allocation15_spill]] %s6136_s3 }
   0x5   :  { %6172 = sst [smem:[#allocation16_spill]] %s6137_s4 }
   0x6   :  { %6173 = sst [smem:[#allocation17_spill]] %s6138_s5 }
   0x7   :  { %6174 = sst [smem:[#allocation18_spill]] %s6139_s6 }
   0x8   :  { %6175 = sst [smem:[#allocation19_spill]] %s6140_s7 }
   0x9   :  { %6176 = sst [smem:[#allocation20_spill]] %s6141_s8 }
   0xa   :  { %6177 = sst [smem:[#allocation21_spill]] %s6142_s9 }
   0xb   :  { %6178 = sst [smem:[#allocation22_spill]] %s6143_s10 }
   0xc   :  { %6179 = sst [smem:[#allocation23_spill]] %s6158_s25 }
   0xd   :  { %6180 = sst [smem:[#allocation24_spill]] %s6159_s26 }
   0xe   :  { %s5074_s27 = smov 0   ;;  %s5076_s3 = smov 0  }
   0xf   :  { %s5078_s7 = smov 0  }
  0x10 LB: > { %s5090_s28 = sadd.s32 4294967295, %s4936_s7   ;;  %s5093_s8 = sadd.s32 1, %s4936_s7   ;;  %s4936_s7 = sphi %s5078_s7, %s6201_s7   ;;  %s4932_s3 = sphi %s5076_s3, %s6204_s3   ;;  %s4928_s27 = sphi %s5074_s27, %s6203_s27  }
  0x11   : > { %6181 = sst [smem:[#allocation9_spill]] %s5093_s8  ;;  %s41_s4 = ssub.s32 %s4936_s7, %s5093_s8 }
  0x12   : > { %s44_s29 = sadd.s32 1, %s4932_s3  ;;  %p42_p0 = scmp.eq.s32.totalorder %s41_s4, 0 }
  0x13   : > { %p51_p1 = scmp.ne.s32.totalorder %s4932_s3, %s4928_s27  ;;  %p52_p2 = scmp.eq.s32.totalorder %s4936_s7, 0 }
  0x14   : > { %p610_p3 = scmp.eq.s32.totalorder %s5090_s28, 1  ;;  %p4547_p6 = scmp.ge.s32.totalorder %s4936_s7, 2 }
  0x15   : > { %s5103_s0 = scalar_select %p42_p0, %s4932_s3, %s44_s29  }
  0x16   : > { %p5105_p4 = por %p52_p2, %p51_p1  ;;  %p5109_p5 = por %p610_p3, %p51_p1 }
  0x17   : > { %6182 = sst [smem:[#allocation10_spill]] %s5103_s0  ;;  %715 = sbr.rel (%p4547_p6) target bundleno = 90 (0x5a), region = 92 }
  0x18   : > { %s6184_s30 = scalar_select %p5109_p5, 1, 0 }
  0x1a   : > { %6185 = sst [smem:[#allocation11_spill]] %s6184_s30 }
  0x1c   : > { %718 = sbr.rel (!%p5105_p4) target bundleno = 41 (0x29), region = 96  ;;  %s720_s2 = sand.u32 (%p5105_p4), 1, %s4932_s3  }
  0x1d   : > { %s4812_s5 = smul.u32 (%p5105_p4), 12, %s4936_s7  ;;  %s6186_s4 = sld [smem:[#allocation12_spill]] (%p5105_p4) }
  0x1e   : > { %s4818_s10 = smul.u32 (%p5105_p4), 24, %s720_s2 }
  0x20   : > { %s722_s0 = scalar_lea.vmem (%p5105_p4), [#allocation2], %s4818_s10 }
  0x23   : > { %s725_s29 = scalar_lea.vmem %s6186_s4, %s4812_s5 }
  0x24   : > { %v740_v0 = vld [vmem:[%s725_s29] sm:$0xff]  ;;  %v742_v1 = vld [vmem:[%s725_s29 + $0x18] sm:$0xff]  ;;  %v4549_v2 = vld [vmem:[%s725_s29 + $0x8] sm:$0xf] }
  0x25   : > { %741 = vst [vmem:[%s722_s0] sm:$0xff] %v740_v0  ;;  %v4551_v3 = vld [vmem:[%s725_s29 + $0x20] sm:$0xf] }
  0x26   : > { %743 = vst [vmem:[%s722_s0 + $0xc] sm:$0xff] %v742_v1 }
  0x27   : > { %4550 = vst [vmem:[%s722_s0 + $0x8] sm:$0xf] %v4549_v2 }
  0x28   : > { %4552 = vst [vmem:[%s722_s0 + $0x14] sm:$0xf] %v4551_v3 }
  0x29 PF: > { %770 = sbr.rel (!%p5105_p4) target bundleno = 54 (0x36), region = 126  ;;  %s772_s2 = sand.u32 (%p5105_p4), 1, %s4932_s3  }
  0x2a   : > { %s4813_s8 = smul.u32 (%p5105_p4), 12, %s4936_s7  ;;  %s6187_s1 = sld [smem:[#allocation14_spill]] (%p5105_p4) }
  0x2b   : > { %s4819_s26 = smul.u32 (%p5105_p4), 24, %s772_s2 }
  0x2d   : > { %s774_s10 = scalar_lea.vmem (%p5105_p4), [#allocation3], %s4819_s26 }
  0x30   : > { %s777_s4 = scalar_lea.vmem %s6187_s1, %s4813_s8 }
  0x31   : > { %v792_v4 = vld [vmem:[%s777_s4] sm:$0xff]  ;;  %v794_v5 = vld [vmem:[%s777_s4 + $0x18] sm:$0xff]  ;;  %v4554_v6 = vld [vmem:[%s777_s4 + $0x8] sm:$0xf] }
  0x32   : > { %793 = vst [vmem:[%s774_s10] sm:$0xff] %v792_v4  ;;  %v4556_v7 = vld [vmem:[%s777_s4 + $0x20] sm:$0xf] }
  0x33   : > { %795 = vst [vmem:[%s774_s10 + $0xc] sm:$0xff] %v794_v5 }
  0x34   : > { %4555 = vst [vmem:[%s774_s10 + $0x8] sm:$0xf] %v4554_v6 }
  0x35   : > { %4557 = vst [vmem:[%s774_s10 + $0x14] sm:$0xf] %v4556_v7 }
  0x36 PF: > { %813 = sbr.rel (!%p5105_p4) target bundleno = 66 (0x42), region = 152  ;;  %s815_s0 = sand.u32 (%p5105_p4), 1, %s4932_s3  }
  0x37   : > { %s4814_s29 = smul.u32 (%p5105_p4), 6, %s4936_s7  ;;  %s6188_s5 = sld [smem:[#allocation15_spill]] (%p5105_p4) }
  0x38   : > { %s4820_s2 = smul.u32 (%p5105_p4), 18, %s815_s0 }
  0x3a   : > { %s817_s26 = scalar_lea.vmem (%p5105_p4), [#allocation4], %s4820_s2 }
  0x3d   : > { %s820_s1 = scalar_lea.vmem %s6188_s5, %s4814_s29 }
  0x3e   : > { %v837_v8 = vld [vmem:[%s820_s1] sm:$0x3f]  ;;  %v839_v9 = vld [vmem:[%s820_s1 + $0xc] sm:$0x3f]  ;;  %v841_v10 = vld [vmem:[%s820_s1 + $0x18] sm:$0x3f] }
  0x3f   : > { %838 = vst [vmem:[%s817_s26] sm:$0x3f] %v837_v8 }
  0x40   : > { %840 = vst [vmem:[%s817_s26 + $0x6] sm:$0x3f] %v839_v9 }
  0x41   : > { %842 = vst [vmem:[%s817_s26 + $0xc] sm:$0x3f] %v841_v10 }
  0x42 PF: > { %872 = sbr.rel (!%p5105_p4) target bundleno = 78 (0x4e), region = 193  ;;  %s874_s4 = sand.u32 (%p5105_p4), 1, %s4932_s3  }
  0x43   : > { %s877_s10 = smul.u32 (%p5105_p4), 3, %s4936_s7  ;;  %s6189_s6 = sld [smem:[#allocation16_spill]] (%p5105_p4) }
  0x44   : > { %s4821_s0 = smul.u32 (%p5105_p4), 9, %s874_s4 }
  0x46   : > { %s876_s2 = scalar_lea.vmem (%p5105_p4), [#allocation5], %s4821_s0 }
  0x49   : > { %s878_s29 = scalar_lea.vmem %s6189_s6, %s877_s10 }
  0x4a   : > { %v895_v11 = vld [vmem:[%s878_s29] sm:$0x7]  ;;  %v897_v12 = vld [vmem:[%s878_s29 + $0x6] sm:$0x7]  ;;  %v899_v13 = vld [vmem:[%s878_s29 + $0xc] sm:$0x7] }
  0x4b   : > { %896 = vst [vmem:[%s876_s2] sm:$0x7] %v895_v11 }
  0x4c   : > { %898 = vst [vmem:[%s876_s2 + $0x3] sm:$0x7] %v897_v12 }
  0x4d   : > { %900 = vst [vmem:[%s876_s2 + $0x6] sm:$0x7] %v899_v13 }
  0x4e PF: > { %930 = sbr.rel (!%p5105_p4) target bundleno = 90 (0x5a), region = 234  ;;  %s932_s8 = sand.u32 (%p5105_p4), 1, %s4932_s3  }
  0x4f   : > { %s4815_s5 = smul.u32 (%p5105_p4), 6, %s4936_s7  ;;  %s6190_s25 = sld [smem:[#allocation17_spill]] (%p5105_p4) }
  0x50   : > { %s4822_s1 = smul.u32 (%p5105_p4), 18, %s932_s8 }
  0x52   : > { %s934_s10 = scalar_lea.vmem (%p5105_p4), [#allocation6], %s4822_s1 }
  0x55   : > { %s937_s30 = scalar_lea.vmem %s6190_s25, %s4815_s5 }
  0x56   : > { %v954_v14 = vld [vmem:[%s937_s30] sm:$0x3f]  ;;  %v956_v15 = vld [vmem:[%s937_s30 + $0xc] sm:$0x3f]  ;;  %v958_v16 = vld [vmem:[%s937_s30 + $0x18] sm:$0x3f] }
  0x57   : > { %955 = vst [vmem:[%s934_s10] sm:$0x3f] %v954_v14 }
  0x58   : > { %957 = vst [vmem:[%s934_s10 + $0x6] sm:$0x3f] %v956_v15 }
  0x59   : > { %959 = vst [vmem:[%s934_s10 + $0xc] sm:$0x3f] %v958_v16 }
  0x5a PF: > { %p4560_p7 = scmp.ge.s32.totalorder %s4936_s7, 1  ;;  %p988_p8 = scmp.lt.s32.totalorder %s4936_s7, 3 }
  0x5c   : > { %p989_p9 = pnand %p4560_p7, %p988_p8 }
  0x5d   : > { %s5152_s9 = sand.u32 (!%p989_p9), 1, %s4928_s27   ;;  %s6191_s8 = sld [smem:[#allocation19_spill]] (!%p989_p9) }
  0x5e   : > { %992 = sbr.rel (%p989_p9) target bundleno = 1340 (0x53c), region = 275  ;;  %s6192_s30 = sld [smem:[#allocation18_spill]] (!%p989_p9) }
  0x5f   : > { %s4825_s0 = smul.u32 (!%p989_p9), 9, %s5152_s9  ;;  %s6193_s1 = sld [smem:[#allocation20_spill]] (!%p989_p9) }
  0x60   : > { %s5156_s6 = smul.u32 (!%p989_p9), 18, %s5152_s9  ;;  %s6194_s10 = sld [smem:[#allocation13_spill]] (!%p989_p9) }
  0x61   : > { %s5158_s29 = scalar_lea.vmem (!%p989_p9), [#allocation5], %s4825_s0  ;;  %s6195_s26 = sld [smem:[#allocation22_spill]] (!%p989_p9) }
  0x62   : > { %s5162_s2 = scalar_lea.vmem (!%p989_p9), [#allocation4], %s5156_s6  ;;  %s5176_s5 = scalar_lea.vmem (!%p989_p9), [#allocation6], %s5156_s6 }
  0x63   : > { %v1165_v17 = vld [vmem:[%s5158_s29] sm:$0x7]  ;;  %vm1213_vm0 = vcmask 1041408   ;;  %v5168_v22 = vld [vmem:[%s6191_s8] sm:$0xff]  ;;  %vm1206_vm1 = vcmask 15360   ;;  %vm1304_vm2 = vcmask 1043456  }
  0x64   : > { %v1166_v18 = vunpack.c.l.bf16 %v1165_v17  ;;  %v1154_v19 = vld [vmem:[%s5162_s2] sm:$0x3f]  ;;  %v1173_v26 = vld [vmem:[%s5176_s5] sm:$0x3f]  ;;  %vm1297_vm3 = vcmask 31744   ;;  %vm2087_vm4 = vcmask 64512  }
  0x65   : > { %v1155_v20 = vunpack.c.l.bf16 %v1154_v19  ;;  %v1156_v21 = vunpack.c.h.bf16 %v1154_v19  ;;  %v1174_v27 = vunpack.c.l.bf16 %v1173_v26  ;;  %v1175_v28 = vunpack.c.h.bf16 %v1173_v26  ;;  %v5186_v29 = vld [vmem:[%s6191_s8 + $0x8] sm:$0x3]  ;;  %v5191_v30 = vld [vmem:[%s6192_s30] sm:$0xff]  ;;  %v4564_v34 = vld [vmem:[%s5158_s29 + $0x3] sm:$0x7]  ;;  %s5358_s4 = smul.u32 24, %s5152_s9 }
  0x66   : > { %1202 = vst [vmem:[#allocation1] ss:$4 sm:$0xff] %v1166_v18  ;;  %v1169_v35 = vunpack.c.l.bf16 %v4564_v34  ;;  %v5208_v36 = vld [vmem:[%s6192_s30 + $0x8] sm:$0x3]  ;;  %v5213_v37 = vld [vmem:[%s6193_s1] sm:$0xff]  ;;  %vm2163_vm5 = vcmask 130048  }
  0x67   : > { %v4562_v41 = vld [vmem:[%s5162_s2 + $0x6] sm:$0x3f]  ;;  %v5230_v44 = vld [vmem:[%s6193_s1 + $0x8] sm:$0x3]  ;;  %s5386_s27 = scalar_lea.vmem [#allocation3], %s5358_s4  ;;  %vm2320_vm6 = vcmask 80896  }
  0x68   : > { %v1159_v42 = vunpack.c.l.bf16 %v4562_v41  ;;  %v1160_v43 = vunpack.c.h.bf16 %v4562_v41  ;;  %v4566_v48 = vld [vmem:[%s5176_s5 + $0x6] sm:$0x3f]  ;;  %v4563_v59 = vld [vmem:[%s5162_s2 + $0xc] sm:$0x3f]  ;;  %v4567_v1 = vld [vmem:[%s5176_s5 + $0xc] sm:$0x3f] }
  0x69   : > { %v1178_v49 = vunpack.c.l.bf16 %v4566_v48  ;;  %v1179_v50 = vunpack.c.h.bf16 %v4566_v48  ;;  %v4565_v54 = vld [vmem:[%s5158_s29 + $0x6] sm:$0x7]  ;;  %v1163_v60 = vunpack.c.l.bf16 %v4563_v59  ;;  %v1164_v61 = vunpack.c.h.bf16 %v4563_v59  ;;  %s1117_s29 = smul.u32 3, %s5090_s28  ;;  %v5347_v12 = vld [vmem:[%s6195_s26] sm:$0xff]  ;;  %v5363_v13 = vld [vmem:[%s6195_s26 + $0x8] sm:$0xff]  ;;  %s5368_s5 = scalar_lea.vmem [#allocation2], %s5358_s4 }
  0x6a   : > { %v1172_v55 = vunpack.c.l.bf16 %v4565_v54  ;;  %v1182_v2 = vunpack.c.l.bf16 %v4567_v1  ;;  %v1183_v3 = vunpack.c.h.bf16 %v4567_v1  ;;  %v5371_v14 = vld [vmem:[%s5368_s5 + $0xc] sm:$0xff]  ;;  %v5375_v16 = vld [vmem:[%s5368_s5] sm:$0xff]  ;;  %s6198_s25 = sld [smem:[#allocation23_spill]] (%p5109_p5) }
  0x6b   : > { %p1118_p10 = scmp.lt.s32.totalorder %s1117_s29, 5  ;;  %v1137_v15 = vunpack.c.h.bf16 %v5371_v14  ;;  %v1134_v17 = vunpack.c.h.bf16 %v5375_v16  ;;  %v1147_v19 = vld [vmem:[%s5386_s27 + $0x14] sm:$0xf]  ;;  %v1133_v1 = vunpack.c.l.bf16 %v5375_v16 }
  0x6d   : > { %v1203_v23 = vld.sshfl [vmem:[#allocation1] sm:$0xff pattern:$0x73625140]  ;;  %v1204_v24 = vld.sshfl [vmem:[#allocation1 + $0x8] sm:$0xff pattern:$0x73625140] }
  0x6e   : > { %4568 = vmatpush.msk.msra.mxu0 %vm1213_vm0, %v1203_v23  ;;  %4571 = vmatpush.msk.msra.mxu1 %vm1213_vm0, %v1204_v24  ;;  %1291 = vst [vmem:[#allocation1] ss:$2 sm:$0xff] %v1155_v20  ;;  %v1205_v25 = vld.sshfl [vmem:[#allocation1 + $0x10] sm:$0xff pattern:$0x73625140]  ;;  %s6206_s29 = smov (!%p1118_p10, %s1117_s29), 5  ;;  %v1153_v20 = vunpack.c.l.bf16 %v1147_v19 }
  0x6f   : > { %4574 = vmatpush.msk.msra.mxu2 %vm1213_vm0, %v1205_v25  ;;  %4569 = vmatmul.msk.f32.vlgmr.msra.gmra.mxu0 %vm1206_vm1, %v5168_v22  ;;  %1293 = vst [vmem:[#allocation1 + $0x10] ss:$2 sm:$0xff] %v1156_v21  ;;  %s4561_s2 = sshll.u32 %s6206_s29, 2  ;;  %v1145_v21 = vld [vmem:[%s5386_s27 + $0x8] sm:$0xf]  ;;  %v1144_v19 = vld [vmem:[%s5386_s27] sm:$0xff] }
  0x70   : > { %4572 = vmatmul.msk.f32.vlgmr.msra.gmra.mxu1 %vm1206_vm1, %v5168_v22  ;;  %4575 = vmatmul.msk.f32.vlgmr.msra.gmra.mxu2 %vm1206_vm1, %v5168_v22  ;;  %s5334_s0 = scalar_lea.vmem %s6194_s10, %s4561_s2  ;;  %s6196_s10 = sld [smem:[#allocation21_spill]] }
  0x71   : > { %v5341_v10 = vld [vmem:[%s5334_s0] sm:$0xff] }
  0x72   : > { %v1141_v11 = vunpack.c.l.bf16 %v5341_v10 }
  0x75   : > { %v1294_v31 = vld.sshfl [vmem:[#allocation1] sm:$0xff pattern:$0x75316420]  ;;  %v1295_v32 = vld.sshfl [vmem:[#allocation1 + $0x8] sm:$0xff pattern:$0x75316420] }
  0x76   : > { %4577 = vmatpush.msk.msra.mxu3 %vm1304_vm2, %v1294_v31  ;;  %4580 = vmatpush.msk.msrb.mxu0 %vm1304_vm2, %v1295_v32  ;;  %1382 = vst [vmem:[#allocation1] ss:$2 sm:$0xff] %v1174_v27  ;;  %v1296_v33 = vld.sshfl [vmem:[#allocation1 + $0x10] sm:$0xff pattern:$0x75316420]  ;;  %v5381_v18 = vld [vmem:[%s6196_s10] sm:$0xff] }
  0x77   : > { %4570 = vmatmul.msk.f32.gmra.mxu0 %vm1206_vm1, %v5186_v29  ;;  %4578 = vmatmul.msk.f32.vlgmr.msra.gmra.mxu3 %vm1297_vm3, %v5191_v30  ;;  %1384 = vst [vmem:[#allocation1 + $0x10] ss:$2 sm:$0xff] %v1175_v28  ;;  %v5393_v25 = vld [vmem:[%s6196_s10 + $0x8] sm:$0xff] }
  0x78   : > { %4573 = vmatmul.msk.f32.gmra.mxu1 %vm1206_vm1, %v5186_v29  ;;  %4576 = vmatmul.msk.f32.gmra.mxu2 %vm1206_vm1, %v5186_v29 }
  0x79   : > { %4583 = vmatpush.msk.msrb.mxu1 %vm1304_vm2, %v1296_v33 }
  0x7d   : > { %v1385_v38 = vld.sshfl [vmem:[#allocation1] sm:$0xff pattern:$0x75316420]  ;;  %v1386_v39 = vld.sshfl [vmem:[#allocation1 + $0x8] sm:$0xff pattern:$0x75316420] }
  0x7e   : > { %4586 = vmatpush.msk.msrb.mxu2 %vm1304_vm2, %v1385_v38  ;;  %4589 = vmatpush.msk.msrb.mxu3 %vm1304_vm2, %v1386_v39  ;;  %v1387_v40 = vld.sshfl [vmem:[#allocation1 + $0x10] sm:$0xff pattern:$0x75316420] }
  0x7f   : > { %4579 = vmatmul.msk.f32.gmra.mxu3 %vm1297_vm3, %v5208_v36  ;;  %4581 = vmatmul.msk.f32.vlgmr.msrb.gmra.mxu0 %vm1297_vm3, %v5191_v30  ;;  %1476 = vst [vmem:[#allocation1] ss:$4 sm:$0xff] %v1169_v35 }
  0x80   : > { %4584 = vmatmul.msk.f32.vlgmr.msrb.gmra.mxu1 %vm1297_vm3, %v5191_v30  ;;  %4587 = vmatmul.msk.f32.vlgmr.msrb.gmra.mxu2 %vm1297_vm3, %v5213_v37 }
  0x81   : > { %4592 = vmatpush.msk.msra.mxu0 %vm1304_vm2, %v1387_v40 }
  0x86   : > { %v1477_v45 = vld.sshfl [vmem:[#allocation1] sm:$0xff pattern:$0x73625140]  ;;  %v1478_v46 = vld.sshfl [vmem:[#allocation1 + $0x8] sm:$0xff pattern:$0x73625140] }
  0x87   : > { %4582 = vmatmul.msk.f32.gmra.mxu0 %vm1297_vm3, %v5208_v36  ;;  %4590 = vmatmul.msk.f32.vlgmr.msrb.gmra.mxu3 %vm1297_vm3, %v5213_v37  ;;  %v1479_v47 = vld.sshfl [vmem:[#allocation1 + $0x10] sm:$0xff pattern:$0x73625140]  ;;  %1557 = vst [vmem:[#allocation1] ss:$2 sm:$0xff] %v1159_v42 }
  0x88   : > { %4585 = vmatmul.msk.f32.gmra.mxu1 %vm1297_vm3, %v5208_v36  ;;  %4588 = vmatmul.msk.f32.gmra.mxu2 %vm1297_vm3, %v5230_v44  ;;  %1559 = vst [vmem:[#allocation1 + $0x10] ss:$2 sm:$0xff] %v1160_v43 }
  0x89   : > { %4595 = vmatpush.msk.msra.mxu1 %vm1213_vm0, %v1477_v45  ;;  %4598 = vmatpush.msk.msra.mxu2 %vm1213_vm0, %v1478_v46  ;;  %v5425_v46 = vld [vmem:[%s6144_s11 + $0x8] sm:$0xff] }
  0x8a   : > { %4601 = vmatpush.msk.msra.mxu3 %vm1213_vm0, %v1479_v47 }
  0x8e   : > { %v1560_v51 = vld.sshfl [vmem:[#allocation1] sm:$0xff pattern:$0x75316420]  ;;  %v1561_v52 = vld.sshfl [vmem:[#allocation1 + $0x8] sm:$0xff pattern:$0x75316420] }
  0x8f   : > { %4591 = vmatmul.msk.f32.gmra.mxu3 %vm1297_vm3, %v5230_v44  ;;  %4593 = vmatmul.msk.f32.vlgmr.msra.gmra.mxu0 %vm1297_vm3, %v5213_v37  ;;  %v1562_v53 = vld.sshfl [vmem:[#allocation1 + $0x10] sm:$0xff pattern:$0x75316420]  ;;  %1640 = vst [vmem:[#allocation1] ss:$2 sm:$0xff] %v1178_v49 }
  0x90   : > { %4596 = vmatmul.msk.f32.vlgmr.msra.gmra.mxu1 %vm1206_vm1, %v5168_v22  ;;  %4599 = vmatmul.msk.f32.vlgmr.msra.gmra.mxu2 %vm1206_vm1, %v5168_v22  ;;  %1642 = vst [vmem:[#allocation1 + $0x10] ss:$2 sm:$0xff] %v1179_v50 }
  0x91   : > { %4604 = vmatpush.msk.msrb.mxu0 %vm1304_vm2, %v1560_v51  ;;  %4607 = vmatpush.msk.msrb.mxu1 %vm1304_vm2, %v1561_v52 }
  0x92   : > { %4610 = vmatpush.msk.msrb.mxu2 %vm1304_vm2, %v1562_v53 }
  0x96   : > { %v1643_v56 = vld.sshfl [vmem:[#allocation1] sm:$0xff pattern:$0x75316420]  ;;  %v1644_v57 = vld.sshfl [vmem:[#allocation1 + $0x8] sm:$0xff pattern:$0x75316420] }
  0x97   : > { %4594 = vmatmul.msk.f32.gmra.mxu0 %vm1297_vm3, %v5230_v44  ;;  %4602 = vmatmul.msk.f32.vlgmr.msra.gmra.mxu3 %vm1206_vm1, %v5168_v22  ;;  %v1645_v58 = vld.sshfl [vmem:[#allocation1 + $0x10] sm:$0xff pattern:$0x75316420] }
  0x98   : > { %4597 = vmatmul.msk.f32.gmra.mxu1 %vm1206_vm1, %v5186_v29  ;;  %4600 = vmatmul.msk.f32.gmra.mxu2 %vm1206_vm1, %v5186_v29  ;;  %1728 = vst [vmem:[#allocation1] ss:$4 sm:$0xff] %v1172_v55  ;;  %v5446_v55 = vld [vmem:[%s6147_s14] sm:$0xf] }
  0x99   : > { %4613 = vmatpush.msk.msrb.mxu3 %vm1304_vm2, %v1643_v56  ;;  %4616 = vmatpush.msk.msra.mxu0 %vm1304_vm2, %v1644_v57 }
  0x9a   : > { %4619 = vmatpush.msk.msra.mxu1 %vm1304_vm2, %v1645_v58 }
  0x9f   : > { %4603 = vmatmul.msk.f32.gmra.mxu3 %vm1206_vm1, %v5186_v29  ;;  %4605 = vmatmul.msk.f32.vlgmr.msrb.gmra.mxu0 %vm1297_vm3, %v5191_v30  ;;  %v1729_v62 = vld.sshfl [vmem:[#allocation1] sm:$0xff pattern:$0x73625140]  ;;  %v1730_v63 = vld.sshfl [vmem:[#allocation1 + $0x8] sm:$0xff pattern:$0x73625140] }
  0xa0   : > { %4608 = vmatmul.msk.f32.vlgmr.msrb.gmra.mxu1 %vm1297_vm3, %v5191_v30  ;;  %4611 = vmatmul.msk.f32.vlgmr.msrb.gmra.mxu2 %vm1297_vm3, %v5191_v30  ;;  %1809 = vst [vmem:[#allocation1] ss:$2 sm:$0xff] %v1163_v60  ;;  %v1731_v0 = vld.sshfl [vmem:[#allocation1 + $0x10] sm:$0xff pattern:$0x73625140] }
  0xa1   : > { %4622 = vmatpush.msk.msra.mxu2 %vm1213_vm0, %v1729_v62  ;;  %4625 = vmatpush.msk.msra.mxu3 %vm1213_vm0, %v1730_v63  ;;  %1811 = vst [vmem:[#allocation1 + $0x10] ss:$2 sm:$0xff] %v1164_v61  ;;  %v1136_v62 = vunpack.c.l.bf16 %v5371_v14 }
  0xa2   : > { %4628 = vmatpush.msk.msrb.mxu0 %vm1213_vm0, %v1731_v0 }
  0xa7   : > { %4606 = vmatmul.msk.f32.gmra.mxu0 %vm1297_vm3, %v5208_v36  ;;  %4614 = vmatmul.msk.f32.vlgmr.msrb.gmra.mxu3 %vm1297_vm3, %v5213_v37  ;;  %v1812_v4 = vld.sshfl [vmem:[#allocation1] sm:$0xff pattern:$0x75316420]  ;;  %v1813_v5 = vld.sshfl [vmem:[#allocation1 + $0x8] sm:$0xff pattern:$0x75316420] }
  0xa8   : > { %4609 = vmatmul.msk.f32.gmra.mxu1 %vm1297_vm3, %v5208_v36  ;;  %4612 = vmatmul.msk.f32.gmra.mxu2 %vm1297_vm3, %v5208_v36  ;;  %1892 = vst [vmem:[#allocation1] ss:$2 sm:$0xff] %v1182_v2  ;;  %v1814_v6 = vld.sshfl [vmem:[#allocation1 + $0x10] sm:$0xff pattern:$0x75316420] }
  0xa9   : > { %4631 = vmatpush.msk.msrb.mxu1 %vm1304_vm2, %v1812_v4  ;;  %4634 = vmatpush.msk.msrb.mxu2 %vm1304_vm2, %v1813_v5  ;;  %1894 = vst [vmem:[#allocation1 + $0x10] ss:$2 sm:$0xff] %v1183_v3  ;;  %v1140_v2 = vld [vmem:[%s5334_s0 + $0x8] sm:$0xf]  ;;  %s6083_s0 = scalar_lea.vmem [#allocation7], %s5358_s4  ;;  %s6091_s4 = scalar_lea.vmem [#allocation8], %s5156_s6 }
  0xaa   : > { %4637 = vmatpush.msk.msrb.mxu3 %vm1304_vm2, %v1814_v6  ;;  %v1143_v3 = vunpack.c.l.bf16 %v1140_v2 }
  0xaf   : > { %4615 = vmatmul.msk.f32.gmra.mxu3 %vm1297_vm3, %v5230_v44  ;;  %4617 = vmatmul.msk.f32.vlgmr.msra.gmra.mxu0 %vm1297_vm3, %v5213_v37  ;;  %v1895_v7 = vld.sshfl [vmem:[#allocation1] sm:$0xff pattern:$0x75316420]  ;;  %v1896_v8 = vld.sshfl [vmem:[#allocation1 + $0x8] sm:$0xff pattern:$0x75316420] }
  0xb0   : > { %4620 = vmatmul.msk.f32.vlgmr.msra.gmra.mxu1 %vm1297_vm3, %v5213_v37  ;;  %4623 = vmatmul.msk.f32.vlgmr.msra.gmra.mxu2 %vm1206_vm1, %v5168_v22  ;;  %v1897_v9 = vld.sshfl [vmem:[#allocation1 + $0x10] sm:$0xff pattern:$0x75316420] }
  0xb1   : > { %4640 = vmatpush.msk.msra.mxu0 %vm1304_vm2, %v1895_v7  ;;  %4643 = vmatpush.msk.msra.mxu1 %vm1304_vm2, %v1896_v8  ;;  %v1142_v8 = vunpack.c.h.bf16 %v5341_v10 }
  0xb2   : > { %4646 = vmatpush.msk.msra.mxu2 %vm1304_vm2, %v1897_v9 }
  0xb7   : > { %4618 = vmatmul.msk.f32.gmra.mxu0 %vm1297_vm3, %v5230_v44  ;;  %4626 = vmatmul.msk.f32.vlgmr.msra.gmra.mxu3 %vm1206_vm1, %v5168_v22 }
  0xb8   : > { %4621 = vmatmul.msk.f32.gmra.mxu1 %vm1297_vm3, %v5230_v44  ;;  %4624 = vmatmul.msk.f32.gmra.mxu2 %vm1206_vm1, %v5186_v29 }
  0xb9   : > { %2109 = vmatpush.msra.mxu3 %v1141_v11  ;;  %v1146_v11 = vld [vmem:[%s5386_s27 + $0xc] sm:$0xff] }
  0xba   : > { %v1151_v10 = vunpack.c.l.bf16 %v1146_v11 }
  0xbf   : > { %4627 = vmatmul.msk.f32.gmra.mxu3 %vm1206_vm1, %v5186_v29  ;;  %4629 = vmatmul.msk.f32.vlgmr.msrb.gmra.mxu0 %vm1206_vm1, %v5168_v22  ;;  %v1150_v22 = vunpack.c.l.bf16 %v1145_v21  ;;  %v1149_v21 = vunpack.c.h.bf16 %v1144_v19 }
  0xc0   : > { %4632 = vmatmul.msk.f32.vlgmr.msrb.gmra.mxu1 %vm1297_vm3, %v5191_v30  ;;  %4635 = vmatmul.msk.f32.vlgmr.msrb.gmra.mxu2 %vm1297_vm3, %v5191_v30 }
  0xc1   : > { %2184 = vmatpush.msrb.mxu2 %v1136_v62  ;;  %2155 = vmatpush.msrb.mxu1 %v1143_v3 }
  0xc2   : > { %2132 = vmatpush.msrb.mxu0 %v1142_v8 }
  0xc3   : > { %2185 = vmatpush.msrb.mxu2 %v1133_v1 }
  0xc7   : > { %4630 = vmatmul.msk.f32.gmra.mxu0 %vm1206_vm1, %v5186_v29  ;;  %4638 = vmatmul.msk.f32.vlgmr.msrb.gmra.mxu3 %vm1297_vm3, %v5191_v30  ;;  %v5402_v29 = vld [vmem:[%s6144_s11] sm:$0xff] }
  0xc8   : > { %4633 = vmatmul.msk.f32.gmra.mxu1 %vm1297_vm3, %v5208_v36  ;;  %4636 = vmatmul.msk.f32.gmra.mxu2 %vm1297_vm3, %v5208_v36 }
  0xc9   : > { %2207 = vmatpush.msrb.mxu3 %v1137_v15  ;;  %v1152_v15 = vunpack.c.h.bf16 %v1146_v11 }
  0xcb   : > { %2208 = vmatpush.msrb.mxu3 %v1134_v17 }
  0xcf   : > { %4639 = vmatmul.msk.f32.gmra.mxu3 %vm1297_vm3, %v5208_v36  ;;  %4641 = vmatmul.msk.f32.vlgmr.msra.gmra.mxu0 %vm1297_vm3, %v5213_v37 }
  0xd0   : > { %4644 = vmatmul.msk.f32.vlgmr.msra.gmra.mxu1 %vm1297_vm3, %v5213_v37  ;;  %4647 = vmatmul.msk.f32.vlgmr.msra.gmra.mxu2 %vm1297_vm3, %v5213_v37 }
  0xd1   : > { %2282 = vmatpush.msra.mxu2 %v1152_v15  ;;  %2259 = vmatpush.msra.mxu1 %v1151_v10 }
  0xd3   : > { %2283 = vmatpush.msra.mxu2 %v1149_v21 }
  0xd7   : > { %4642 = vmatmul.msk.f32.gmra.mxu0 %vm1297_vm3, %v5230_v44  ;;  %4649 = vmatmul.msk.f32.vlgmr.msra.gmra.mxu3 %vm2087_vm4, %v5347_v12 }
  0xd8   : > { %4645 = vmatmul.msk.f32.gmra.mxu1 %vm1297_vm3, %v5230_v44  ;;  %4648 = vmatmul.msk.f32.gmra.mxu2 %vm1297_vm3, %v5230_v44 }
  0xd9   : > { %2305 = vmatpush.msra.mxu3 %v1153_v20 }
  0xdb   : > { %2306 = vmatpush.msra.mxu3 %v1150_v22 }
  0xdf   : > { %4650 = vmatmul.msk.f32.gmra.mxu3 %vm2087_vm4, %v5363_v13  ;;  %4651 = vmatmul.msk.f32.vlgmr.msrb.gmra.mxu0 %vm2087_vm4, %v5347_v12 }
  0xe0   : > { %4655 = vmatmul.msk.f32.vlgmr.msrb.gmra.mxu2 %vm2163_vm5, %v5381_v18  ;;  %4653 = vmatmul.msk.f32.vlgmr.msrb.gmra.mxu1 %vm2087_vm4, %v5347_v12  ;;  %v1148_v12 = vunpack.c.l.bf16 %v1144_v19 }
  0xe2   : > { %2260 = vmatpush.msra.mxu1 %v1148_v12 }
  0xe7   : > { %4657 = vmatmul.msk.f32.vlgmr.msrb.gmra.mxu3 %vm2163_vm5, %v5381_v18  ;;  %4652 = vmatmul.msk.f32.gmra.mxu0 %vm2087_vm4, %v5363_v13 }
  0xe8   : > { %4656 = vmatmul.msk.f32.gmra.mxu2 %vm2163_vm5, %v5393_v25  ;;  %4654 = vmatmul.msk.f32.gmra.mxu1 %vm2087_vm4, %v5363_v13 }
  0xec   : > { %v1237_v23 = vpop.f32.mrf.mxu0 }
  0xed   : > { %v1260_v24 = vpop.f32.mrf.mxu1 }
  0xef   : > { %4658 = vmatmul.msk.f32.gmra.mxu3 %vm2163_vm5, %v5393_v25 }
  0xf0   : > { %4663 = vmatmul.msk.f32.vlgmr.msra.gmra.mxu2 %vm2163_vm5, %v5402_v29  ;;  %4661 = vmatmul.msk.f32.vlgmr.msra.gmra.mxu1 %vm2163_vm5, %v5402_v29 }
  0xf3   : > { %v5397_v26 = vpop.f32.mrf.mxu2 }
  0xf4   : > { %v1240_v27 = vpop.f32.mrf.mxu0 }
  0xf5   : > { %v1263_v28 = vpop.f32.mrf.mxu1 }
  0xf7   : > { %4665 = vmatmul.msk.f32.vlgmr.msra.gmra.mxu3 %vm2163_vm5, %v5402_v29 }
  0xf8   : > { %4664 = vmatmul.msk.f32.gmra.mxu2 %vm2163_vm5, %v5425_v46  ;;  %4662 = vmatmul.msk.f32.gmra.mxu1 %vm2163_vm5, %v5425_v46 }
  0xfa   : > { %v1328_v30 = vpop.f32.mrf.mxu3 }
  0xfb   : > { %v5406_v31 = vpop.f32.mrf.mxu2  ;;  %v1329_v41 = vadd.f32 %v1328_v30, %v1237_v23 }
  0xfc   : > { %v1351_v32 = vpop.f32.mrf.mxu0 }
  0xfd   : > { %v5408_v33 = vpop.f32.mrf.mxu1  ;;  %v1352_v49 = vadd.f32 %v1351_v32, %v1260_v24  ;;  %v1132_v32 = vld [vmem:[%s5368_s5 + $0x14] sm:$0xf] }
  0xff   : > { %4666 = vmatmul.msk.f32.gmra.mxu3 %vm2163_vm5, %v5425_v46 }
 0x102   : > { %v1331_v34 = vpop.f32.mrf.mxu3 }
 0x103   : > { %v1417_v35 = vpop.f32.mrf.mxu2  ;;  %v1332_v38 = vadd.f32 %v1331_v34, %v1240_v27 }
 0x104   : > { %v1354_v36 = vpop.f32.mrf.mxu0  ;;  %v5418_v45 = vadd.f32 %v1417_v35, %v1329_v41  ;;  %v1138_v35 = vunpack.c.l.bf16 %v1132_v32 }
 0x105   : > { %v5410_v37 = vpop.f32.mrf.mxu1  ;;  %v1355_v47 = vadd.f32 %v1354_v36, %v1263_v28  ;;  %v1130_v36 = vld [vmem:[%s5368_s5 + $0x8] sm:$0xf]  ;;  %s4816_s5 = smul.u32 (%p5109_p5), 12, %s5090_s28 }
 0x106   : > { %2230 = vmatpush.msra.mxu0 %v1138_v35 }
 0x107   : > { %s4275_s7 = scalar_lea.vmem (%p5109_p5), %s6198_s25, %s4816_s5 }
 0x10a   : > { %v1440_v39 = vpop.f32.mrf.mxu3 }
 0x10b   : > { %v1420_v40 = vpop.f32.mrf.mxu2  ;;  %v5436_v53 = vadd.f32 %v1440_v39, %v1352_v49 }
 0x10c   : > { %v5412_v42 = vadd.f32 %v1420_v40, %v1332_v38  ;;  %v5414_v43 = vpop.f32.mrf.mxu0  ;;  %v1135_v38 = vunpack.c.l.bf16 %v1130_v36 }
 0x10d   : > { %v5416_v44 = vpop.f32.mrf.mxu1  ;;  %v1980_v2 = vmul.f32 %v5436_v53, %v5436_v53 }
 0x10e   : > { %4676 = vmatpush.msk.msrb.mxu3 %vm1213_vm0, %v5412_v42  ;;  %2231 = vmatpush.msra.mxu0 %v1135_v38 }
 0x10f   : > { %4659 = vmatmul.msk.f32.vlgmr.msra.gmra.mxu0 %vm2163_vm5, %v5381_v18 }
 0x110   : > { %2454 = vmatpush.msrb.mxu3 %v5418_v45 }
 0x111   : > { %4677 = vmatmul.msk.f32.vlgmr.msrb.gmra.mxu3 %vm2320_vm6, %v5446_v55 }
 0x112   : > { %v1443_v48 = vpop.f32.mrf.mxu3 }
 0x113   : > { %v5430_v50 = vadd.f32 %v1443_v48, %v1355_v47  ;;  %v5432_v51 = vpop.f32.mrf.mxu2 }
 0x114   : > { %v5434_v52 = vpop.f32.mrf.mxu0 }
 0x115   : > { %v5438_v54 = vpop.f32.mrf.mxu1  ;;  %4678 = vmatpush.msk.msra.mxu3 %vm1213_vm0, %v5430_v50  ;;  %v1983_v10 = vmul.f32 %v5430_v50, %v5430_v50 }
 0x117   : > { %2474 = vmatpush.msra.mxu3 %v5436_v53  ;;  %4660 = vmatmul.msk.f32.gmra.mxu0 %vm2163_vm5, %v5393_v25 }
 0x119   : > { %4679 = vmatmul.msk.f32.vlgmr.msra.gmra.mxu3 %vm2320_vm6, %v5446_v55 }
 0x11a   : > { %v1549_v56 = vpop.f32.mrf.mxu3 }
 0x11b   : > { %v5450_v57 = vpop.f32.mrf.mxu2 }
 0x11c   : > { %v5452_v58 = vpop.f32.mrf.mxu0 }
 0x11d   : > { %v5454_v59 = vpop.f32.mrf.mxu1  ;;  %v1587_v40 = vadd.f32 %v5452_v58, %v5416_v44 }
 0x11e   : > { %v1610_v47 = vadd.f32 %v5454_v59, %v5432_v51  ;;  %v1375_v51 = vadd.f32 %v5408_v33, %v5397_v26  ;;  %v1979_v59 = vmul.f32 %v5418_v45, %v5418_v45 }
 0x120   : > { %v5529_v26 = vadd.f32 %v5414_v43, %v1375_v51 }
 0x122   : > { %v1552_v60 = vpop.f32.mrf.mxu3  ;;  %v1981_v8 = vmul.f32 %v5529_v26, %v5529_v26 }
 0x123   : > { %v1632_v61 = vpop.f32.mrf.mxu2 }
 0x124   : > { %v5459_v63 = vpop.f32.mrf.mxu0  ;;  %v1633_v22 = vadd.f32 %v1632_v61, %v1549_v56 }
 0x125   : > { %v5461_v0 = vpop.f32.mrf.mxu1  ;;  %v1590_v61 = vadd.f32 %v5459_v63, %v5438_v54 }
 0x126   : > { %v1613_v3 = vadd.f32 %v5461_v0, %v5450_v57  ;;  %v1378_v57 = vadd.f32 %v5410_v37, %v5406_v31 }
 0x12a   : > { %v1669_v4 = vpop.f32.mrf.mxu3 }
 0x12b   : > { %v1635_v5 = vpop.f32.mrf.mxu2  ;;  %v5504_v48 = vadd.f32 %v1669_v4, %v1587_v40 }
 0x12c   : > { %v1692_v6 = vpop.f32.mrf.mxu0  ;;  %v1636_v16 = vadd.f32 %v1635_v5, %v1552_v60 }
 0x12d   : > { %v1715_v7 = vpop.f32.mrf.mxu1  ;;  %v5506_v49 = vadd.f32 %v1692_v6, %v1610_v47  ;;  %v1985_v18 = vmul.f32 %v5504_v48, %v5504_v48 }
 0x12e   : > { %v1723_v24 = vadd.f32 %v1715_v7, %v1633_v22 }
 0x12f   : > { %v1986_v60 = vmul.f32 %v5506_v49, %v5506_v49  ;;  %v1991_v33 = vadd.f32 %v1985_v18, %v1979_v59 }
 0x130   : > { %v1987_v0 = vmul.f32 %v1723_v24, %v1723_v24 }
 0x131   : > { %v1992_v63 = vadd.f32 %v1986_v60, %v1980_v2 }
 0x132   : > { %v5472_v9 = vpop.f32.mrf.mxu3  ;;  %v1993_v12 = vadd.f32 %v1987_v0, %v1981_v8 }
 0x133   : > { %v1755_v14 = vpop.f32.mrf.mxu2  ;;  %v5532_v45 = vadd.f32 %v5472_v9, %v1590_v61 }
 0x134   : > { %v1695_v17 = vpop.f32.mrf.mxu0 }
 0x135   : > { %v1718_v20 = vpop.f32.mrf.mxu1  ;;  %v5536_v5 = vadd.f32 %v1695_v17, %v1613_v3  ;;  %v1988_v9 = vmul.f32 %v5532_v45, %v5532_v45 }
 0x136   : > { %v5480_v23 = vadd.f32 %v1718_v20, %v1636_v16  ;;  %v1982_v20 = vmul.f32 %v5412_v42, %v5412_v42 }
 0x137   : > { %v1989_v16 = vmul.f32 %v5536_v5, %v5536_v5 }
 0x138   : > { %4686 = vmatpush.msk.msrb.mxu3 %vm1213_vm0, %v5480_v23  ;;  %v1994_v42 = vadd.f32 %v1988_v9, %v1982_v20  ;;  %v1990_v36 = vmul.f32 %v5480_v23, %v5480_v23 }
 0x139   : > { %v1995_v32 = vadd.f32 %v1989_v16, %v1983_v10 }
 0x13a   : > { %2563 = vmatpush.msrb.mxu3 %v1723_v24  ;;  %v1778_v27 = vpop.f32.mrf.mxu3 }
 0x13b   : > { %v1758_v28 = vpop.f32.mrf.mxu2  ;;  %4687 = vmatmul.msk.f32.vlgmr.msrb.gmra.mxu3 %vm2320_vm6, %v5446_v55 }
 0x13c   : > { %v1801_v30 = vpop.f32.mrf.mxu0 }
 0x13d   : > { %v1838_v34 = vpop.f32.mrf.mxu1 }
 0x13e   : > { %v1839_v56 = vadd.f32 %v1838_v34, %v1755_v14 }
 0x142   : > { %v1781_v13 = vpop.f32.mrf.mxu3 }
 0x143   : > { %v1861_v39 = vpop.f32.mrf.mxu2 }
 0x144   : > { %v1804_v29 = vpop.f32.mrf.mxu0  ;;  %v1862_v44 = vadd.f32 %v1861_v39, %v1778_v27 }
 0x145   : > { %v1841_v41 = vpop.f32.mrf.mxu1 }
 0x146   : > { %v1842_v11 = vadd.f32 %v1841_v41, %v1758_v28  ;;  %v5567_v28 = vadd.f32 %v5434_v52, %v1378_v57  ;;  %v1199_v52 = vld [vmem:[%s6146_s13 + $0x8] sm:$0xff] }
 0x148   : > { %v1984_v47 = vmul.f32 %v5567_v28, %v5567_v28 }
 0x14a   : > { %v1884_v25 = vpop.f32.mrf.mxu3 }
 0x14b   : > { %v1864_v46 = vpop.f32.mrf.mxu2  ;;  %v1885_v43 = vadd.f32 %v1884_v25, %v1801_v30 }
 0x14c   : > { %v1921_v58 = vpop.f32.mrf.mxu0  ;;  %v1865_v17 = vadd.f32 %v1864_v46, %v1781_v13  ;;  %v4938_v46 = vmov 0  }
 0x14d   : > { %v5520_v62 = vadd.f32 %v1921_v58, %v1839_v56  ;;  %v1944_v1 = vpop.f32.mrf.mxu1  ;;  %4851 = vset.pattern.permute.xlu0 %v4938_v46  ;;  %4852 = vset.pattern.permute.xlu1 %v4938_v46  ;;  %v1996_v58 = vadd.f32 %v1990_v36, %v1984_v47 }
 0x14e   : > { %v5526_v4 = vadd.f32 %v1944_v1, %v1862_v44  ;;  %2418 = vperm.xlu0 %4851, %v1199_v52   ;;  %4853 = vset.pattern.permute.xlu2 %v4938_v46 }
 0x14f   : > { %v1997_v54 = vmul.f32 %v5520_v62, %v5520_v62 }
 0x150   : > { %v1998_v53 = vmul.f32 %v5526_v4, %v5526_v4 }
 0x151   : > { %v2003_v6 = vadd.f32 %v1997_v54, %v1991_v33 }
 0x152   : > { %v2004_v7 = vadd.f32 %v1998_v53, %v1992_v63  ;;  %v1887_v30 = vpop.f32.mrf.mxu3 }
 0x153   : > { %v5546_v14 = vmax.f32 %v2003_v6, 1e-08  ;;  %v1967_v15 = vpop.f32.mrf.mxu2  ;;  %v1888_v13 = vadd.f32 %v1887_v30, %v1804_v29  ;;  %v1198_v6 = vld [vmem:[%s6146_s13] sm:$0xff] }
 0x154   : > { %v5550_v19 = vmax.f32 %v2004_v7, 1e-08  ;;  %v5552_v31 = vadd.f32 %v1967_v15, %v1885_v43  ;;  %v1924_v37 = vpop.f32.mrf.mxu0 }
 0x155   : > { %v5558_v21 = vadd.f32 %v1924_v37, %v1842_v11  ;;  %v1947_v22 = vpop.f32.mrf.mxu1  ;;  %4854 = vrsqrt.f32 %v5546_v14  ;;  %vm2022_vm7 = vcmp.eq.f32.partialorder %v5546_v14, inf  ;;  %vm2024_vm13 = vcmp.eq.f32.partialorder %v5546_v14, 0.0 }
 0x156   : > { %v1999_v24 = vmul.f32 %v5552_v31, %v5552_v31  ;;  %v5563_v27 = vadd.f32 %v1947_v22, %v1865_v17  ;;  %4856 = vrsqrt.f32 %v5550_v19  ;;  %2413 = vperm.xlu0 %4851, %v1198_v6   ;;  %vm2034_vm8 = vcmp.eq.f32.partialorder %v5550_v19, inf }
 0x157   : > { %v2000_v50 = vmul.f32 %v5558_v21, %v5558_v21  ;;  %vm2036_vm14 = vcmp.eq.f32.partialorder %v5550_v19, 0.0 }
 0x158   : > { %v2005_v34 = vadd.f32 %v1999_v24, %v1993_v12  ;;  %v2001_v35 = vmul.f32 %v5563_v27, %v5563_v27 }
 0x159   : > { %v2006_v38 = vadd.f32 %v2000_v50, %v1994_v42 }
 0x15a   : > { %v5575_v39 = vmax.f32 %v2005_v34, 1e-08  ;;  %v2007_v40 = vadd.f32 %v2001_v35, %v1995_v32  ;;  %v2025_v34 = vand.u32 2147483648, %v5546_v14 }
 0x15b   : > { %v4855_v41 = vpop.eup %4854  ;;  %v5582_v18 = vmax.f32 %v2006_v38, 1e-08  ;;  %v1970_v56 = vpop.f32.mrf.mxu2 }
 0x15c   : > { %v4857_v23 = vpop.eup %4856  ;;  %v5584_v60 = vmax.f32 %v2007_v40, 1e-08  ;;  %v5586_v29 = vadd.f32 %v1970_v56, %v1888_v13  ;;  %v2016_v44 = vmul.f32 %v4855_v41, %v5546_v14  ;;  %4858 = vrsqrt.f32 %v5575_v39 }
 0x15d   : > { %4860 = vrsqrt.f32 %v5582_v18  ;;  %v2028_v61 = vmul.f32 %v4857_v23, %v5550_v19  ;;  %vm2058_vm9 = vcmp.eq.f32.partialorder %v5582_v18, inf  ;;  %vm2060_vm10 = vcmp.eq.f32.partialorder %v5582_v18, 0.0 }
 0x15e   : > { %4862 = vrsqrt.f32 %v5584_v60  ;;  %v2002_v51 = vmul.f32 %v5586_v29, %v5586_v29  ;;  %v2017_v59 = vmul.f32 %v4855_v41, %v2016_v44  ;;  %v2061_v40 = vand.u32 2147483648, %v5582_v18 }
 0x15f   : > { %v2029_v2 = vmul.f32 %v4857_v23, %v2028_v61  ;;  %vm2070_vm11 = vcmp.eq.f32.partialorder %v5584_v60, inf  ;;  %vm2072_vm12 = vcmp.eq.f32.partialorder %v5584_v60, 0.0  ;;  %v2073_v46 = vand.u32 2147483648, %v5584_v60 }
 0x160   : > { %v2008_v25 = vadd.f32 %v2002_v51, %v1996_v58  ;;  %v2018_v1 = vmul.f32 0.5, %v2017_v59  ;;  %vm2046_vm1 = vcmp.eq.f32.partialorder %v5575_v39, inf }
 0x161   : > { %v2030_v63 = vmul.f32 0.5, %v2029_v2 }
 0x162   : > { %v4859_v3 = vpop.eup %4858  ;;  %v5595_v33 = vmax.f32 %v2008_v25, 1e-08  ;;  %v2019_v43 = vsub.f32 1.5, %v2018_v1  ;;  %v1196_v25 = vld [vmem:[%s6145_s12] sm:$0xff] }
 0x163   : > { %v4861_v54 = vpop.eup %4860  ;;  %v2040_v53 = vmul.f32 %v4859_v3, %v5575_v39  ;;  %v2031_v8 = vsub.f32 1.5, %v2030_v63 }
 0x164   : > { %v4863_v57 = vpop.eup %4862  ;;  %4864 = vrsqrt.f32 %v5595_v33  ;;  %v2052_v0 = vmul.f32 %v4861_v54, %v5582_v18  ;;  %v2020_v17 = vmul.f32 %v4855_v41, %v2019_v43  ;;  %vm2082_vm15 = vcmp.eq.f32.partialorder %v5595_v33, inf }
 0x165   : > { %v2064_v7 = vmul.f32 %v4863_v57, %v5584_v60  ;;  %v2041_v11 = vmul.f32 %v4859_v3, %v2040_v53  ;;  %v2032_v10 = vmul.f32 %v4857_v23, %v2031_v8  ;;  %vm2084_vm4 = vcmp.eq.f32.partialorder %v5595_v33, 0.0 }
 0x166   : > { %v2053_v9 = vmul.f32 %v4861_v54, %v2052_v0  ;;  %v2021_v32 = vmul.f32 %v2020_v17, %v5546_v14 }
 0x167   : > { %v2065_v15 = vmul.f32 %v4863_v57, %v2064_v7  ;;  %v2042_v37 = vmul.f32 0.5, %v2041_v11  ;;  %v2033_v36 = vmul.f32 %v2032_v10, %v5550_v19 }
 0x168   : > { %v2054_v16 = vmul.f32 0.5, %v2053_v9  ;;  %v2023_v23 = vsel %vm2022_vm7, %v5546_v14, %v2021_v32  ;;  %vm2048_vm7 = vcmp.eq.f32.partialorder %v5575_v39, 0.0 }
 0x169   : > { %v2066_v20 = vmul.f32 0.5, %v2065_v15  ;;  %v2043_v30 = vsub.f32 1.5, %v2042_v37  ;;  %v2035_v51 = vsel %vm2034_vm8, %v5550_v19, %v2033_v36  ;;  %v2026_v1 = vsel %vm2024_vm13, %v2025_v34, %v2023_v23 }
 0x16a   : > { %v4865_v22 = vpop.eup %4864  ;;  %v2055_v12 = vsub.f32 1.5, %v2054_v16 }
 0x16b   : > { %v2067_v24 = vsub.f32 1.5, %v2066_v20  ;;  %v2076_v42 = vmul.f32 %v4865_v22, %v5595_v33  ;;  %v2044_v47 = vmul.f32 %v4859_v3, %v2043_v30 }
 0x16c   : > { %v2056_v50 = vmul.f32 %v4861_v54, %v2055_v12  ;;  %v2085_v54 = vand.u32 2147483648, %v5595_v33 }
 0x16d   : > { %v2068_v35 = vmul.f32 %v4863_v57, %v2067_v24  ;;  %v2077_v38 = vmul.f32 %v4865_v22, %v2076_v42  ;;  %v2045_v2 = vmul.f32 %v2044_v47, %v5575_v39 }
 0x16e   : > { %v2057_v13 = vmul.f32 %v2056_v50, %v5582_v18 }
 0x16f   : > { %v2069_v52 = vmul.f32 %v2068_v35, %v5584_v60  ;;  %v2078_v41 = vmul.f32 0.5, %v2077_v38  ;;  %v2047_v63 = vsel %vm2046_vm1, %v5575_v39, %v2045_v2 }
 0x170   : > { %v2059_v56 = vsel %vm2058_vm9, %v5582_v18, %v2057_v13  ;;  %v2037_v18 = vand.u32 2147483648, %v5550_v19 }
 0x171   : > { %v2062_v44 = vsel %vm2060_vm10, %v2061_v40, %v2059_v56  ;;  %v2071_v58 = vsel %vm2070_vm11, %v5584_v60, %v2069_v52  ;;  %v2079_v59 = vsub.f32 1.5, %v2078_v41 }
 0x172   : > { %4667 = vmatpush.msk.msrb.mxu0 %vm1213_vm0, %v2062_v44  ;;  %v2074_v61 = vsel %vm2072_vm12, %v2073_v46, %v2071_v58  ;;  %v2038_v3 = vsel %vm2036_vm14, %v2037_v18, %v2035_v51 }
 0x173   : > { %4670 = vmatpush.msk.msrb.mxu1 %vm1213_vm0, %v2074_v61  ;;  %v2080_v60 = vmul.f32 %v4865_v22, %v2079_v59 }
 0x174   : > { %2351 = vmatpush.msrb.mxu0 %v2026_v1 }
 0x175   : > { %2374 = vmatpush.msrb.mxu1 %v2038_v3  ;;  %4668 = vmatmul.msk.f32.vlgmr.msrb.gmra.mxu0 %vm2320_vm6, %v1196_v25  ;;  %v2081_v14 = vmul.f32 %v2080_v60, %v5595_v33 }
 0x176   : > { %4671 = vmatmul.msk.f32.vlgmr.msrb.gmra.mxu1 %vm2320_vm6, %v1196_v25  ;;  %4680 = vmatpush.msk.msra.mxu0 %vm1213_vm0, %v5567_v28  ;;  %v2049_v28 = vand.u32 2147483648, %v5575_v39 }
 0x177   : > { %4682 = vmatpush.msk.msra.mxu1 %vm1213_vm0, %v5532_v45  ;;  %v2083_v19 = vsel %vm2082_vm15, %v5595_v33, %v2081_v14 }
 0x178   : > { %2494 = vmatpush.msra.mxu0 %v5529_v26  ;;  %v2086_v53 = vsel %vm2084_vm4, %v2085_v54, %v2083_v19  ;;  %v2050_v45 = vsel %vm2048_vm7, %v2049_v28, %v2047_v63  ;;  %v1197_v26 = vld [vmem:[%s6145_s12 + $0x8] sm:$0xff] }
 0x179   : > { %2523 = vmatpush.msra.mxu1 %v5504_v48  ;;  %4673 = vmatpush.msk.msrb.mxu2 %vm1213_vm0, %v2086_v53  ;;  %v2111_v48 = vpop.f32.mrf.mxu3 }
 0x17a   : > { %4688 = vmatpush.msk.msrb.mxu0 %vm1213_vm0, %v5558_v21  ;;  %v2134_v21 = vpop.f32.mrf.mxu0 }
 0x17b   : > { %4690 = vmatpush.msk.msrb.mxu1 %vm1213_vm0, %v5563_v27  ;;  %2397 = vmatpush.msrb.mxu2 %v2050_v45 }
 0x17c   : > { %2592 = vmatpush.msrb.mxu0 %v5520_v62  ;;  %4674 = vmatmul.msk.f32.vlgmr.msrb.gmra.mxu2 %vm2320_vm6, %v1196_v25  ;;  %v2157_v62 = vpop.f32.mrf.mxu1 }
 0x17d   : > { %2612 = vmatpush.msrb.mxu1 %v5526_v4  ;;  %4669 = vmatmul.msk.f32.gmra.mxu0 %vm2320_vm6, %v1197_v26 }
 0x17e   : > { %4684 = vmatpush.msk.msra.mxu2 %vm1213_vm0, %v5536_v5  ;;  %4672 = vmatmul.msk.f32.gmra.mxu1 %vm2320_vm6, %v1197_v26  ;;  %v2187_v5 = vpop.f32.mrf.mxu2 }
 0x180   : > { %2543 = vmatpush.msra.mxu2 %v5506_v49 }
 0x181   : > { %v2114_v49 = vpop.f32.mrf.mxu3 }
 0x182   : > { %4692 = vmatpush.msk.msrb.mxu2 %vm1213_vm0, %v5586_v29  ;;  %v2137_v57 = vpop.f32.mrf.mxu0 }
 0x184   : > { %2632 = vmatpush.msrb.mxu2 %v5552_v31  ;;  %v2188_v31 = vadd.f32 %v2187_v5, %v2111_v48  ;;  %v2160_v27 = vpop.f32.mrf.mxu1 }
 0x185   : > { %4675 = vmatmul.msk.f32.gmra.mxu2 %vm2320_vm6, %v1197_v26  ;;  %4681 = vmatmul.msk.f32.vlgmr.msra.gmra.mxu0 %vm2320_vm6, %v5446_v55 }
 0x186   : > { %4683 = vmatmul.msk.f32.vlgmr.msra.gmra.mxu1 %vm2320_vm6, %v5446_v55  ;;  %v2190_v29 = vpop.f32.mrf.mxu2 }
 0x187   : > { %v2191_v6 = vadd.f32 %v2190_v29, %v2114_v49 }
 0x189   : > { %v2210_v4 = vpop.f32.mrf.mxu3 }
 0x18a   : > { %v2211_v39 = vadd.f32 %v2210_v4, %v2134_v21 }
 0x18c   : > { %v2262_v0 = vpop.f32.mrf.mxu1 }
 0x18d   : > { %4685 = vmatmul.msk.f32.vlgmr.msra.gmra.mxu2 %vm2320_vm6, %v5446_v55  ;;  %4689 = vmatmul.msk.f32.vlgmr.msrb.gmra.mxu0 %vm2320_vm6, %v5446_v55  ;;  %v2314_v7 = vadd.f32 %v2262_v0, %v2188_v31 }
 0x18e   : > { %4691 = vmatmul.msk.f32.vlgmr.msrb.gmra.mxu1 %vm2320_vm6, %v5446_v55  ;;  %v2285_v8 = vpop.f32.mrf.mxu2 }
 0x18f   : > { %v2315_v9 = vadd.f32 %v2285_v8, %v2211_v39 }
 0x191   : > { %v2213_v33 = vpop.f32.mrf.mxu3 }
 0x192   : > { %v2214_v43 = vadd.f32 %v2213_v33, %v2137_v57 }
 0x194   : > { %v2265_v16 = vpop.f32.mrf.mxu1 }
 0x195   : > { %4693 = vmatmul.msk.f32.vlgmr.msrb.gmra.mxu2 %vm2320_vm6, %v5446_v55  ;;  %v2233_v55 = vpop.f32.mrf.mxu0  ;;  %v2317_v17 = vadd.f32 %v2265_v16, %v2191_v6 }
 0x196   : > { %v2234_v15 = vadd.f32 %v2233_v55, %v2157_v62  ;;  %v2288_v20 = vpop.f32.mrf.mxu2 }
 0x197   : > { %v2318_v10 = vadd.f32 %v2288_v20, %v2214_v43 }
 0x199   : > { %v2308_v11 = vpop.f32.mrf.mxu3 }
 0x19a   : > { %v2316_v37 = vadd.f32 %v2308_v11, %v2234_v15 }
 0x19d   : > { %v2236_v22 = vpop.f32.mrf.mxu0 }
 0x19e   : > { %v2237_v24 = vadd.f32 %v2236_v22, %v2160_v27 }
 0x1a1   : > { %v2311_v12 = vpop.f32.mrf.mxu3 }
 0x1a2   : > { %v2319_v42 = vadd.f32 %v2311_v12, %v2237_v24 }
 0x1a9   : > { %v5698_v56 = vpop.f32.mrf.mxu3 }
 0x1aa   : > { %v2637_v59 = vmul.f32 %v5698_v56, %v5698_v56 }
 0x1b1   : > { %v5711_v25 = vpop.f32.mrf.mxu3 }
 0x1b2   : > { %v2638_v28 = vmul.f32 %v5711_v25, %v5711_v25 }
 0x1be   : > { %v5728_v26 = vpop.f32.mrf.mxu3 }
 0x1bf   : > { %v2642_v4 = vmul.f32 %v5728_v26, %v5728_v26 }
 0x1c0   : > { %v5684_v30 = vpop.permute.xlu0 %2418 }
 0x1c8   : > { %v5688_v35 = vpop.permute.xlu0 %2413 }
 0x1f2   : > { %v2353_v50 = vpop.f32.mrf.mxu0 }
 0x1f3   : > { %v5686_v32 = vadd.f32 %v2353_v50, %v2314_v7  ;;  %v2376_v34 = vpop.f32.mrf.mxu1 }
 0x1f4   : > { %v2406_v36 = vadd.f32 %v2376_v34, %v2315_v9 }
 0x1f6   : > { %v5691_v38 = vadd.f32 %v5688_v35, %v2406_v36 }
 0x1fa   : > { %v2356_v13 = vpop.f32.mrf.mxu0 }
 0x1fb   : > { %v5693_v40 = vadd.f32 %v2356_v13, %v2317_v17  ;;  %v2379_v52 = vpop.f32.mrf.mxu1 }
 0x1fc   : > { %v2409_v41 = vadd.f32 %v2379_v52, %v2318_v10 }
 0x1fe   : > { %v5696_v47 = vadd.f32 %v5684_v30, %v2409_v41 }
 0x1ff   : > { %v2399_v46 = vpop.f32.mrf.mxu2 }
 0x200   : > { %v2407_v23 = vadd.f32 %v2399_v46, %v2316_v37 }
 0x202   : > { %v5700_v44 = vpop.f32.mrf.mxu0  ;;  %v5703_v58 = vadd.f32 %v5688_v35, %v2407_v23 }
 0x203   : > { %v5705_v51 = vpop.f32.mrf.mxu1  ;;  %v2639_v62 = vmul.f32 %v5700_v44, %v5700_v44 }
 0x204   : > { %v2640_v61 = vmul.f32 %v5705_v51, %v5705_v51 }
 0x205   : > { %v2645_v29 = vadd.f32 %v2642_v4, %v2639_v62 }
 0x206   : > { %v2643_v3 = vadd.f32 %v2640_v61, %v2637_v59 }
 0x208   : > { %v2402_v18 = vpop.f32.mrf.mxu2 }
 0x209   : > { %v2410_v1 = vadd.f32 %v2402_v18, %v2319_v42 }
 0x20a   : > { %v5713_v60 = vpop.f32.mrf.mxu0 }
 0x20b   : > { %v5716_v2 = vadd.f32 %v5684_v30, %v2410_v1  ;;  %v2646_v14 = vmul.f32 %v5713_v60, %v5713_v60  ;;  %v5720_v63 = vpop.f32.mrf.mxu1 }
 0x20c   : > { %v2647_v48 = vmul.f32 %v5720_v63, %v5720_v63 }
 0x20d   : > { %v2649_v54 = vadd.f32 %v2646_v14, %v2643_v3 }
 0x20f   : > { %v2652_v19 = vmax.f32 %v2649_v54, 1e-08 }
 0x210   : > { %v5722_v53 = vpop.f32.mrf.mxu2 }
 0x211   : > { %4866 = vrsqrt.f32 %v2652_v19  ;;  %v2641_v45 = vmul.f32 %v5722_v53, %v5722_v53  ;;  %vm2662_vm6 = vcmp.eq.f32.partialorder %v2652_v19, inf  ;;  %v2665_v15 = vand.u32 2147483648, %v2652_v19 }
 0x212   : > { %vm2664_vm8 = vcmp.eq.f32.partialorder %v2652_v19, 0.0 }
 0x213   : > { %v2644_v49 = vadd.f32 %v2641_v45, %v2638_v28 }
 0x215   : > { %v2650_v5 = vadd.f32 %v2647_v48, %v2644_v49 }
 0x217   : > { %v4867_v31 = vpop.eup %4866  ;;  %v2653_v27 = vmax.f32 %v2650_v5, 1e-08 }
 0x218   : > { %v2656_v21 = vmul.f32 %v4867_v31, %v2652_v19  ;;  %v5736_v39 = vpop.f32.mrf.mxu2 }
 0x219   : > { %v2648_v33 = vmul.f32 %v5736_v39, %v5736_v39  ;;  %4868 = vrsqrt.f32 %v2653_v27  ;;  %vm2674_vm9 = vcmp.eq.f32.partialorder %v2653_v27, inf  ;;  %v2677_v13 = vand.u32 2147483648, %v2653_v27 }
 0x21a   : > { %v2657_v6 = vmul.f32 %v4867_v31, %v2656_v21  ;;  %vm2676_vm10 = vcmp.eq.f32.partialorder %v2653_v27, 0.0 }
 0x21b   : > { %v2651_v57 = vadd.f32 %v2648_v33, %v2645_v29 }
 0x21c   : > { %v2658_v0 = vmul.f32 0.5, %v2657_v6 }
 0x21d   : > { %v2654_v43 = vmax.f32 %v2651_v57, 1e-08 }
 0x21e   : > { %v2659_v7 = vsub.f32 1.5, %v2658_v0 }
 0x21f   : > { %4870 = vrsqrt.f32 %v2654_v43  ;;  %v4869_v8 = vpop.eup %4868  ;;  %vm2686_vm11 = vcmp.eq.f32.partialorder %v2654_v43, inf  ;;  %v2689_v3 = vand.u32 2147483648, %v2654_v43  ;;  %vm2688_vm12 = vcmp.eq.f32.partialorder %v2654_v43, 0.0 }
 0x220   : > { %v2660_v9 = vmul.f32 %v4867_v31, %v2659_v7  ;;  %v2668_v11 = vmul.f32 %v4869_v8, %v2653_v27 }
 0x222   : > { %v2661_v55 = vmul.f32 %v2660_v9, %v2652_v19  ;;  %v2669_v16 = vmul.f32 %v4869_v8, %v2668_v11  ;;  %v2765_v9 = vld [vmem:[%s6148_s15] sm:$0xf] }
 0x224   : > { %v2663_v17 = vsel %vm2662_vm6, %v2652_v19, %v2661_v55  ;;  %v2670_v10 = vmul.f32 0.5, %v2669_v16 }
 0x225   : > { %v4871_v37 = vpop.eup %4870  ;;  %v2666_v20 = vsel %vm2664_vm8, %v2665_v15, %v2663_v17 }
 0x226   : > { %v4694_v22 = vmul.f32 -1.442695, %v2666_v20  ;;  %v2680_v12 = vmul.f32 %v4871_v37, %v2654_v43  ;;  %v2671_v24 = vsub.f32 1.5, %v2670_v10 }
 0x228   : > { %4872 = vpow2.f32 %v4694_v22  ;;  %v2681_v42 = vmul.f32 %v4871_v37, %v2680_v12  ;;  %v2672_v50 = vmul.f32 %v4869_v8, %v2671_v24 }
 0x22a   : > { %v2682_v34 = vmul.f32 0.5, %v2681_v42  ;;  %v2673_v36 = vmul.f32 %v2672_v50, %v2653_v27 }
 0x22c   : > { %v2683_v52 = vsub.f32 1.5, %v2682_v34  ;;  %v2675_v41 = vsel %vm2674_vm9, %v2653_v27, %v2673_v36 }
 0x22d   : > { %v2678_v23 = vsel %vm2676_vm10, %v2677_v13, %v2675_v41  ;;  %v2424_v41 = vadd.f32 %v5684_v30, %v5693_v40 }
 0x22e   : > { %v4873_v46 = vpop.eup %4872  ;;  %v2684_v59 = vmul.f32 %v4871_v37, %v2683_v52  ;;  %v4695_v18 = vmul.f32 -1.442695, %v2678_v23  ;;  %v2421_v23 = vadd.f32 %v5688_v35, %v5686_v32  ;;  %v5777_v35 = vld [vmem:[%s6149_s16] sm:$0xff] }
 0x22f   : > { %v2700_v61 = vadd.f32 1.0, %v4873_v46  ;;  %v2760_v40 = vmax.f32 %v2424_v41, 0.0 }
 0x230   : > { %v2685_v1 = vmul.f32 %v2684_v59, %v2654_v43  ;;  %v2757_v32 = vmax.f32 %v2421_v23, 0.0  ;;  %v2762_v23 = vmax.f32 %v5716_v2, 0.0 }
 0x231   : > { %4874 = vrcp.f32 %v2700_v61  ;;  %v2714_v4 = vand.u32 2147483648, %v2700_v61  ;;  %v2712_v21 = vand.u32 2147483647, %v2700_v61  ;;  %vm2708_vm14 = vweird.f32 %v2700_v61 }
 0x232   : > { %4876 = vpow2.f32 %v4695_v18  ;;  %v2687_v14 = vsel %vm2686_vm11, %v2654_v43, %v2685_v1 }
 0x233   : > { %v2690_v54 = vsel %vm2688_vm12, %v2689_v3, %v2687_v14  ;;  %v2715_v33 = vor.u32 1.1754944e-38, %v2714_v4  ;;  %vm2713_vm1 = vcmp.eq.f32.partialorder %v2712_v21, 8.507059e+37 }
 0x234   : > { %v4696_v19 = vmul.f32 -1.442695, %v2690_v54 }
 0x236   : > { %4878 = vpow2.f32 %v4696_v19 }
 0x237   : > { %v4875_v28 = vpop.eup %4874 }
 0x238   : > { %v4877_v45 = vpop.eup %4876  ;;  %v2704_v48 = vmul.f32 %v4875_v28, %v2700_v61  ;;  %vm2709_vm13 = vweird.f32 %v4875_v28  ;;  %v5793_v61 = vld [vmem:[%s6152_s19] sm:$0xf] }
 0x239   : > { %v2701_v49 = vadd.f32 1.0, %v4877_v45  ;;  %vm2710_vm15 = vmor %vm2708_vm14, %vm2709_vm13 }
 0x23a   : > { %v2705_v62 = vsub.f32 1.0, %v2704_v48 }
 0x23b   : > { %4880 = vrcp.f32 %v2701_v49  ;;  %v2727_v15 = vand.u32 2147483647, %v2701_v49  ;;  %v2729_v16 = vand.u32 2147483648, %v2701_v49  ;;  %vm2723_vm7 = vweird.f32 %v2701_v49 }
 0x23c   : > { %v4879_v5 = vpop.eup %4878  ;;  %v2706_v31 = vmul.f32 %v4875_v28, %v2705_v62 }
 0x23d   : > { %v2702_v27 = vadd.f32 1.0, %v4879_v5  ;;  %vm2728_vm8 = vcmp.eq.f32.partialorder %v2727_v15, 8.507059e+37  ;;  %v2730_v20 = vor.u32 1.1754944e-38, %v2729_v16  ;;  %v2768_v16 = vld [vmem:[%s6151_s18] sm:$0xff] }
 0x23e   : > { %v2707_v29 = vadd.f32 %v4875_v28, %v2706_v31 }
 0x23f   : > { %4882 = vrcp.f32 %v2702_v27  ;;  %v2744_v10 = vand.u32 2147483648, %v2702_v27  ;;  %v2742_v24 = vand.u32 2147483647, %v2702_v27  ;;  %vm2738_vm10 = vweird.f32 %v2702_v27 }
 0x240   : > { %v2711_v6 = vsel %vm2710_vm15, %v4875_v28, %v2707_v29 }
 0x241   : > { %v4881_v57 = vpop.eup %4880  ;;  %v2716_v0 = vsel %vm2713_vm1, %v2715_v33, %v2711_v6  ;;  %v2745_v52 = vor.u32 1.1754944e-38, %v2744_v10  ;;  %vm2743_vm12 = vcmp.eq.f32.partialorder %v2742_v24, 8.507059e+37 }
 0x242   : > { %v2748_v43 = vmul.f32 %v2716_v0, %v5698_v56  ;;  %v2751_v7 = vmul.f32 %v2716_v0, %v5705_v51  ;;  %v2719_v8 = vmul.f32 %v4881_v57, %v2701_v49  ;;  %vm2724_vm4 = vweird.f32 %v4881_v57 }
 0x243   : > { %vm2725_vm6 = vmor %vm2723_vm7, %vm2724_vm4  ;;  %v2754_v59 = vmul.f32 %v2716_v0, %v5713_v60 }
 0x244   : > { %v2720_v11 = vsub.f32 1.0, %v2719_v8  ;;  %4697 = vmatpush.msk.msra.mxu3 %vm1304_vm2, %v2748_v43  ;;  %4703 = vmatpush.msk.msra.mxu2 %vm1304_vm2, %v2751_v7  ;;  %v2769_v43 = vld [vmem:[%s6151_s18 + $0x8] sm:$0xff] }
 0x245   : > { %v4883_v55 = vpop.eup %4882  ;;  %4698 = vmatmul.msk.f32.vlgmr.msra.gmra.mxu3 %vm1297_vm3, %v2765_v9  ;;  %4704 = vmatmul.msk.f32.vlgmr.msra.gmra.mxu2 %vm1297_vm3, %v2765_v9 }
 0x246   : > { %v2721_v56 = vmul.f32 %v4881_v57, %v2720_v11  ;;  %v2734_v51 = vmul.f32 %v4883_v55, %v2702_v27  ;;  %vm2739_vm9 = vweird.f32 %v4883_v55  ;;  %3201 = vperm.xlu1 %4852, %v2769_v43  }
 0x247   : > { %vm2740_vm11 = vmor %vm2738_vm10, %vm2739_vm9 }
 0x248   : > { %v2722_v17 = vadd.f32 %v4881_v57, %v2721_v56  ;;  %v2735_v37 = vsub.f32 1.0, %v2734_v51 }
 0x24a   : > { %v2726_v22 = vsel %vm2725_vm6, %v4881_v57, %v2722_v17  ;;  %v2736_v12 = vmul.f32 %v4883_v55, %v2735_v37 }
 0x24b   : > { %v2731_v42 = vsel %vm2728_vm8, %v2730_v20, %v2726_v22 }
 0x24c   : > { %v2749_v50 = vmul.f32 %v2731_v42, %v5711_v25  ;;  %v2752_v34 = vmul.f32 %v2731_v42, %v5722_v53  ;;  %v2755_v36 = vmul.f32 %v2731_v42, %v5720_v63  ;;  %v2737_v13 = vadd.f32 %v4883_v55, %v2736_v12 }
 0x24e   : > { %v2741_v46 = vsel %vm2740_vm11, %v4883_v55, %v2737_v13  ;;  %4699 = vmatpush.msk.msra.mxu0 %vm1304_vm2, %v2749_v50  ;;  %4705 = vmatpush.msk.msrb.mxu3 %vm1304_vm2, %v2752_v34 }
 0x24f   : > { %v2746_v25 = vsel %vm2743_vm12, %v2745_v52, %v2741_v46  ;;  %4711 = vmatpush.msk.msrb.mxu2 %vm1304_vm2, %v2755_v36  ;;  %4706 = vmatmul.msk.f32.vlgmr.msrb.gmra.mxu3 %vm1297_vm3, %v2765_v9 }
 0x250   : > { %v2750_v63 = vmul.f32 %v2746_v25, %v5700_v44  ;;  %v2753_v53 = vmul.f32 %v2746_v25, %v5728_v26  ;;  %v2756_v30 = vmul.f32 %v2746_v25, %v5736_v39  ;;  %4712 = vmatmul.msk.f32.vlgmr.msrb.gmra.mxu2 %vm1297_vm3, %v2765_v9  ;;  %4700 = vmatmul.msk.f32.vlgmr.msra.gmra.mxu0 %vm1297_vm3, %v2765_v9  ;;  %v5784_v44 = vld [vmem:[%s6149_s16 + $0x8] sm:$0xff] }
 0x251   : > { %3196 = vperm.xlu1 %4852, %v2768_v16  }
 0x252   : > { %4701 = vmatpush.msk.msra.mxu1 %vm1304_vm2, %v2750_v63  ;;  %4707 = vmatpush.msk.msrb.mxu0 %vm1304_vm2, %v2753_v53  ;;  %v2766_v63 = vld [vmem:[%s6150_s17] sm:$0xff] }
 0x253   : > { %4713 = vmatpush.msk.msra.mxu3 %vm1304_vm2, %v2756_v30  ;;  %4702 = vmatmul.msk.f32.vlgmr.msra.gmra.mxu1 %vm1297_vm3, %v2765_v9 }
 0x254   : > { %4709 = vmatpush.msk.msrb.mxu1 %vm1304_vm2, %v2754_v59 }
 0x255   : > { %3139 = vmatpush.msrb.mxu3 %v2760_v40  ;;  %v2759_v40 = vmax.f32 %v5703_v58, 0.0 }
 0x257   : > { %3140 = vmatpush.msrb.mxu3 %v2757_v32 }
 0x258   : > { %4714 = vmatmul.msk.f32.vlgmr.msra.gmra.mxu3 %vm1297_vm3, %v2765_v9  ;;  %4708 = vmatmul.msk.f32.vlgmr.msrb.gmra.mxu0 %vm1297_vm3, %v2765_v9 }
 0x25b   : > { %4710 = vmatmul.msk.f32.vlgmr.msrb.gmra.mxu1 %vm1297_vm3, %v2765_v9 }
 0x260   : > { %4724 = vmatmul.msk.f32.vlgmr.msrb.gmra.mxu3 %vm2163_vm5, %v5777_v35 }
 0x268   : > { %4725 = vmatmul.msk.f32.gmra.mxu3 %vm2163_vm5, %v5784_v44 }
 0x2c8   : > { %v5788_v60 = vpop.f32.mrf.mxu3  ;;  %v2869_v26 = vpop.f32.mrf.mxu2 }
 0x2c9   : > { %v2981_v28 = vmul.f32 %v5788_v60, %v5788_v60  ;;  %v2984_v45 = vmul.f32 %v2869_v26, %v2869_v26 }
 0x2cb   : > { %v2987_v31 = vadd.f32 %v2984_v45, %v2981_v28 }
 0x2cd   : > { %v2820_v39 = vpop.f32.mrf.mxu0 }
 0x2ce   : > { %4732 = vmatpush.msk.msra.mxu3 %vm1304_vm2, %v2820_v39  ;;  %v2982_v1 = vmul.f32 %v2820_v39, %v2820_v39 }
 0x2cf   : > { %4733 = vmatmul.msk.f32.vlgmr.msra.gmra.mxu3 %vm1297_vm3, %v5793_v61 }
 0x2d0   : > { %4736 = vmatpush.msk.msrb.mxu3 %vm1304_vm2, %v2869_v26  ;;  %v5797_v18 = vpop.f32.mrf.mxu1 }
 0x2d1   : > { %v2983_v21 = vmul.f32 %v5797_v18, %v5797_v18 }
 0x2d2   : > { %v5801_v3 = vpop.f32.mrf.mxu3 }
 0x2d3   : > { %v2985_v14 = vmul.f32 %v5801_v3, %v5801_v3  ;;  %v2958_v54 = vpop.f32.mrf.mxu2 }
 0x2d4   : > { %v2991_v19 = vmul.f32 %v2958_v54, %v2958_v54  ;;  %4744 = vmatpush.msk.msra.mxu3 %vm1304_vm2, %v2958_v54  ;;  %v2758_v54 = vmax.f32 %v5691_v38, 0.0 }
 0x2d5   : > { %v2988_v48 = vadd.f32 %v2985_v14, %v2982_v1  ;;  %v5808_v49 = vpop.f32.mrf.mxu0  ;;  %v2761_v1 = vmax.f32 %v5696_v47, 0.0  ;;  %v2767_v47 = vld [vmem:[%s6150_s17 + $0x8] sm:$0xff] }
 0x2d6   : > { %v2986_v4 = vmul.f32 %v5808_v49, %v5808_v49 }
 0x2d7   : > { %v2994_v62 = vadd.f32 %v2991_v19, %v2988_v48  ;;  %4737 = vmatmul.msk.f32.vlgmr.msrb.gmra.mxu3 %vm1297_vm3, %v5793_v61 }
 0x2d8   : > { %v5812_v5 = vpop.f32.mrf.mxu1  ;;  %v2989_v6 = vadd.f32 %v2986_v4, %v2983_v21 }
 0x2d9   : > { %v2997_v27 = vmax.f32 %v2994_v62, 1e-08  ;;  %v2990_v29 = vmul.f32 %v5812_v5, %v5812_v5 }
 0x2db   : > { %v5820_v33 = vpop.f32.mrf.mxu3  ;;  %4884 = vrsqrt.f32 %v2997_v27  ;;  %v2993_v57 = vadd.f32 %v2990_v29, %v2987_v31  ;;  %vm3018_vm13 = vcmp.eq.f32.partialorder %v2997_v27, inf  ;;  %v3021_v13 = vand.u32 2147483648, %v2997_v27 }
 0x2dc   : > { %v2992_v0 = vmul.f32 %v5820_v33, %v5820_v33  ;;  %vm3020_vm14 = vcmp.eq.f32.partialorder %v2997_v27, 0.0 }
 0x2dd   : > { %v2996_v7 = vmax.f32 %v2993_v57, 1e-08 }
 0x2de   : > { %v2995_v8 = vadd.f32 %v2992_v0, %v2989_v6 }
 0x2df   : > { %4886 = vrsqrt.f32 %v2996_v7  ;;  %4745 = vmatmul.msk.f32.vlgmr.msra.gmra.mxu3 %vm1297_vm3, %v5793_v61  ;;  %vm3006_vm15 = vcmp.eq.f32.partialorder %v2996_v7, inf  ;;  %v3009_v59 = vand.u32 2147483648, %v2996_v7  ;;  %vm3008_vm1 = vcmp.eq.f32.partialorder %v2996_v7, 0.0 }
 0x2e0   : > { %v2998_v9 = vmax.f32 %v2995_v8, 1e-08 }
 0x2e1   : > { %v4885_v11 = vpop.eup %4884 }
 0x2e2   : > { %4888 = vrsqrt.f32 %v2998_v9  ;;  %v3012_v55 = vmul.f32 %v4885_v11, %v2997_v27  ;;  %vm3030_vm4 = vcmp.eq.f32.partialorder %v2998_v9, inf  ;;  %v3033_v39 = vand.u32 2147483648, %v2998_v9 }
 0x2e3   : > { %vm3032_vm7 = vcmp.eq.f32.partialorder %v2998_v9, 0.0  ;;  %v3142_v38 = vpop.f32.mrf.mxu3 }
 0x2e4   : > { %v3013_v15 = vmul.f32 %v4885_v11, %v3012_v55 }
 0x2e5   : > { %v4887_v56 = vpop.eup %4886 }
 0x2e6   : > { %v3014_v51 = vmul.f32 0.5, %v3013_v15  ;;  %v3000_v17 = vmul.f32 %v4887_v56, %v2996_v7 }
 0x2e8   : > { %v4889_v37 = vpop.eup %4888  ;;  %v3015_v20 = vsub.f32 1.5, %v3014_v51  ;;  %v3001_v10 = vmul.f32 %v4887_v56, %v3000_v17 }
 0x2e9   : > { %v3024_v22 = vmul.f32 %v4889_v37, %v2998_v9 }
 0x2ea   : > { %v3016_v12 = vmul.f32 %v4885_v11, %v3015_v20  ;;  %v3002_v24 = vmul.f32 0.5, %v3001_v10 }
 0x2eb   : > { %v3025_v42 = vmul.f32 %v4889_v37, %v3024_v22 }
 0x2ec   : > { %v3017_v50 = vmul.f32 %v3016_v12, %v2997_v27  ;;  %v3003_v34 = vsub.f32 1.5, %v3002_v24 }
 0x2ed   : > { %v3026_v36 = vmul.f32 0.5, %v3025_v42 }
 0x2ee   : > { %v3019_v52 = vsel %vm3018_vm13, %v2997_v27, %v3017_v50  ;;  %v3004_v41 = vmul.f32 %v4887_v56, %v3003_v34 }
 0x2ef   : > { %v3027_v46 = vsub.f32 1.5, %v3026_v36  ;;  %v3022_v25 = vsel %vm3020_vm14, %v3021_v13, %v3019_v52 }
 0x2f0   : > { %4718 = vmatpush.msk.msra.mxu1 %vm1304_vm2, %v3022_v25  ;;  %v3005_v53 = vmul.f32 %v3004_v41, %v2996_v7 }
 0x2f1   : > { %v3028_v30 = vmul.f32 %v4889_v37, %v3027_v46  ;;  %4719 = vmatmul.msk.f32.vlgmr.msra.gmra.mxu1 %vm1297_vm3, %v2766_v63 }
 0x2f2   : > { %3185 = vmatpush.msrb.mxu1 %v2762_v23  ;;  %v3007_v32 = vsel %vm3006_vm15, %v2996_v7, %v3005_v53 }
 0x2f3   : > { %v3029_v26 = vmul.f32 %v3028_v30, %v2998_v9  ;;  %v3010_v2 = vsel %vm3008_vm1, %v3009_v59, %v3007_v32 }
 0x2f4   : > { %3186 = vmatpush.msrb.mxu1 %v2759_v40  ;;  %4715 = vmatpush.msk.msra.mxu0 %vm1304_vm2, %v3010_v2 }
 0x2f5   : > { %v3031_v58 = vsel %vm3030_vm4, %v2998_v9, %v3029_v26  ;;  %4716 = vmatmul.msk.f32.vlgmr.msra.gmra.mxu0 %vm1297_vm3, %v2766_v63 }
 0x2f6   : > { %4740 = vmatpush.msk.msra.mxu1 %vm1304_vm2, %v5808_v49  ;;  %v3034_v14 = vsel %vm3032_vm7, %v3033_v39, %v3031_v58  ;;  %3162 = vmatpush.msrb.mxu0 %v2761_v1 }
 0x2f7   : > { %4721 = vmatpush.msk.msra.mxu2 %vm1304_vm2, %v3034_v14 }
 0x2f8   : > { %4722 = vmatmul.msk.f32.vlgmr.msra.gmra.mxu2 %vm1297_vm3, %v2766_v63  ;;  %3163 = vmatpush.msrb.mxu0 %v2758_v54 }
 0x2f9   : > { %4730 = vmatpush.msk.msrb.mxu2 %vm1304_vm2, %v5788_v60  ;;  %4720 = vmatmul.msk.f32.gmra.mxu1 %vm1297_vm3, %v2767_v47 }
 0x2fa   : > { %4738 = vmatpush.msk.msra.mxu0 %vm1304_vm2, %v5801_v3  ;;  %v5885_v3 = vpop.permute.xlu1 %3201 }
 0x2fb   : > { %4734 = vmatpush.msk.msra.mxu2 %vm1304_vm2, %v5797_v18 }
 0x2fd   : > { %4717 = vmatmul.msk.f32.gmra.mxu0 %vm1297_vm3, %v2767_v47 }
 0x300   : > { %4723 = vmatmul.msk.f32.gmra.mxu2 %vm1297_vm3, %v2767_v47 }
 0x301   : > { %4728 = vmatmul.msk.f32.vlgmr.msrb.gmra.mxu1 %vm2163_vm5, %v5777_v35 }
 0x305   : > { %4726 = vmatmul.msk.f32.vlgmr.msrb.gmra.mxu0 %vm2163_vm5, %v5777_v35 }
 0x306   : > { %4746 = vmatpush.msk.msrb.mxu0 %vm1304_vm2, %v5820_v33 }
 0x308   : > { %4731 = vmatmul.msk.f32.vlgmr.msrb.gmra.mxu2 %vm1297_vm3, %v5793_v61 }
 0x309   : > { %4742 = vmatpush.msk.msrb.mxu2 %vm1304_vm2, %v5812_v5  ;;  %4729 = vmatmul.msk.f32.gmra.mxu1 %vm2163_vm5, %v5784_v44  ;;  %v5891_v5 = vpop.permute.xlu1 %3196 }
 0x30d   : > { %4727 = vmatmul.msk.f32.gmra.mxu0 %vm2163_vm5, %v5784_v44  ;;  %v3145_v44 = vpop.f32.mrf.mxu3 }
 0x310   : > { %4735 = vmatmul.msk.f32.vlgmr.msra.gmra.mxu2 %vm1297_vm3, %v5793_v61 }
 0x311   : > { %4741 = vmatmul.msk.f32.vlgmr.msra.gmra.mxu1 %vm1297_vm3, %v5793_v61 }
 0x315   : > { %4739 = vmatmul.msk.f32.vlgmr.msra.gmra.mxu0 %vm1297_vm3, %v5793_v61 }
 0x318   : > { %4743 = vmatmul.msk.f32.vlgmr.msrb.gmra.mxu2 %vm1297_vm3, %v5793_v61 }
 0x31d   : > { %4747 = vmatmul.msk.f32.vlgmr.msrb.gmra.mxu0 %vm1297_vm3, %v5793_v61 }
 0x352   : > { %v5889_v49 = vpop.f32.mrf.mxu3 }
 0x353   : > { %v3421_v55 = vmul.f32 %v5889_v49, %v5889_v49 }
 0x35a   : > { %v5899_v33 = vpop.f32.mrf.mxu3 }
 0x35b   : > { %v3423_v24 = vmul.f32 %v5899_v33, %v5899_v33 }
 0x362   : > { %v5909_v11 = vpop.f32.mrf.mxu3 }
 0x363   : > { %v3430_v51 = vmul.f32 %v5909_v11, %v5909_v11 }
 0x36e   : > { %v3090_v35 = vpop.f32.mrf.mxu1 }
 0x372   : > { %v3067_v60 = vpop.f32.mrf.mxu0 }
 0x373   : > { %v5883_v18 = vadd.f32 %v3142_v38, %v3067_v60 }
 0x376   : > { %v3093_v19 = vpop.f32.mrf.mxu1 }
 0x37a   : > { %v3070_v28 = vpop.f32.mrf.mxu0 }
 0x37b   : > { %v3113_v45 = vpop.f32.mrf.mxu2  ;;  %v5887_v48 = vadd.f32 %v3145_v44, %v3070_v28 }
 0x37e   : > { %v3188_v62 = vpop.f32.mrf.mxu1 }
 0x37f   : > { %v3189_v4 = vadd.f32 %v3188_v62, %v3113_v45 }
 0x381   : > { %v5894_v21 = vadd.f32 %v5891_v5, %v3189_v4 }
 0x382   : > { %v3165_v31 = vpop.f32.mrf.mxu0 }
 0x383   : > { %v3116_v61 = vpop.f32.mrf.mxu2  ;;  %v3166_v27 = vadd.f32 %v3165_v31, %v3090_v35 }
 0x385   : > { %v5897_v29 = vadd.f32 %v5891_v5, %v3166_v27 }
 0x386   : > { %v3191_v6 = vpop.f32.mrf.mxu1 }
 0x387   : > { %v3192_v57 = vadd.f32 %v3191_v6, %v3116_v61 }
 0x389   : > { %v5904_v7 = vadd.f32 %v5885_v3, %v3192_v57 }
 0x38a   : > { %v3168_v0 = vpop.f32.mrf.mxu0 }
 0x38b   : > { %v5901_v43 = vpop.f32.mrf.mxu2  ;;  %v3169_v8 = vadd.f32 %v3168_v0, %v3093_v19 }
 0x38c   : > { %v3420_v12 = vmul.f32 %v5901_v43, %v5901_v43 }
 0x38d   : > { %v5907_v9 = vadd.f32 %v5885_v3, %v3169_v8 }
 0x38e   : > { %v5921_v17 = vpop.f32.mrf.mxu1  ;;  %v3426_v13 = vadd.f32 %v3423_v24, %v3420_v12 }
 0x38f   : > { %v3425_v10 = vmul.f32 %v5921_v17, %v5921_v17 }
 0x392   : > { %v5915_v16 = vpop.f32.mrf.mxu0 }
 0x393   : > { %v5913_v15 = vpop.f32.mrf.mxu2  ;;  %v3424_v56 = vmul.f32 %v5915_v16, %v5915_v16 }
 0x394   : > { %v3422_v20 = vmul.f32 %v5913_v15, %v5913_v15 }
 0x395   : > { %v3427_v37 = vadd.f32 %v3424_v56, %v3421_v55 }
 0x396   : > { %v3428_v50 = vadd.f32 %v3425_v10, %v3422_v20 }
 0x397   : > { %v3433_v22 = vadd.f32 %v3430_v51, %v3427_v37 }
 0x399   : > { %v3436_v42 = vmax.f32 %v3433_v22, 1e-08 }
 0x39a   : > { %v5933_v36 = vpop.f32.mrf.mxu0 }
 0x39b   : > { %v5931_v34 = vpop.f32.mrf.mxu2  ;;  %4890 = vrsqrt.f32 %v3436_v42  ;;  %v3431_v41 = vmul.f32 %v5933_v36, %v5933_v36  ;;  %vm3457_vm6 = vcmp.eq.f32.partialorder %v3436_v42, inf  ;;  %v3460_v38 = vand.u32 2147483648, %v3436_v42 }
 0x39c   : > { %v3429_v52 = vmul.f32 %v5931_v34, %v5931_v34  ;;  %vm3459_vm8 = vcmp.eq.f32.partialorder %v3436_v42, 0.0 }
 0x39d   : > { %v3434_v23 = vadd.f32 %v3431_v41, %v3428_v50 }
 0x39e   : > { %v3432_v46 = vadd.f32 %v3429_v52, %v3426_v13 }
 0x39f   : > { %v3437_v63 = vmax.f32 %v3434_v23, 1e-08 }
 0x3a0   : > { %v3435_v25 = vmax.f32 %v3432_v46, 1e-08 }
 0x3a1   : > { %v4891_v53 = vpop.eup %4890  ;;  %vm3469_vm11 = vcmp.eq.f32.partialorder %v3437_v63, inf  ;;  %v3472_v0 = vand.u32 2147483648, %v3437_v63  ;;  %vm3471_vm12 = vcmp.eq.f32.partialorder %v3437_v63, 0.0 }
 0x3a2   : > { %v3451_v30 = vmul.f32 %v4891_v53, %v3436_v42  ;;  %4892 = vrsqrt.f32 %v3435_v25  ;;  %vm3445_vm9 = vcmp.eq.f32.partialorder %v3435_v25, inf  ;;  %v3448_v27 = vand.u32 2147483648, %v3435_v25 }
 0x3a3   : > { %4894 = vrsqrt.f32 %v3437_v63  ;;  %vm3447_vm10 = vcmp.eq.f32.partialorder %v3435_v25, 0.0 }
 0x3a4   : > { %v3452_v40 = vmul.f32 %v4891_v53, %v3451_v30 }
 0x3a6   : > { %v3453_v59 = vmul.f32 0.5, %v3452_v40 }
 0x3a8   : > { %v4893_v32 = vpop.eup %4892  ;;  %v3454_v26 = vsub.f32 1.5, %v3453_v59 }
 0x3a9   : > { %v4895_v2 = vpop.eup %4894  ;;  %v3439_v39 = vmul.f32 %v4893_v32, %v3435_v25 }
 0x3aa   : > { %v3455_v1 = vmul.f32 %v4891_v53, %v3454_v26  ;;  %v3463_v58 = vmul.f32 %v4895_v2, %v3437_v63 }
 0x3ab   : > { %v3440_v14 = vmul.f32 %v4893_v32, %v3439_v39 }
 0x3ac   : > { %v3456_v54 = vmul.f32 %v3455_v1, %v3436_v42  ;;  %v3464_v47 = vmul.f32 %v4895_v2, %v3463_v58 }
 0x3ad   : > { %v3441_v35 = vmul.f32 0.5, %v3440_v14  ;;  %v3548_v14 = vld [vmem:[%s6153_s20] sm:$0xf] }
 0x3ae   : > { %v3458_v60 = vsel %vm3457_vm6, %v3436_v42, %v3456_v54  ;;  %v3465_v44 = vmul.f32 0.5, %v3464_v47 }
 0x3af   : > { %v3461_v19 = vsel %vm3459_vm8, %v3460_v38, %v3458_v60  ;;  %v3442_v28 = vsub.f32 1.5, %v3441_v35 }
 0x3b0   : > { %v4749_v45 = vmul.f32 -1.442695, %v3461_v19  ;;  %v3466_v62 = vsub.f32 1.5, %v3465_v44 }
 0x3b1   : > { %v3443_v4 = vmul.f32 %v4893_v32, %v3442_v28 }
 0x3b2   : > { %4896 = vpow2.f32 %v4749_v45  ;;  %v3467_v61 = vmul.f32 %v4895_v2, %v3466_v62 }
 0x3b3   : > { %v3444_v31 = vmul.f32 %v3443_v4, %v3435_v25 }
 0x3b4   : > { %v3468_v6 = vmul.f32 %v3467_v61, %v3437_v63 }
 0x3b5   : > { %v3446_v57 = vsel %vm3445_vm9, %v3435_v25, %v3444_v31 }
 0x3b6   : > { %v3449_v8 = vsel %vm3447_vm10, %v3448_v27, %v3446_v57  ;;  %v3470_v55 = vsel %vm3469_vm11, %v3437_v63, %v3468_v6 }
 0x3b7   : > { %v4748_v56 = vmul.f32 -1.442695, %v3449_v8  ;;  %v3473_v51 = vsel %vm3471_vm12, %v3472_v0, %v3470_v55 }
 0x3b8   : > { %v4897_v37 = vpop.eup %4896  ;;  %v4750_v20 = vmul.f32 -1.442695, %v3473_v51 }
 0x3b9   : > { %v3484_v10 = vadd.f32 1.0, %v4897_v37  ;;  %4898 = vpow2.f32 %v4748_v56 }
 0x3ba   : > { %4900 = vpow2.f32 %v4750_v20 }
 0x3bb   : > { %4902 = vrcp.f32 %v3484_v10  ;;  %v3512_v41 = vand.u32 2147483648, %v3484_v10  ;;  %v3510_v23 = vand.u32 2147483647, %v3484_v10  ;;  %vm3506_vm14 = vweird.f32 %v3484_v10 }
 0x3bd   : > { %v3513_v30 = vor.u32 1.1754944e-38, %v3512_v41  ;;  %vm3511_vm1 = vcmp.eq.f32.partialorder %v3510_v23, 8.507059e+37 }
 0x3bf   : > { %v4899_v22 = vpop.eup %4898 }
 0x3c0   : > { %v4901_v12 = vpop.eup %4900  ;;  %v3483_v24 = vadd.f32 1.0, %v4899_v22 }
 0x3c1   : > { %v4903_v42 = vpop.eup %4902  ;;  %v3485_v50 = vadd.f32 1.0, %v4901_v12 }
 0x3c2   : > { %v3502_v13 = vmul.f32 %v4903_v42, %v3484_v10  ;;  %4904 = vrcp.f32 %v3483_v24  ;;  %vm3507_vm13 = vweird.f32 %v4903_v42  ;;  %v3497_v1 = vand.u32 2147483648, %v3483_v24 }
 0x3c3   : > { %4906 = vrcp.f32 %v3485_v50  ;;  %vm3508_vm15 = vmor %vm3506_vm14, %vm3507_vm13  ;;  %v3495_v47 = vand.u32 2147483647, %v3483_v24  ;;  %v3527_v38 = vand.u32 2147483648, %v3485_v50  ;;  %v3525_v60 = vand.u32 2147483647, %v3485_v50 }
 0x3c4   : > { %v3503_v52 = vsub.f32 1.0, %v3502_v13  ;;  %vm3491_vm6 = vweird.f32 %v3483_v24  ;;  %vm3521_vm9 = vweird.f32 %v3485_v50 }
 0x3c5   : > { %vm3496_vm10 = vcmp.eq.f32.partialorder %v3495_v47, 8.507059e+37  ;;  %v3528_v45 = vor.u32 1.1754944e-38, %v3527_v38  ;;  %vm3526_vm12 = vcmp.eq.f32.partialorder %v3525_v60, 8.507059e+37 }
 0x3c6   : > { %v3504_v46 = vmul.f32 %v4903_v42, %v3503_v52 }
 0x3c8   : > { %v4905_v25 = vpop.eup %4904  ;;  %v3505_v63 = vadd.f32 %v4903_v42, %v3504_v46 }
 0x3c9   : > { %v4907_v53 = vpop.eup %4906  ;;  %v3487_v40 = vmul.f32 %v4905_v25, %v3483_v24  ;;  %vm3492_vm4 = vweird.f32 %v4905_v25 }
 0x3ca   : > { %v3509_v59 = vsel %vm3508_vm15, %v4903_v42, %v3505_v63  ;;  %v3517_v32 = vmul.f32 %v4907_v53, %v3485_v50  ;;  %vm3522_vm7 = vweird.f32 %v4907_v53  ;;  %vm3493_vm8 = vmor %vm3491_vm6, %vm3492_vm4 }
 0x3cb   : > { %v3514_v26 = vsel %vm3511_vm1, %v3513_v30, %v3509_v59  ;;  %v3488_v2 = vsub.f32 1.0, %v3487_v40  ;;  %vm3523_vm11 = vmor %vm3521_vm9, %vm3522_vm7 }
 0x3cc   : > { %v3532_v39 = vmul.f32 %v3514_v26, %v5889_v49  ;;  %v3518_v58 = vsub.f32 1.0, %v3517_v32  ;;  %v3498_v49 = vor.u32 1.1754944e-38, %v3497_v1  ;;  %v3535_v8 = vmul.f32 %v3514_v26, %v5915_v16 }
 0x3cd   : > { %v3489_v54 = vmul.f32 %v4905_v25, %v3488_v2 }
 0x3ce   : > { %v3519_v35 = vmul.f32 %v4907_v53, %v3518_v58  ;;  %4753 = vmatpush.msk.msra.mxu2 %vm1304_vm2, %v3532_v39 }
 0x3cf   : > { %v3490_v44 = vadd.f32 %v4905_v25, %v3489_v54  ;;  %4754 = vmatmul.msk.f32.vlgmr.msra.gmra.mxu2 %vm1297_vm3, %v3548_v14 }
 0x3d0   : > { %v3520_v19 = vadd.f32 %v4907_v53, %v3519_v35 }
 0x3d1   : > { %v3494_v28 = vsel %vm3493_vm8, %v4905_v25, %v3490_v44 }
 0x3d2   : > { %v3499_v62 = vsel %vm3496_vm10, %v3498_v49, %v3494_v28  ;;  %v3524_v4 = vsel %vm3523_vm11, %v4907_v53, %v3520_v19 }
 0x3d3   : > { %v3531_v61 = vmul.f32 %v3499_v62, %v5901_v43  ;;  %v3534_v31 = vmul.f32 %v3499_v62, %v5899_v33  ;;  %v3529_v27 = vsel %vm3526_vm12, %v3528_v45, %v3524_v4  ;;  %v3537_v6 = vmul.f32 %v3499_v62, %v5931_v34 }
 0x3d4   : > { %v3533_v57 = vmul.f32 %v3529_v27, %v5913_v15  ;;  %v3536_v0 = vmul.f32 %v3529_v27, %v5921_v17  ;;  %v3538_v43 = vmul.f32 %v3514_v26, %v5909_v11  ;;  %v3539_v33 = vmul.f32 %v3529_v27, %v5933_v36 }
 0x3d5   : > { %4751 = vmatpush.msk.msrb.mxu1 %vm1304_vm2, %v3531_v61  ;;  %4757 = vmatpush.msk.msra.mxu0 %vm1304_vm2, %v3534_v31  ;;  %v3207_v15 = vadd.f32 %v5885_v3, %v5887_v48  ;;  %v3204_v11 = vadd.f32 %v5891_v5, %v5883_v18  ;;  %v5976_v3 = vld [vmem:[%s6154_s21] sm:$0xff]  ;;  %v5983_v18 = vld [vmem:[%s6154_s21 + $0x8] sm:$0xff] }
 0x3d6   : > { %4755 = vmatpush.msk.msrb.mxu3 %vm1304_vm2, %v3533_v57  ;;  %4761 = vmatpush.msk.msrb.mxu2 %vm1304_vm2, %v3536_v0  ;;  %v5990_v48 = vld [vmem:[%s6157_s24] sm:$0xf] }
 0x3d7   : > { %4752 = vmatmul.msk.f32.vlgmr.msrb.gmra.mxu1 %vm1297_vm3, %v3548_v14  ;;  %4756 = vmatmul.msk.f32.vlgmr.msrb.gmra.mxu3 %vm1297_vm3, %v3548_v14  ;;  %v3543_v16 = vmax.f32 %v3207_v15, 0.0  ;;  %v3540_v17 = vmax.f32 %v3204_v11, 0.0  ;;  %v3542_v15 = vmax.f32 %v5894_v21, 0.0 }
 0x3d8   : > { %4759 = vmatpush.msk.msra.mxu1 %vm1304_vm2, %v3535_v8  ;;  %4763 = vmatpush.msk.msra.mxu3 %vm1304_vm2, %v3537_v6  ;;  %v3545_v6 = vmax.f32 %v5904_v7, 0.0  ;;  %v3549_v8 = vld [vmem:[%s6155_s22] sm:$0xff] }
 0x3d9   : > { %4765 = vmatpush.msk.msrb.mxu0 %vm1304_vm2, %v3538_v43  ;;  %4762 = vmatmul.msk.f32.vlgmr.msrb.gmra.mxu2 %vm1297_vm3, %v3548_v14 }
 0x3da   : > { %4767 = vmatpush.msk.msrb.mxu1 %vm1304_vm2, %v3539_v33  ;;  %4758 = vmatmul.msk.f32.vlgmr.msra.gmra.mxu0 %vm1297_vm3, %v3548_v14 }
 0x3df   : > { %4760 = vmatmul.msk.f32.vlgmr.msra.gmra.mxu1 %vm1297_vm3, %v3548_v14  ;;  %4764 = vmatmul.msk.f32.vlgmr.msra.gmra.mxu3 %vm1297_vm3, %v3548_v14 }
 0x3e0   : > { %3922 = vmatpush.msra.mxu1 %v3543_v16 }
 0x3e2   : > { %4766 = vmatmul.msk.f32.vlgmr.msrb.gmra.mxu0 %vm1297_vm3, %v3548_v14  ;;  %3923 = vmatpush.msra.mxu1 %v3540_v17 }
 0x3e7   : > { %4768 = vmatmul.msk.f32.vlgmr.msrb.gmra.mxu1 %vm1297_vm3, %v3548_v14 }
 0x3ef   : > { %4778 = vmatmul.msk.f32.vlgmr.msra.gmra.mxu1 %vm2163_vm5, %v5976_v3 }
 0x3f7   : > { %4779 = vmatmul.msk.f32.gmra.mxu1 %vm2163_vm5, %v5983_v18 }
 0x452   : > { %v3603_v5 = vpop.f32.mrf.mxu2 }
 0x453   : > { %4786 = vmatpush.msk.msrb.mxu1 %vm1304_vm2, %v3603_v5  ;;  %v3765_v56 = vmul.f32 %v3603_v5, %v3603_v5  ;;  %v3544_v5 = vmax.f32 %v5907_v9, 0.0  ;;  %v3550_v9 = vld [vmem:[%s6155_s22 + $0x8] sm:$0xff] }
 0x454   : > { %v5993_v34 = vpop.f32.mrf.mxu1  ;;  %4787 = vmatmul.msk.f32.vlgmr.msrb.gmra.mxu1 %vm1297_vm3, %v5990_v48 }
 0x455   : > { %v3764_v37 = vmul.f32 %v5993_v34, %v5993_v34 }
 0x457   : > { %v3652_v36 = vpop.f32.mrf.mxu0 }
 0x458   : > { %4790 = vmatpush.msk.msra.mxu1 %vm1304_vm2, %v3652_v36  ;;  %v3767_v20 = vmul.f32 %v3652_v36, %v3652_v36 }
 0x45a   : > { %v5998_v55 = vpop.f32.mrf.mxu3  ;;  %v3770_v50 = vadd.f32 %v3767_v20, %v3764_v37 }
 0x45b   : > { %v3766_v46 = vmul.f32 %v5998_v55, %v5998_v55 }
 0x45c   : > { %v6000_v51 = vpop.f32.mrf.mxu1  ;;  %4791 = vmatmul.msk.f32.vlgmr.msra.gmra.mxu1 %vm1297_vm3, %v5990_v48  ;;  %v6008_v22 = vpop.f32.mrf.mxu2 }
 0x45d   : > { %v3768_v10 = vmul.f32 %v6000_v51, %v6000_v51  ;;  %v3769_v13 = vmul.f32 %v6008_v22, %v6008_v22 }
 0x45f   : > { %v3771_v12 = vadd.f32 %v3768_v10, %v3765_v56  ;;  %v3741_v24 = vpop.f32.mrf.mxu0  ;;  %v3772_v53 = vadd.f32 %v3769_v13, %v3766_v46  ;;  %v3541_v56 = vmax.f32 %v5897_v29, 0.0  ;;  %v3551_v29 = vld [vmem:[%s6156_s23] sm:$0xff] }
 0x460   : > { %v3774_v42 = vmul.f32 %v3741_v24, %v3741_v24  ;;  %4798 = vmatpush.msk.msrb.mxu1 %vm1304_vm2, %v3741_v24  ;;  %3979 = vperm.xlu2 %4853, %v3551_v29  }
 0x462   : > { %v3777_v52 = vadd.f32 %v3774_v42, %v3771_v12  ;;  %v6013_v41 = vpop.f32.mrf.mxu3 }
 0x463   : > { %v3773_v23 = vmul.f32 %v6013_v41, %v6013_v41 }
 0x464   : > { %v3780_v25 = vmax.f32 %v3777_v52, 1e-08  ;;  %v6019_v63 = vpop.f32.mrf.mxu1  ;;  %4799 = vmatmul.msk.f32.vlgmr.msrb.gmra.mxu1 %vm1297_vm3, %v5990_v48 }
 0x465   : > { %v3776_v30 = vadd.f32 %v3773_v23, %v3770_v50  ;;  %v3775_v40 = vmul.f32 %v6019_v63, %v6019_v63 }
 0x466   : > { %4908 = vrsqrt.f32 %v3780_v25  ;;  %vm3801_vm13 = vcmp.eq.f32.partialorder %v3780_v25, inf  ;;  %v3804_v4 = vand.u32 2147483648, %v3780_v25  ;;  %vm3803_vm14 = vcmp.eq.f32.partialorder %v3780_v25, 0.0 }
 0x467   : > { %v3779_v59 = vmax.f32 %v3776_v30, 1e-08  ;;  %v3778_v32 = vadd.f32 %v3775_v40, %v3772_v53 }
 0x469   : > { %4910 = vrsqrt.f32 %v3779_v59  ;;  %v3781_v26 = vmax.f32 %v3778_v32, 1e-08  ;;  %vm3789_vm15 = vcmp.eq.f32.partialorder %v3779_v59, inf  ;;  %v3792_v33 = vand.u32 2147483648, %v3779_v59 }
 0x46a   : > { %vm3791_vm1 = vcmp.eq.f32.partialorder %v3779_v59, 0.0 }
 0x46b   : > { %4912 = vrsqrt.f32 %v3781_v26  ;;  %vm3813_vm4 = vcmp.eq.f32.partialorder %v3781_v26, inf  ;;  %v3816_v7 = vand.u32 2147483648, %v3781_v26  ;;  %vm3815_vm7 = vcmp.eq.f32.partialorder %v3781_v26, 0.0 }
 0x46c   : > { %v4909_v2 = vpop.eup %4908 }
 0x46d   : > { %v3795_v39 = vmul.f32 %v4909_v2, %v3780_v25 }
 0x46f   : > { %v4911_v1 = vpop.eup %4910  ;;  %v3796_v58 = vmul.f32 %v4909_v2, %v3795_v39 }
 0x470   : > { %v3783_v14 = vmul.f32 %v4911_v1, %v3779_v59 }
 0x471   : > { %v4913_v54 = vpop.eup %4912  ;;  %v3797_v47 = vmul.f32 0.5, %v3796_v58 }
 0x472   : > { %v3784_v38 = vmul.f32 %v4911_v1, %v3783_v14  ;;  %v3807_v35 = vmul.f32 %v4913_v54, %v3781_v26 }
 0x473   : > { %v3798_v60 = vsub.f32 1.5, %v3797_v47 }
 0x474   : > { %v3785_v44 = vmul.f32 0.5, %v3784_v38  ;;  %v3808_v49 = vmul.f32 %v4913_v54, %v3807_v35 }
 0x475   : > { %v3799_v19 = vmul.f32 %v4909_v2, %v3798_v60 }
 0x476   : > { %v3786_v28 = vsub.f32 1.5, %v3785_v44  ;;  %v3809_v45 = vmul.f32 0.5, %v3808_v49 }
 0x477   : > { %v3800_v62 = vmul.f32 %v3799_v19, %v3780_v25 }
 0x478   : > { %v3787_v61 = vmul.f32 %v4911_v1, %v3786_v28  ;;  %v3810_v31 = vsub.f32 1.5, %v3809_v45 }
 0x479   : > { %v3802_v27 = vsel %vm3801_vm13, %v3780_v25, %v3800_v62 }
 0x47a   : > { %v3805_v57 = vsel %vm3803_vm14, %v3804_v4, %v3802_v27  ;;  %v3788_v0 = vmul.f32 %v3787_v61, %v3779_v59  ;;  %v3811_v43 = vmul.f32 %v4913_v54, %v3810_v31 }
 0x47b   : > { %4772 = vmatpush.msk.msrb.mxu3 %vm1304_vm2, %v3805_v57 }
 0x47c   : > { %v3790_v11 = vsel %vm3789_vm15, %v3779_v59, %v3788_v0  ;;  %v3812_v16 = vmul.f32 %v3811_v43, %v3781_v26  ;;  %4773 = vmatmul.msk.f32.vlgmr.msrb.gmra.mxu3 %vm1297_vm3, %v3549_v8 }
 0x47d   : > { %3968 = vmatpush.msra.mxu3 %v3545_v6  ;;  %v3793_v17 = vsel %vm3791_vm1, %v3792_v33, %v3790_v11 }
 0x47e   : > { %4769 = vmatpush.msk.msra.mxu2 %vm1304_vm2, %v3793_v17  ;;  %v3814_v36 = vsel %vm3813_vm4, %v3781_v26, %v3812_v16 }
 0x47f   : > { %3969 = vmatpush.msra.mxu3 %v3542_v15  ;;  %4770 = vmatmul.msk.f32.vlgmr.msra.gmra.mxu2 %vm1297_vm3, %v3549_v8  ;;  %v3817_v21 = vsel %vm3815_vm7, %v3816_v7, %v3814_v36 }
 0x480   : > { %3945 = vmatpush.msrb.mxu2 %v3544_v5  ;;  %4775 = vmatpush.msk.msra.mxu0 %vm1304_vm2, %v3817_v21 }
 0x481   : > { %4794 = vmatpush.msk.msrb.mxu3 %vm1304_vm2, %v6008_v22  ;;  %4776 = vmatmul.msk.f32.vlgmr.msra.gmra.mxu0 %vm1297_vm3, %v3549_v8 }
 0x482   : > { %3946 = vmatpush.msrb.mxu2 %v3541_v56  ;;  %4784 = vmatpush.msk.msrb.mxu0 %vm1304_vm2, %v5993_v34  ;;  %v3552_v34 = vld [vmem:[%s6156_s23 + $0x8] sm:$0xff] }
 0x483   : > { %3984 = vperm.xlu2 %4853, %v3552_v34  }
 0x484   : > { %4788 = vmatpush.msk.msra.mxu0 %vm1304_vm2, %v5998_v55  ;;  %4792 = vmatpush.msk.msra.mxu2 %vm1304_vm2, %v6000_v51 }
 0x485   : > { %4774 = vmatmul.msk.f32.gmra.mxu3 %vm1297_vm3, %v3550_v9 }
 0x487   : > { %4771 = vmatmul.msk.f32.gmra.mxu2 %vm1297_vm3, %v3550_v9 }
 0x489   : > { %4777 = vmatmul.msk.f32.gmra.mxu0 %vm1297_vm3, %v3550_v9 }
 0x48d   : > { %4782 = vmatmul.msk.f32.vlgmr.msra.gmra.mxu3 %vm2163_vm5, %v5976_v3 }
 0x48f   : > { %4780 = vmatmul.msk.f32.vlgmr.msrb.gmra.mxu2 %vm2163_vm5, %v5976_v3  ;;  %v3925_v3 = vpop.f32.mrf.mxu1 }
 0x490   : > { %4800 = vmatpush.msk.msrb.mxu2 %vm1304_vm2, %v6019_v63 }
 0x491   : > { %4785 = vmatmul.msk.f32.vlgmr.msrb.gmra.mxu0 %vm1297_vm3, %v5990_v48 }
 0x492   : > { %4796 = vmatpush.msk.msrb.mxu0 %vm1304_vm2, %v6013_v41 }
 0x495   : > { %4783 = vmatmul.msk.f32.gmra.mxu3 %vm2163_vm5, %v5983_v18 }
 0x497   : > { %4781 = vmatmul.msk.f32.gmra.mxu2 %vm2163_vm5, %v5983_v18  ;;  %v3928_v20 = vpop.f32.mrf.mxu1 }
 0x499   : > { %4789 = vmatmul.msk.f32.vlgmr.msra.gmra.mxu0 %vm1297_vm3, %v5990_v48 }
 0x49d   : > { %4795 = vmatmul.msk.f32.vlgmr.msrb.gmra.mxu3 %vm1297_vm3, %v5990_v48 }
 0x49f   : > { %4793 = vmatmul.msk.f32.vlgmr.msra.gmra.mxu2 %vm1297_vm3, %v5990_v48 }
 0x4a1   : > { %4797 = vmatmul.msk.f32.vlgmr.msrb.gmra.mxu0 %vm1297_vm3, %v5990_v48 }
 0x4a7   : > { %4801 = vmatmul.msk.f32.vlgmr.msrb.gmra.mxu2 %vm1297_vm3, %v5990_v48  ;;  %vm4221_vm3 = vcmask 1045508  }
 0x4ba   : > { %v3980_v42 = vpop.permute.xlu2 %3979 }
 0x4d1   : > { %v4042_v24 = vpop.f32.mrf.mxu1 }
 0x4d9   : > { %v4091_v38 = vpop.f32.mrf.mxu1 }
 0x4dd   : > { %v3985_v39 = vpop.permute.xlu2 %3984 }
 0x4e1   : > { %v4180_v8 = vpop.f32.mrf.mxu1 }
 0x4fe   : > { %v3896_v55 = vpop.f32.mrf.mxu0 }
 0x4ff   : > { %v3873_v51 = vpop.f32.mrf.mxu3 }
 0x502   : > { %v3850_v37 = vpop.f32.mrf.mxu2 }
 0x503   : > { %v3926_v13 = vadd.f32 %v3925_v3, %v3850_v37 }
 0x505   : > { %v3987_v48 = vadd.f32 %v3980_v42, %v3926_v13 }
 0x506   : > { %v3899_v18 = vpop.f32.mrf.mxu0 }
 0x508   : > { %v3876_v10 = vpop.f32.mrf.mxu3 }
 0x50a   : > { %v3853_v22 = vpop.f32.mrf.mxu2 }
 0x50b   : > { %v3929_v26 = vadd.f32 %v3928_v20, %v3853_v22 }
 0x50d   : > { %v3990_v19 = vadd.f32 %v3985_v39, %v3929_v26 }
 0x50e   : > { %v4022_v12 = vpop.f32.mrf.mxu0 }
 0x50f   : > { %v4211_v41 = vpack.c.bf16 %v4042_v24, %v4022_v12 }
 0x510   : > { %v3971_v50 = vpop.f32.mrf.mxu3 }
 0x511   : > { %v3972_v52 = vadd.f32 %v3971_v50, %v3896_v55  ;;  %v4215_v30 = vrot.slane %v4211_v41, 2 }
 0x512   : > { %v3948_v46 = vpop.f32.mrf.mxu2 }
 0x513   : > { %v3949_v23 = vadd.f32 %v3948_v46, %v3873_v51  ;;  %v3989_v25 = vadd.f32 %v3980_v42, %v3972_v52  ;;  %v4220_v58 = vsel %vm1213_vm0, %v4211_v41, %v4215_v30 }
 0x515   : > { %v3988_v63 = vadd.f32 %v3980_v42, %v3949_v23  ;;  %v4204_v53 = vpack.c.bf16 %v3989_v25, %v3989_v25 }
 0x516   : > { %v4062_v40 = vpop.f32.mrf.mxu0 }
 0x517   : > { %v4203_v59 = vpack.c.bf16 %v3988_v63, %v3987_v48  ;;  %4208 = vst [vmem:[%s6083_s0 + $0x8] sm:$0xf] %v4204_v53  ;;  %v4212_v32 = vpack.c.bf16 %v4062_v40, %v4062_v40 }
 0x518   : > { %v3974_v2 = vpop.f32.mrf.mxu3 }
 0x519   : > { %4207 = vst [vmem:[%s6083_s0] sm:$0xff] %v4203_v59  ;;  %v3975_v1 = vadd.f32 %v3974_v2, %v3899_v18  ;;  %v4216_v14 = vrot.slane %v4212_v32, 4  ;;  %v4217_v54 = vrot.slane %v4212_v32, 6 }
 0x51a   : > { %v3951_v47 = vpop.f32.mrf.mxu2 }
 0x51b   : > { %v3952_v35 = vadd.f32 %v3951_v47, %v3876_v10  ;;  %v3992_v60 = vadd.f32 %v3985_v39, %v3975_v1  ;;  %v4224_v44 = vsel %vm4221_vm3, %v4216_v14, %v4217_v54 }
 0x51c   : > { %v4225_v49 = vsel %vm1304_vm2, %v4220_v58, %v4224_v44 }
 0x51d   : > { %v3991_v28 = vadd.f32 %v3985_v39, %v3952_v35  ;;  %v4206_v45 = vpack.c.bf16 %v3992_v60, %v3992_v60  ;;  %4227 = vst [vmem:[%s6091_s4] sm:$0x3f] %v4225_v49 }
 0x51e   : > { %v4160_v0 = vpop.f32.mrf.mxu0  ;;  %v4805_v55 = vld [vmem:[%s6083_s0 + $0x8] sm:$0xf] (%p5109_p5) }
 0x51f   : > { %v4205_v62 = vpack.c.bf16 %v3991_v28, %v3990_v19  ;;  %4210 = vst [vmem:[%s6083_s0 + $0x14] sm:$0xf] %v4206_v45  ;;  %v4245_v11 = vpack.c.bf16 %v4180_v8, %v4160_v0 }
 0x520   : > { %v4131_v4 = vpop.f32.mrf.mxu3  ;;  %v4290_v34 = vld [vmem:[%s6083_s0] sm:$0xff] (%p5109_p5)  ;;  %4806 = vst [vmem:[%s4275_s7 + $0x8] sm:$0xf] (%p5109_p5), %v4805_v55 }
 0x521   : > { %4209 = vst [vmem:[%s6083_s0 + $0xc] sm:$0xff] %v4205_v62  ;;  %v4229_v61 = vpack.c.bf16 %v4131_v4, %v4131_v4  ;;  %v4249_v7 = vrot.slane %v4245_v11, 2 }
 0x522   : > { %v4111_v31 = vpop.f32.mrf.mxu2  ;;  %4291 = vst [vmem:[%s4275_s7] sm:$0xff] (%p5109_p5), %v4290_v34 }
 0x523   : > { %v4228_v27 = vpack.c.bf16 %v4111_v31, %v4091_v38  ;;  %v4233_v6 = vrot.slane %v4229_v61, 4  ;;  %v4234_v57 = vrot.slane %v4229_v61, 6  ;;  %v4254_v56 = vsel %vm1213_vm0, %v4245_v11, %v4249_v7 }
 0x525   : > { %v4232_v43 = vrot.slane %v4228_v27, 2  ;;  %v4240_v33 = vsel %vm4221_vm3, %v4233_v6, %v4234_v57 }
 0x526   : > { %v4807_v51 = vld [vmem:[%s6083_s0 + $0x14] sm:$0xf] (%p5109_p5) }
 0x527   : > { %v4237_v15 = vsel %vm1213_vm0, %v4228_v27, %v4232_v43  ;;  %4808 = vst [vmem:[%s4275_s7 + $0x20] sm:$0xf] (%p5109_p5), %v4807_v51 }
 0x528   : > { %v4241_v16 = vsel %vm1304_vm2, %v4237_v15, %v4240_v33  ;;  %v4292_v3 = vld [vmem:[%s6083_s0 + $0xc] sm:$0xff] (%p5109_p5) }
 0x529   : > { %4802 = vst [vmem:[%s6091_s4 + $0x6] sm:$0x3f] %v4241_v16 }
 0x52a   : > { %v4200_v17 = vpop.f32.mrf.mxu2  ;;  %4293 = vst [vmem:[%s4275_s7 + $0x18] sm:$0xff] (%p5109_p5), %v4292_v3 }
 0x52b   : > { %v4246_v5 = vpack.c.bf16 %v4200_v17, %v4200_v17 }
 0x52d   : > { %v4250_v36 = vrot.slane %v4246_v5, 4  ;;  %v4251_v21 = vrot.slane %v4246_v5, 6  ;;  %4272 = sbr.rel (!%p5109_p5) target bundleno = 1330 (0x532), region = 299 }
 0x52f   : > { %v4257_v9 = vsel %vm4221_vm3, %v4250_v36, %v4251_v21 }
 0x530   : > { %v4258_v29 = vsel %vm1304_vm2, %v4254_v56, %v4257_v9 }
 0x531   : > { %4803 = vst [vmem:[%s6091_s4 + $0xc] sm:$0x3f] %v4258_v29 }
 0x532 PF: > { %4311 = sbr.rel (!%p5109_p5) target bundleno = 1340 (0x53c), region = 325  ;;  %v4331_v37 = vld [vmem:[%s6091_s4] sm:$0x3f] (%p5109_p5)  ;;  %v4333_v18 = vld [vmem:[%s6091_s4 + $0x6] sm:$0x3f] (%p5109_p5)  ;;  %s6200_s5 = sld [smem:[#allocation24_spill]] (%p5109_p5) }
 0x533   : > { %s4817_s2 = smul.u32 (%p5109_p5), 6, %s5090_s28 }
 0x538   : > { %s4314_s9 = scalar_lea.vmem %s6200_s5, %s4817_s2  ;;  %v4335_v20 = vld [vmem:[%s6091_s4 + $0xc] sm:$0x3f] }
 0x539   : > { %4332 = vst [vmem:[%s4314_s9] sm:$0x3f] %v4331_v37 }
 0x53a   : > { %4334 = vst [vmem:[%s4314_s9 + $0xc] sm:$0x3f] %v4333_v18 }
 0x53b   : > { %4336 = vst [vmem:[%s4314_s9 + $0x18] sm:$0x3f] %v4335_v20 }
 0x53c PF: > { %s6201_s7 = sld [smem:[#allocation9_spill]]  ;;  %s6203_s27 = smov %s4932_s3 }
 0x53d   : > { %s6202_s0 = sld [smem:[#allocation10_spill]] }
 0x542   : > { %p34_p11 = scmp.ge.s32.totalorder %s6201_s7, 4  }
 0x543   : > { %s6204_s3 = smov %s6202_s0 }
 0x544   :  { %36 = sbr.rel (!%p34_p11) target bundleno = 16 (0x10), region = 476 }

// kernel: gvp_conv_layer.3
= control target key start
LH: loop header
LB: loop body
LE: loop exit
PB: predicated region body
PF: predicated region fallthrough
CT: control target
= control target key end

     0   :  { %s2511_s0 = inlined_call_operand.vmem [shape: bf16[16,256], index: 0, kind: input, shape index: {}]   ;;  %s2512_s1 = inlined_call_operand.vmem [shape: bf16[3,4,256], index: 1, kind: input, shape index: {}]   ;;  %s2513_s2 = inlined_call_operand.vmem [shape: bf16[16,256], index: 2, kind: input, shape index: {}]   ;;  %s2514_s3 = inlined_call_operand.vmem [shape: bf16[3,4,256], index: 3, kind: input, shape index: {}]   ;;  %s2515_s4 = inlined_call_operand.vmem [shape: f32[16,1], index: 4, kind: input, shape index: {}]   ;;  %s2516_s5 = inlined_call_operand.vmem [shape: f32[16,1], index: 5, kind: input, shape index: {}]   ;;  %s2517_s6 = inlined_call_operand.vmem [shape: f32[8,4], index: 6, kind: input, shape index: {}]   ;;  %s2518_s7 = inlined_call_operand.vmem [shape: f32[64,16], index: 7, kind: input, shape index: {}]   ;;  %s2519_s8 = inlined_call_operand.vmem [shape: f32[64,8], index: 8, kind: input, shape index: {}]   ;;  %s2520_s9 = inlined_call_operand.vmem [shape: f32[64,1], index: 9, kind: input, shape index: {}]   ;;  %s2521_s10 = inlined_call_operand.vmem [shape: f32[8,8], index: 10, kind: input, shape index: {}]   ;;  %s2522_s11 = inlined_call_operand.vmem [shape: f32[8,8], index: 11, kind: input, shape index: {}]   ;;  %s2523_s12 = inlined_call_operand.vmem [shape: f32[16,64], index: 12, kind: input, shape index: {}]   ;;  %s2524_s13 = inlined_call_operand.vmem [shape: f32[16,8], index: 13, kind: input, shape index: {}]   ;;  %s2525_s14 = inlined_call_operand.vmem [shape: f32[16,1], index: 14, kind: input, shape index: {}]   ;;  %s2526_s15 = inlined_call_operand.vmem [shape: f32[4,8], index: 15, kind: input, shape index: {}]   ;;  %s2527_s16 = inlined_call_operand.vmem [shape: f32[16,1], index: 16, kind: input, shape index: {}]   ;;  %s2528_s17 = inlined_call_operand.vmem [shape: f32[16,1], index: 17, kind: input, shape index: {}]   ;;  %s2529_s18 = inlined_call_operand.vmem [shape: bf16[16,256], index: 18, kind: output, shape index: {0}]   ;;  %s2530_s19 = inlined_call_operand.vmem [shape: bf16[3,4,256], index: 19, kind: output, shape index: {1}]  }
   0x1   :  { %2536 = sst [smem:[#allocation12_spill]] %s2511_s0 }
   0x2   :  { %2537 = sst [smem:[#allocation13_spill]] %s2512_s1 }
   0x3   :  { %2538 = sst [smem:[#allocation14_spill]] %s2513_s2 }
   0x4   :  { %2539 = sst [smem:[#allocation15_spill]] %s2514_s3 }
   0x5   :  { %2540 = sst [smem:[#allocation16_spill]] %s2524_s13 }
   0x6   :  { %2541 = sst [smem:[#allocation17_spill]] %s2529_s18 }
   0x7   :  { %2542 = sst [smem:[#allocation18_spill]] %s2530_s19 }
   0x8   :  { %s2210_s0 = smov 0   ;;  %s2212_s30 = smov 0  }
   0x9   :  { %s2214_s20 = smov 0  }
   0xa LB: > { %s2226_s21 = sadd.s32 4294967295, %s2105_s20   ;;  %s2229_s1 = sadd.s32 1, %s2105_s20   ;;  %s2105_s20 = sphi %s2214_s20, %s2560_s20   ;;  %s2101_s30 = sphi %s2212_s30, %s2563_s30   ;;  %s2097_s0 = sphi %s2210_s0, %s2562_s0  }
   0xb   : > { %2543 = sst [smem:[#allocation8_spill]] %s2226_s21  ;;  %s34_s22 = ssub.s32 %s2105_s20, %s2229_s1 }
   0xc   : > { %2544 = sst [smem:[#allocation9_spill]] %s2229_s1  ;;  %s37_s2 = sadd.s32 1, %s2101_s30 }
   0xd   : > { %p35_p0 = scmp.eq.s32.totalorder %s34_s22, 0  ;;  %p44_p1 = scmp.ne.s32.totalorder %s2101_s30, %s2097_s0 }
   0xe   : > { %p45_p2 = scmp.eq.s32.totalorder %s2105_s20, 0  ;;  %p446_p3 = scmp.eq.s32.totalorder %s2226_s21, 1 }
   0xf   : > { %s2239_s23 = scalar_select %p35_p0, %s2101_s30, %s37_s2  }
  0x10   : > { %p2241_p4 = por %p45_p2, %p44_p1  ;;  %p2245_p5 = por %p446_p3, %p44_p1 }
  0x11   : > { %2545 = sst [smem:[#allocation10_spill]] %s2239_s23  ;;  %p1957_p6 = scmp.ge.s32.totalorder %s2105_s20, 2 }
  0x12   : > { %s2547_s25 = scalar_select %p2245_p5, 1, 0 }
  0x13   : > { %536 = sbr.rel (%p1957_p6) target bundleno = 74 (0x4a), region = 72 }
  0x14   : > { %2548 = sst [smem:[#allocation11_spill]] %s2547_s25 }
  0x18   : > { %539 = sbr.rel (!%p2241_p4) target bundleno = 36 (0x24), region = 76  ;;  %s541_s3 = sand.u32 (%p2241_p4), 1, %s2101_s30  }
  0x19   : > { %s1959_s26 = sshll.u32 (%p2241_p4), %s2105_s20, 2  ;;  %s1958_s27 = sshll.u32 (%p2241_p4), %s541_s3, 3 }
  0x1a   : > { %s2549_s22 = sld [smem:[#allocation12_spill]] (%p2241_p4)  ;;  %s543_s23 = scalar_lea.vmem (%p2241_p4), [#allocation2], %s1958_s27 }
  0x20   : > { %s545_s2 = scalar_lea.vmem %s2549_s22, %s1959_s26 }
  0x21   : > { %v562_v0 = vld [vmem:[%s545_s2] sm:$0xf]  ;;  %v564_v1 = vld [vmem:[%s545_s2 + $0x8] sm:$0xf] }
  0x22   : > { %563 = vst [vmem:[%s543_s23] sm:$0xf] %v562_v0 }
  0x23   : > { %565 = vst [vmem:[%s543_s23 + $0x4] sm:$0xf] %v564_v1 }
  0x24 PF: > { %593 = sbr.rel (!%p2241_p4) target bundleno = 49 (0x31), region = 117  ;;  %s595_s1 = sand.u32 (%p2241_p4), 1, %s2101_s30  }
  0x25   : > { %s1960_s19 = sshll.u32 (%p2241_p4), %s2105_s20, 1  ;;  %s2028_s18 = smul.u32 (%p2241_p4), 6, %s595_s1 }
  0x26   : > { %s2550_s25 = sld [smem:[#allocation13_spill]] (%p2241_p4) }
  0x27   : > { %s597_s26 = scalar_lea.vmem (%p2241_p4), [#allocation3], %s2028_s18 }
  0x2c   : > { %s599_s13 = scalar_lea.vmem %s2550_s25, %s1960_s19 }
  0x2d   : > { %v616_v2 = vld [vmem:[%s599_s13] sm:$0x3]  ;;  %v618_v3 = vld [vmem:[%s599_s13 + $0x4] sm:$0x3]  ;;  %v620_v4 = vld [vmem:[%s599_s13 + $0x8] sm:$0x3] }
  0x2e   : > { %617 = vst [vmem:[%s597_s26] sm:$0x3] %v616_v2 }
  0x2f   : > { %619 = vst [vmem:[%s597_s26 + $0x2] sm:$0x3] %v618_v3 }
  0x30   : > { %621 = vst [vmem:[%s597_s26 + $0x4] sm:$0x3] %v620_v4 }
  0x31 PF: > { %643 = sbr.rel (!%p2241_p4) target bundleno = 61 (0x3d), region = 151  ;;  %s645_s23 = sand.u32 (%p2241_p4), 1, %s2101_s30  }
  0x32   : > { %s1962_s27 = sshll.u32 (%p2241_p4), %s2105_s20, 2  ;;  %s1961_s1 = sshll.u32 (%p2241_p4), %s645_s23, 3 }
  0x33   : > { %s2551_s21 = sld [smem:[#allocation14_spill]] (%p2241_p4)  ;;  %s647_s13 = scalar_lea.vmem (%p2241_p4), [#allocation4], %s1961_s1 }
  0x39   : > { %s649_s19 = scalar_lea.vmem %s2551_s21, %s1962_s27 }
  0x3a   : > { %v666_v5 = vld [vmem:[%s649_s19] sm:$0xf]  ;;  %v668_v6 = vld [vmem:[%s649_s19 + $0x8] sm:$0xf] }
  0x3b   : > { %667 = vst [vmem:[%s647_s13] sm:$0xf] %v666_v5 }
  0x3c   : > { %669 = vst [vmem:[%s647_s13 + $0x4] sm:$0xf] %v668_v6 }
  0x3d PF: > { %697 = sbr.rel (!%p2241_p4) target bundleno = 74 (0x4a), region = 192  ;;  %s699_s18 = sand.u32 (%p2241_p4), 1, %s2101_s30  }
  0x3e   : > { %s1963_s25 = sshll.u32 (%p2241_p4), %s2105_s20, 1  ;;  %s2029_s22 = smul.u32 (%p2241_p4), 6, %s699_s18 }
  0x3f   : > { %s2552_s26 = sld [smem:[#allocation15_spill]] (%p2241_p4) }
  0x40   : > { %s701_s27 = scalar_lea.vmem (%p2241_p4), [#allocation5], %s2029_s22 }
  0x45   : > { %s703_s23 = scalar_lea.vmem %s2552_s26, %s1963_s25 }
  0x46   : > { %v720_v7 = vld [vmem:[%s703_s23] sm:$0x3]  ;;  %v722_v8 = vld [vmem:[%s703_s23 + $0x4] sm:$0x3]  ;;  %v724_v9 = vld [vmem:[%s703_s23 + $0x8] sm:$0x3] }
  0x47   : > { %721 = vst [vmem:[%s701_s27] sm:$0x3] %v720_v7 }
  0x48   : > { %723 = vst [vmem:[%s701_s27 + $0x2] sm:$0x3] %v722_v8 }
  0x49   : > { %725 = vst [vmem:[%s701_s27 + $0x4] sm:$0x3] %v724_v9 }
  0x4a PF: > { %p1964_p7 = scmp.ge.s32.totalorder %s2105_s20, 1  ;;  %p746_p8 = scmp.lt.s32.totalorder %s2105_s20, 3 }
  0x4c   : > { %p747_p9 = pnand %p1964_p7, %p746_p8 }
  0x4d   : > { %s753_s24 = sand.u32 (!%p747_p9), 1, %s2097_s0   ;;  %s2553_s26 = sld [smem:[#allocation16_spill]] (!%p747_p9) }
  0x4e   : > { %750 = sbr.rel (%p747_p9) target bundleno = 846 (0x34e), region = 226  ;;  %s2320_s23 = sshll.u32 (!%p747_p9), %s753_s24, 3 }
  0x4f   : > { %s2283_s1 = smul.u32 (!%p747_p9), 6, %s753_s24  ;;  %s755_s27 = scalar_lea.vmem (!%p747_p9), [#allocation2], %s2320_s23 }
  0x50   : > { %s837_s24 = scalar_lea.vmem (!%p747_p9), [#allocation6], %s2320_s23 }
  0x51   : > { %s762_s28 = scalar_lea.vmem (!%p747_p9), [#allocation3], %s2283_s1  ;;  %s776_s20 = scalar_lea.vmem (!%p747_p9), [#allocation5], %s2283_s1 }
  0x52   : > { %s843_s0 = scalar_lea.vmem (!%p747_p9), [#allocation7], %s2283_s1 }
  0x53   : > { %v2107_v10 = vmov 4.0   ;;  %v852_v11 = vld [vmem:[%s762_s28] sm:$0x3]  ;;  %v1968_v12 = vld [vmem:[%s762_s28 + $0x2] sm:$0x3]  ;;  %vm947_vm0 = vcmask 1043456  }
  0x54   : > { %2061 = vrcp.f32 %v2107_v10  ;;  %v1969_v13 = vld [vmem:[%s762_s28 + $0x4] sm:$0x3]  ;;  %v853_v14 = vunpack.c.l.bf16 %v852_v11  ;;  %v856_v15 = vunpack.c.l.bf16 %v1968_v12  ;;  %v860_v17 = vld [vmem:[%s776_s20] sm:$0x3]  ;;  %v1970_v18 = vld [vmem:[%s776_s20 + $0x2] sm:$0x3] }
  0x55   : > { %v859_v16 = vunpack.c.l.bf16 %v1969_v13  ;;  %v1971_v19 = vld [vmem:[%s776_s20 + $0x4] sm:$0x3]  ;;  %v861_v20 = vunpack.c.l.bf16 %v860_v17  ;;  %v864_v21 = vunpack.c.l.bf16 %v1970_v18  ;;  %v871_v40 = vld [vmem:[%s2515_s4 + $0x8] sm:$0xff]  ;;  %v2108_v43 = vmov 0   ;;  %v870_v48 = vld [vmem:[%s2515_s4] sm:$0xff]  ;;  %s769_s28 = scalar_lea.vmem [#allocation4], %s2320_s23 }
  0x56   : > { %v867_v22 = vunpack.c.l.bf16 %v1971_v19  ;;  %v873_v41 = vld [vmem:[%s2516_s5 + $0x8] sm:$0xff]  ;;  %2058 = vset.pattern.permute.xlu0 %v2108_v43  ;;  %2059 = vset.pattern.permute.xlu1 %v2108_v43  ;;  %v872_v49 = vld [vmem:[%s2516_s5] sm:$0xff]  ;;  %vm1002_vm5 = vcmask 31744   ;;  %v2109_v4 = vmov 16.0   ;;  %vm1093_vm10 = vcmask 64512   ;;  %s2555_s29 = sld [smem:[#allocation8_spill]] (%p2245_p5) }
  0x57   : > { %v938_v23 = vadd.f32 %v861_v20, %v853_v14  ;;  %v939_v24 = vadd.f32 %v864_v21, %v856_v15  ;;  %921 = vperm.xlu0 %2058, %v871_v40   ;;  %933 = vperm.xlu1 %2059, %v873_v41   ;;  %v984_v61 = vld [vmem:[%s2517_s6] sm:$0xff]  ;;  %vm1159_vm11 = vcmask 130048   ;;  %s2556_s13 = sld [smem:[#allocation17_spill]] (%p2245_p5) }
  0x58   : > { %v940_v25 = vadd.f32 %v867_v22, %v859_v16  ;;  %2060 = vset.pattern.permute.xlu2 %v2108_v43  ;;  %v2016_v62 = vld [vmem:[%s755_s27] sm:$0xff]  }
  0x59   : > { %v941_v27 = vmul.f32 %v938_v23, %v938_v23  ;;  %v942_v28 = vmul.f32 %v939_v24, %v939_v24  ;;  %v2020_v63 = vld [vmem:[%s769_s28] sm:$0xff]   ;;  %v2017_v0 = vunpack.c.l.bf16 %v2016_v62  ;;  %v2018_v1 = vunpack.c.h.bf16 %v2016_v62 }
  0x5a   : > { %v2062_v26 = vpop.eup %2061  ;;  %v944_v29 = vmul.f32 %v940_v25, %v940_v25  ;;  %v2021_v2 = vunpack.c.l.bf16 %v2020_v63  ;;  %v2022_v3 = vunpack.c.h.bf16 %v2020_v63 }
  0x5b   : > { %v943_v30 = vadd.f32 %v942_v28, %v941_v27  ;;  %v956_v31 = vmul.f32 4.0, %v2062_v26  ;;  %vm960_vm1 = vweird.f32 %v2062_v26  ;;  %v998_v27 = vld [vmem:[%s2520_s9 + $0x28] sm:$0xff] }
  0x5c   : > { %v868_v5 = vadd.f32 %v2021_v2, %v2017_v0  ;;  %v869_v6 = vadd.f32 %v2022_v3, %v2018_v1  ;;  %s2011_s21 = sshll.u32 (%p2245_p5), %s2555_s29, 2 }
  0x5d   : > { %v945_v32 = vadd.f32 %v944_v29, %v943_v30  ;;  %v957_v34 = vsub.f32 1.0, %v956_v31  ;;  %v997_v29 = vld [vmem:[%s2520_s9 + $0x20] sm:$0xff]  ;;  %s1724_s18 = scalar_lea.vmem (%p2245_p5), %s2556_s13, %s2011_s21 }
  0x5e   : > { %v874_v7 = vadd.f32 %v869_v6, %v868_v5 }
  0x5f   : > { %v946_v33 = vmax.f32 %v945_v32, 1e-08  ;;  %v958_v37 = vmul.f32 %v2062_v26, %v957_v34  ;;  %916 = vperm.xlu0 %2058, %v870_v48   ;;  %928 = vperm.xlu1 %2059, %v872_v49  }
  0x60   : > { %v875_v8 = vrot.slane %v874_v7, 4 }
  0x61   : > { %v948_v35 = vsel %vm947_vm0, %v946_v33, 0.0  ;;  %v959_v42 = vadd.f32 %v2062_v26, %v958_v37  ;;  %v995_v33 = vld [vmem:[%s2520_s9 + $0x10] sm:$0xff] }
  0x62   : > { %v949_v36 = vrot.slane %v948_v35, 4  ;;  %v876_v10 = vadd.f32 %v875_v8, %v874_v7 }
  0x63   : > { %v2294_v46 = vsel %vm960_vm1, %v2062_v26, %v959_v42  ;;  %v1610_v42 = vld [vmem:[%s2527_s16 + $0x8] sm:$0xff] }
  0x64   : > { %v950_v38 = vadd.f32 %v949_v36, %v948_v35  ;;  %v877_v12 = vrot.slane %v876_v10, 2  ;;  %v994_v35 = vld [vmem:[%s2520_s9 + $0x8] sm:$0xff] }
  0x66   : > { %v951_v39 = vrot.slane %v950_v38, 2  ;;  %v878_v14 = vadd.f32 %v877_v12, %v876_v10  ;;  %v977_v10 = vld [vmem:[%s2518_s7 + $0x8] sm:$0xff] }
  0x67   : > { %1252 = vperm.xlu0 %2058, %v998_v27   ;;  %1247 = vperm.xlu1 %2059, %v997_v29   ;;  %v981_v27 = vld [vmem:[%s2518_s7 + $0x28] sm:$0xff]  ;;  %v982_v29 = vld [vmem:[%s2518_s7 + $0x30] sm:$0xff] }
  0x68   : > { %v952_v44 = vadd.f32 %v951_v39, %v950_v38  ;;  %v879_v16 = vrot.slane %v878_v14, 1  ;;  %v1389_v38 = vld [vmem:[%s2525_s14] sm:$0xff]  ;;  %v1390_v39 = vld [vmem:[%s2525_s14 + $0x8] sm:$0xff] }
  0x6a   : > { %v953_v45 = vrot.slane %v952_v44, 1  ;;  %v880_v18 = vadd.f32 %v879_v16, %v878_v14  ;;  %v978_v14 = vld [vmem:[%s2518_s7 + $0x10] sm:$0xff] }
  0x6c   : > { %v954_v47 = vadd.f32 %v953_v45, %v952_v44  ;;  %v1611_v45 = vld [vmem:[%s2528_s17] sm:$0xff] }
  0x6e   : > { %v962_v50 = vmul.f32 %v2294_v46, %v954_v47 }
  0x6f   : > { %1237 = vperm.xlu0 %2058, %v995_v33   ;;  %1232 = vperm.xlu1 %2059, %v994_v35   ;;  %v989_v33 = vld [vmem:[%s2519_s8 + $0x20] sm:$0xff]  ;;  %v991_v35 = vld [vmem:[%s2519_s8 + $0x30] sm:$0xff] }
  0x70   : > { %2063 = vrsqrt.f32 %v962_v50  ;;  %vm969_vm2 = vweird.f32 %v962_v50 }
  0x71   : > { %2065 = vrcp.f32 %v2109_v4 }
  0x76   : > { %v2064_v51 = vpop.eup %2063 }
  0x77   : > { %v964_v52 = vmul.f32 %v2064_v51, %v962_v50  ;;  %vm970_vm3 = vweird.f32 %v2064_v51  ;;  %v2066_v9 = vpop.eup %2065  ;;  %1534 = vperm.xlu0 %2058, %v1389_v38   ;;  %1539 = vperm.xlu1 %2059, %v1390_v39   ;;  %v996_v38 = vld [vmem:[%s2520_s9 + $0x18] sm:$0xff] }
  0x78   : > { %vm971_vm4 = vmor %vm969_vm2, %vm970_vm3  ;;  %v882_v11 = vmul.f32 16.0, %v2066_v9  ;;  %vm886_vm6 = vweird.f32 %v2066_v9 }
  0x79   : > { %v965_v53 = vmul.f32 %v2064_v51, %v964_v52 }
  0x7a   : > { %v883_v13 = vsub.f32 1.0, %v882_v11 }
  0x7b   : > { %v966_v54 = vmul.f32 0.5, %v965_v53 }
  0x7c   : > { %v884_v15 = vmul.f32 %v2066_v9, %v883_v13 }
  0x7d   : > { %v967_v55 = vsub.f32 1.5, %v966_v54 }
  0x7e   : > { %v885_v17 = vadd.f32 %v2066_v9, %v884_v15 }
  0x7f   : > { %v968_v56 = vmul.f32 %v2064_v51, %v967_v55  ;;  %1653 = vperm.xlu0 %2058, %v1610_v42   ;;  %1660 = vperm.xlu1 %2059, %v1611_v45  }
  0x80   : > { %v2324_v19 = vsel %vm886_vm6, %v2066_v9, %v885_v17 }
  0x81   : > { %v972_v57 = vsel %vm971_vm4, %v2064_v51, %v968_v56  ;;  %v888_v20 = vmul.f32 %v2324_v19, %v880_v18  ;;  %v1001_v51 = vld [vmem:[%s2521_s10] sm:$0xff] }
  0x82   : > { %v2303_v58 = vmul.f32 %v972_v57, %v938_v23  ;;  %v2305_v59 = vmul.f32 %v972_v57, %v939_v24  ;;  %v2307_v60 = vmul.f32 %v972_v57, %v940_v25 }
  0x83   : > { %v889_v21 = vsub.f32 %v868_v5, %v888_v20  ;;  %v890_v22 = vsub.f32 %v869_v6, %v888_v20  ;;  %v976_v5 = vld [vmem:[%s2518_s7] sm:$0xff]  ;;  %v979_v20 = vld [vmem:[%s2518_s7 + $0x18] sm:$0xff] }
  0x84   : > { %1972 = vmatpush.msk.msra.mxu0 %vm947_vm0, %v2303_v58  ;;  %1974 = vmatpush.msk.msra.mxu1 %vm947_vm0, %v2305_v59 }
  0x85   : > { %1976 = vmatpush.msk.msra.mxu2 %vm947_vm0, %v2307_v60  ;;  %1973 = vmatmul.msk.f32.vlgmr.msra.gmra.mxu0 %vm1002_vm5, %v984_v61  ;;  %v891_v23 = vmul.f32 %v889_v21, %v889_v21  ;;  %v892_v24 = vmul.f32 %v890_v22, %v890_v22 }
  0x86   : > { %1975 = vmatmul.msk.f32.vlgmr.msra.gmra.mxu1 %vm1002_vm5, %v984_v61  ;;  %1977 = vmatmul.msk.f32.vlgmr.msra.gmra.mxu2 %vm1002_vm5, %v984_v61  ;;  %vm1502_vm5 = vcmask 523264  }
  0x87   : > { %v893_v25 = vadd.f32 %v892_v24, %v891_v23  ;;  %v985_v23 = vld [vmem:[%s2519_s8] sm:$0xff] }
  0x89   : > { %v894_v26 = vrot.slane %v893_v25, 4 }
  0x8b   : > { %v895_v28 = vadd.f32 %v894_v26, %v893_v25  ;;  %v980_v25 = vld [vmem:[%s2518_s7 + $0x20] sm:$0xff]  ;;  %v986_v26 = vld [vmem:[%s2519_s8 + $0x8] sm:$0xff] }
  0x8d   : > { %v896_v30 = vrot.slane %v895_v28, 2 }
  0x8f   : > { %v897_v31 = vadd.f32 %v896_v30, %v895_v28  ;;  %v987_v28 = vld [vmem:[%s2519_s8 + $0x10] sm:$0xff]  ;;  %v988_v30 = vld [vmem:[%s2519_s8 + $0x18] sm:$0xff] }
  0x91   : > { %v898_v32 = vrot.slane %v897_v31, 1 }
  0x93   : > { %v899_v34 = vadd.f32 %v898_v32, %v897_v31  ;;  %v1000_v31 = vld [vmem:[%s2520_s9 + $0x38] sm:$0xff] }
  0x94   : > { %1262 = vperm.xlu2 %2060, %v1000_v31   ;;  %v983_v32 = vld [vmem:[%s2518_s7 + $0x38] sm:$0xff] }
  0x95   : > { %v900_v36 = vmul.f32 %v899_v34, %v2324_v19  ;;  %v990_v34 = vld [vmem:[%s2519_s8 + $0x28] sm:$0xff] }
  0x97   : > { %v901_v37 = vadd.f32 1e-05, %v900_v36  ;;  %v992_v36 = vld [vmem:[%s2519_s8 + $0x38] sm:$0xff] }
  0x99   : > { %2067 = vrsqrt.f32 %v901_v37  ;;  %vm908_vm7 = vweird.f32 %v901_v37 }
  0x9f   : > { %v2068_v40 = vpop.eup %2067 }
  0xa0   : > { %v903_v41 = vmul.f32 %v2068_v40, %v901_v37  ;;  %vm909_vm8 = vweird.f32 %v2068_v40  ;;  %v999_v37 = vld [vmem:[%s2520_s9 + $0x30] sm:$0xff] }
  0xa1   : > { %vm910_vm9 = vmor %vm908_vm7, %vm909_vm8  ;;  %1257 = vperm.xlu2 %2060, %v999_v37  }
  0xa2   : > { %v904_v43 = vmul.f32 %v2068_v40, %v903_v41 }
  0xa4   : > { %v905_v47 = vmul.f32 0.5, %v904_v43 }
  0xa6   : > { %v906_v49 = vsub.f32 1.5, %v905_v47 }
  0xa8   : > { %v907_v50 = vmul.f32 %v2068_v40, %v906_v49 }
  0xa9   : > { %1242 = vperm.xlu2 %2060, %v996_v38  }
  0xaa   : > { %v911_v53 = vsel %vm910_vm9, %v2068_v40, %v907_v50 }
  0xab   : > { %v913_v55 = vmul.f32 %v911_v53, %v890_v22  ;;  %v912_v61 = vmul.f32 %v911_v53, %v889_v21 }
  0xc9   : > { %v922_v44 = vpop.permute.xlu0 %921  ;;  %v934_v48 = vpop.permute.xlu1 %933 }
  0xca   : > { %v925_v56 = vmul.f32 %v922_v44, %v913_v55 }
  0xcc   : > { %v2357_v1 = vadd.f32 %v934_v48, %v925_v56  ;;  %v993_v56 = vld [vmem:[%s2520_s9] sm:$0xff] }
  0xcd   : > { %1227 = vperm.xlu2 %2060, %v993_v56  }
  0xce   : > { %1198 = vmatpush.msrb.mxu0 %v2357_v1 }
  0xd1   : > { %v917_v57 = vpop.permute.xlu0 %916  ;;  %v929_v0 = vpop.permute.xlu1 %928 }
  0xd2   : > { %v924_v2 = vmul.f32 %v917_v57, %v912_v61 }
  0xd4   : > { %v2359_v4 = vadd.f32 %v929_v0, %v924_v2 }
  0xd6   : > { %1199 = vmatpush.msrb.mxu0 %v2359_v4 }
  0xd7   : > { %1986 = vmatmul.msk.f32.vlgmr.msrb.gmra.mxu0 %vm1159_vm11, %v976_v5 }
  0xdf   : > { %1987 = vmatmul.msk.f32.gmra.mxu0 %vm1159_vm11, %v977_v10 }
  0xe7   : > { %1988 = vmatmul.msk.f32.gmra.mxu0 %vm1159_vm11, %v978_v14 }
  0xef   : > { %1989 = vmatmul.msk.f32.gmra.mxu0 %vm1159_vm11, %v979_v20 }
  0xf7   : > { %1990 = vmatmul.msk.f32.gmra.mxu0 %vm1159_vm11, %v980_v25 }
  0xff   : > { %1991 = vmatmul.msk.f32.gmra.mxu0 %vm1159_vm11, %v981_v27 }
 0x102   : > { %v1026_v52 = vpop.f32.mrf.mxu0 }
 0x103   : > { %v1049_v54 = vpop.f32.mrf.mxu1  ;;  %1291 = vmatpush.msrb.mxu1 %v1026_v52  ;;  %v1075_v62 = vmul.f32 %v1026_v52, %v1026_v52 }
 0x104   : > { %1311 = vmatpush.msrb.mxu2 %v1049_v54  ;;  %1994 = vmatmul.msk.f32.vlgmr.msrb.gmra.mxu1 %vm1093_vm10, %v1001_v51  ;;  %v1076_v63 = vmul.f32 %v1049_v54, %v1049_v54 }
 0x105   : > { %1995 = vmatmul.msk.f32.vlgmr.msrb.gmra.mxu2 %vm1093_vm10, %v1001_v51 }
 0x106   : > { %v1077_v6 = vadd.f32 %v1076_v63, %v1075_v62 }
 0x107   : > { %1992 = vmatmul.msk.f32.gmra.mxu0 %vm1159_vm11, %v982_v29  ;;  %v1609_v29 = vld [vmem:[%s2527_s16] sm:$0xff] }
 0x108   : > { %1648 = vperm.xlu2 %2060, %v1609_v29  }
 0x109   : > { %v1072_v3 = vpop.f32.mrf.mxu2 }
 0x10a   : > { %v1078_v7 = vmul.f32 %v1072_v3, %v1072_v3  ;;  %1331 = vmatpush.msra.mxu1 %v1072_v3 }
 0x10c   : > { %v1079_v8 = vadd.f32 %v1078_v7, %v1077_v6  ;;  %1996 = vmatmul.msk.f32.vlgmr.msra.gmra.mxu1 %vm1093_vm10, %v1001_v51 }
 0x10e   : > { %v1080_v9 = vmax.f32 %v1079_v8, 1e-08 }
 0x10f   : > { %1993 = vmatmul.msk.f32.gmra.mxu0 %vm1159_vm11, %v983_v32  ;;  %v1612_v32 = vld [vmem:[%s2528_s17 + $0x8] sm:$0xff] }
 0x110   : > { %2069 = vrsqrt.f32 %v1080_v9  ;;  %vm1088_vm12 = vcmp.eq.f32.partialorder %v1080_v9, inf  ;;  %v1091_v21 = vand.u32 2147483648, %v1080_v9  ;;  %vm1090_vm13 = vcmp.eq.f32.partialorder %v1080_v9, 0.0  ;;  %1665 = vperm.xlu2 %2060, %v1612_v32  }
 0x116   : > { %v2070_v11 = vpop.eup %2069 }
 0x117   : > { %v1082_v12 = vmul.f32 %v2070_v11, %v1080_v9 }
 0x119   : > { %v1083_v13 = vmul.f32 %v2070_v11, %v1082_v12 }
 0x11b   : > { %v1084_v15 = vmul.f32 0.5, %v1083_v13 }
 0x11d   : > { %v1085_v16 = vsub.f32 1.5, %v1084_v15 }
 0x11f   : > { %v1086_v17 = vmul.f32 %v2070_v11, %v1085_v16 }
 0x121   : > { %v1087_v18 = vmul.f32 %v1086_v17, %v1080_v9 }
 0x123   : > { %v1089_v22 = vsel %vm1088_vm12, %v1080_v9, %v1087_v18 }
 0x124   : > { %v1092_v24 = vsel %vm1090_vm13, %v1091_v21, %v1089_v22 }
 0x125   : > { %1133 = vmatpush.msra.mxu3 %v1092_v24 }
 0x126   : > { %1978 = vmatmul.msk.f32.vlgmr.msra.gmra.mxu3 %vm1093_vm10, %v985_v23 }
 0x12e   : > { %1979 = vmatmul.msk.f32.gmra.mxu3 %vm1093_vm10, %v986_v26 }
 0x136   : > { %1980 = vmatmul.msk.f32.gmra.mxu3 %vm1093_vm10, %v987_v28  ;;  %v1386_v28 = vld [vmem:[%s2522_s11] sm:$0xff] }
 0x13e   : > { %1981 = vmatmul.msk.f32.gmra.mxu3 %vm1093_vm10, %v988_v30 }
 0x146   : > { %1982 = vmatmul.msk.f32.gmra.mxu3 %vm1093_vm10, %v989_v33 }
 0x14e   : > { %1983 = vmatmul.msk.f32.gmra.mxu3 %vm1093_vm10, %v990_v34  ;;  %v1263_v34 = vpop.permute.xlu2 %1262 }
 0x154   : > { %v1201_v51 = vpop.f32.mrf.mxu0 }
 0x156   : > { %1984 = vmatmul.msk.f32.gmra.mxu3 %vm1093_vm10, %v991_v35  ;;  %v1258_v37 = vpop.permute.xlu2 %1257 }
 0x15c   : > { %v2440_v62 = vpop.f32.mrf.mxu0 }
 0x15e   : > { %1985 = vmatmul.msk.f32.gmra.mxu3 %vm1093_vm10, %v992_v36 }
 0x164   : > { %v1207_v6 = vpop.f32.mrf.mxu0 }
 0x16c   : > { %v1210_v11 = vpop.f32.mrf.mxu0 }
 0x174   : > { %v1213_v24 = vpop.f32.mrf.mxu0 }
 0x17c   : > { %v1216_v31 = vpop.f32.mrf.mxu0 }
 0x181   : > { %v1293_v39 = vpop.f32.mrf.mxu1 }
 0x182   : > { %v1336_v41 = vmul.f32 %v1293_v39, %v1293_v39 }
 0x184   : > { %v1219_v35 = vpop.f32.mrf.mxu0 }
 0x188   : > { %v1313_v40 = vpop.f32.mrf.mxu2 }
 0x189   : > { %v1337_v42 = vmul.f32 %v1313_v40, %v1313_v40  ;;  %v1333_v43 = vpop.f32.mrf.mxu1 }
 0x18a   : > { %v1339_v44 = vmul.f32 %v1333_v43, %v1333_v43 }
 0x18b   : > { %v1338_v45 = vadd.f32 %v1337_v42, %v1336_v41 }
 0x18d   : > { %v1340_v47 = vadd.f32 %v1339_v44, %v1338_v45  ;;  %v1248_v45 = vpop.permute.xlu1 %1247 }
 0x18f   : > { %v1341_v48 = vmax.f32 %v1340_v47, 1e-08 }
 0x191   : > { %2071 = vrsqrt.f32 %v1341_v48  ;;  %vm1349_vm14 = vcmp.eq.f32.partialorder %v1341_v48, inf  ;;  %v1352_v61 = vand.u32 2147483648, %v1341_v48  ;;  %vm1351_vm15 = vcmp.eq.f32.partialorder %v1341_v48, 0.0 }
 0x197   : > { %v2072_v49 = vpop.eup %2071 }
 0x198   : > { %v1343_v50 = vmul.f32 %v2072_v49, %v1341_v48 }
 0x19a   : > { %v1344_v52 = vmul.f32 %v2072_v49, %v1343_v50  ;;  %v1243_v50 = vpop.permute.xlu2 %1242 }
 0x19c   : > { %v1345_v53 = vmul.f32 0.5, %v1344_v52 }
 0x19e   : > { %v1346_v54 = vsub.f32 1.5, %v1345_v53 }
 0x1a0   : > { %v1347_v55 = vmul.f32 %v2072_v49, %v1346_v54 }
 0x1a2   : > { %v1348_v57 = vmul.f32 %v1347_v55, %v1341_v48 }
 0x1a4   : > { %v1350_v63 = vsel %vm1349_vm14, %v1341_v48, %v1348_v57 }
 0x1a5   : > { %v1353_v0 = vsel %vm1351_vm15, %v1352_v61, %v1350_v63 }
 0x1a6   : > { %v1997_v2 = vmul.f32 -1.442695, %v1353_v0 }
 0x1a8   : > { %2073 = vpow2.f32 %v1997_v2 }
 0x1a9   : > { %v1135_v3 = vpop.f32.mrf.mxu3 }
 0x1aa   : > { %v2442_v5 = vadd.f32 %v1201_v51, %v1135_v3 }
 0x1ae   : > { %v2074_v7 = vpop.eup %2073 }
 0x1af   : > { %v1357_v8 = vadd.f32 1.0, %v2074_v7  ;;  %v1233_v7 = vpop.permute.xlu1 %1232 }
 0x1b1   : > { %2075 = vrcp.f32 %v1357_v8  ;;  %v1138_v9 = vpop.f32.mrf.mxu3  ;;  %v1369_v15 = vand.u32 2147483648, %v1357_v8  ;;  %v1367_v17 = vand.u32 2147483647, %v1357_v8  ;;  %vm1363_vm2 = vweird.f32 %v1357_v8 }
 0x1b2   : > { %v1205_v57 = vadd.f32 %v2440_v62, %v1138_v9  ;;  %v1384_v62 = vld [vmem:[%s2523_s12] sm:$0xff] }
 0x1b3   : > { %v1370_v20 = vor.u32 1.1754944e-38, %v1369_v15  ;;  %vm1368_vm4 = vcmp.eq.f32.partialorder %v1367_v17, 8.507059e+37  ;;  %v1385_v17 = vld [vmem:[%s2523_s12 + $0x8] sm:$0xff] }
 0x1b7   : > { %v2076_v10 = vpop.eup %2075 }
 0x1b8   : > { %v1359_v12 = vmul.f32 %v2076_v10, %v1357_v8  ;;  %vm1364_vm1 = vweird.f32 %v2076_v10  ;;  %v1266_v8 = vadd.f32 %v1233_v7, %v1205_v57 }
 0x1b9   : > { %v1141_v13 = vpop.f32.mrf.mxu3  ;;  %vm1365_vm3 = vmor %vm1363_vm2, %vm1364_vm1 }
 0x1ba   : > { %v1360_v14 = vsub.f32 1.0, %v1359_v12  ;;  %v1208_v54 = vadd.f32 %v1207_v6, %v1141_v13  ;;  %v1228_v6 = vpop.permute.xlu2 %1227 }
 0x1bb   : > { %v1265_v12 = vadd.f32 %v1228_v6, %v2442_v5 }
 0x1bc   : > { %v1361_v16 = vmul.f32 %v2076_v10, %v1360_v14 }
 0x1bd   : > { %v1376_v13 = vmax.f32 %v1265_v12, 0.0 }
 0x1be   : > { %v1362_v18 = vadd.f32 %v2076_v10, %v1361_v16 }
 0x1c0   : > { %v1366_v21 = vsel %vm1365_vm3, %v2076_v10, %v1362_v18 }
 0x1c1   : > { %v1371_v22 = vsel %vm1368_vm4, %v1370_v20, %v1366_v21  ;;  %v1144_v23 = vpop.f32.mrf.mxu3 }
 0x1c2   : > { %v1373_v25 = vmul.f32 %v1371_v22, %v1293_v39  ;;  %v1374_v26 = vmul.f32 %v1371_v22, %v1313_v40  ;;  %v1375_v27 = vmul.f32 %v1371_v22, %v1333_v43  ;;  %v1222_v39 = vpop.f32.mrf.mxu0  ;;  %v1253_v40 = vpop.permute.xlu0 %1252  ;;  %v1211_v47 = vadd.f32 %v1210_v11, %v1144_v23  ;;  %v1391_v23 = vld [vmem:[%s2526_s15] sm:$0xf] }
 0x1c3   : > { %v1377_v11 = vmax.f32 %v1266_v8, 0.0 }
 0x1c4   : > { %1410 = vmatpush.msra.mxu2 %v1373_v25  ;;  %1430 = vmatpush.msrb.mxu1 %v1374_v26  ;;  %v1268_v56 = vadd.f32 %v1243_v50, %v1211_v47 }
 0x1c5   : > { %1998 = vmatmul.msk.f32.vlgmr.msra.gmra.mxu2 %vm1093_vm10, %v1386_v28  ;;  %1999 = vmatmul.msk.f32.vlgmr.msrb.gmra.mxu1 %vm1093_vm10, %v1386_v28 }
 0x1c6   : > { %1450 = vmatpush.msrb.mxu2 %v1375_v27  ;;  %v1379_v3 = vmax.f32 %v1268_v56, 0.0 }
 0x1c9   : > { %v1147_v30 = vpop.f32.mrf.mxu3 }
 0x1ca   : > { %v1214_v48 = vadd.f32 %v1213_v24, %v1147_v30  ;;  %v1238_v63 = vpop.permute.xlu0 %1237 }
 0x1cb   : > { %v1267_v0 = vadd.f32 %v1238_v63, %v1208_v54 }
 0x1cc   : > { %v1269_v55 = vadd.f32 %v1248_v45, %v1214_v48 }
 0x1cd   : > { %2000 = vmatmul.msk.f32.vlgmr.msrb.gmra.mxu2 %vm1093_vm10, %v1386_v28  ;;  %v1378_v10 = vmax.f32 %v1267_v0, 0.0 }
 0x1ce   : > { %v1380_v2 = vmax.f32 %v1269_v55, 0.0 }
 0x1d1   : > { %v1150_v33 = vpop.f32.mrf.mxu3 }
 0x1d2   : > { %v1217_v42 = vadd.f32 %v1216_v31, %v1150_v33  ;;  %v1387_v33 = vld [vmem:[%s2553_s26] sm:$0xff] }
 0x1d4   : > { %v1270_v51 = vadd.f32 %v1253_v40, %v1217_v42  ;;  %v1535_v40 = vpop.permute.xlu0 %1534 }
 0x1d6   : > { %v1381_v61 = vmax.f32 %v1270_v51, 0.0 }
 0x1d9   : > { %v1153_v36 = vpop.f32.mrf.mxu3 }
 0x1da   : > { %v1220_v38 = vadd.f32 %v1219_v35, %v1153_v36  ;;  %v1388_v35 = vld [vmem:[%s2553_s26 + $0x8] sm:$0xff] }
 0x1dc   : > { %v1271_v44 = vadd.f32 %v1258_v37, %v1220_v38 }
 0x1de   : > { %v1382_v53 = vmax.f32 %v1271_v44, 0.0  ;;  %v1540_v44 = vpop.permute.xlu1 %1539 }
 0x1e1   : > { %v1156_v41 = vpop.f32.mrf.mxu3 }
 0x1e2   : > { %v1223_v43 = vadd.f32 %v1222_v39, %v1156_v41 }
 0x1e4   : > { %v1272_v49 = vadd.f32 %v1263_v34, %v1223_v43 }
 0x1e6   : > { %v1383_v52 = vmax.f32 %v1272_v49, 0.0 }
 0x1e8   : > { %1517 = vmatpush.msra.mxu2 %v1383_v52 }
 0x1ea   : > { %1518 = vmatpush.msra.mxu2 %v1382_v53 }
 0x1ec   : > { %1519 = vmatpush.msra.mxu2 %v1381_v61 }
 0x1ee   : > { %1520 = vmatpush.msra.mxu2 %v1380_v2 }
 0x1f0   : > { %1521 = vmatpush.msra.mxu2 %v1379_v3 }
 0x1f2   : > { %1522 = vmatpush.msra.mxu2 %v1378_v10 }
 0x1f4   : > { %1523 = vmatpush.msra.mxu2 %v1377_v11 }
 0x1f6   : > { %1524 = vmatpush.msra.mxu2 %v1376_v13 }
 0x1f7   : > { %2003 = vmatmul.msk.f32.vlgmr.msra.gmra.mxu2 %vm1502_vm5, %v1384_v62 }
 0x1ff   : > { %2004 = vmatmul.msk.f32.gmra.mxu2 %vm1502_vm5, %v1385_v17 }
 0x242   : > { %v1432_v14 = vpop.f32.mrf.mxu1 }
 0x243   : > { %v1456_v16 = vmul.f32 %v1432_v14, %v1432_v14 }
 0x248   : > { %v1412_v9 = vpop.f32.mrf.mxu2 }
 0x249   : > { %v1455_v15 = vmul.f32 %v1412_v9, %v1412_v9 }
 0x24b   : > { %v1457_v20 = vadd.f32 %v1456_v16, %v1455_v15 }
 0x250   : > { %v1452_v18 = vpop.f32.mrf.mxu2 }
 0x251   : > { %v1458_v5 = vmul.f32 %v1452_v18, %v1452_v18  ;;  %1602 = vmatpush.msrb.mxu2 %v1452_v18 }
 0x252   : > { %2007 = vmatmul.msk.f32.vlgmr.msrb.gmra.mxu2 %vm1093_vm10, %v1391_v23 }
 0x253   : > { %v1459_v21 = vadd.f32 %v1458_v5, %v1457_v20 }
 0x255   : > { %v1460_v22 = vmax.f32 %v1459_v21, 1e-08 }
 0x257   : > { %2077 = vrsqrt.f32 %v1460_v22  ;;  %vm1468_vm6 = vcmp.eq.f32.partialorder %v1460_v22, inf  ;;  %v1471_v31 = vand.u32 2147483648, %v1460_v22  ;;  %vm1470_vm7 = vcmp.eq.f32.partialorder %v1460_v22, 0.0 }
 0x25d   : > { %v2078_v24 = vpop.eup %2077 }
 0x25e   : > { %v1462_v25 = vmul.f32 %v2078_v24, %v1460_v22 }
 0x260   : > { %v1463_v26 = vmul.f32 %v2078_v24, %v1462_v25 }
 0x262   : > { %v1464_v27 = vmul.f32 0.5, %v1463_v26 }
 0x264   : > { %v1465_v28 = vsub.f32 1.5, %v1464_v27 }
 0x266   : > { %v1466_v29 = vmul.f32 %v2078_v24, %v1465_v28 }
 0x268   : > { %v1467_v30 = vmul.f32 %v1466_v29, %v1460_v22 }
 0x26a   : > { %v1469_v32 = vsel %vm1468_vm6, %v1460_v22, %v1467_v30 }
 0x26b   : > { %v1472_v34 = vsel %vm1470_vm7, %v1471_v31, %v1469_v32 }
 0x26c   : > { %1494 = vmatpush.msra.mxu1 %v1472_v34 }
 0x26d   : > { %2001 = vmatmul.msk.f32.vlgmr.msra.gmra.mxu1 %vm1093_vm10, %v1387_v33 }
 0x26e   : > { %1562 = vmatpush.msrb.mxu1 %v1412_v9 }
 0x270   : > { %1582 = vmatpush.msra.mxu1 %v1432_v14 }
 0x275   : > { %2002 = vmatmul.msk.f32.gmra.mxu1 %vm1093_vm10, %v1388_v35  ;;  %v1649_v35 = vpop.permute.xlu2 %1648 }
 0x27a   : > { %v1526_v36 = vpop.f32.mrf.mxu2 }
 0x27d   : > { %2005 = vmatmul.msk.f32.vlgmr.msrb.gmra.mxu1 %vm1093_vm10, %v1391_v23 }
 0x282   : > { %v1529_v39 = vpop.f32.mrf.mxu2 }
 0x285   : > { %2006 = vmatmul.msk.f32.vlgmr.msra.gmra.mxu1 %vm1093_vm10, %v1391_v23 }
 0x2d5   : > { %v1604_v53 = vpop.f32.mrf.mxu2 }
 0x2d6   : > { %v1676_v57 = vadd.f32 %v1604_v53, %v2307_v60  ;;  %v1666_v53 = vpop.permute.xlu2 %1665 }
 0x2d8   : > { %v1680_v7 = vmul.f32 %v1676_v57, %v1676_v57 }
 0x2ea   : > { %v1496_v37 = vpop.f32.mrf.mxu1 }
 0x2eb   : > { %v1527_v38 = vadd.f32 %v1526_v36, %v1496_v37 }
 0x2ed   : > { %v1542_v42 = vadd.f32 %v1535_v40, %v1527_v38 }
 0x2ef   : > { %v1607_v47 = vadd.f32 %v1542_v42, %v2359_v4 }
 0x2f2   : > { %v1499_v41 = vpop.f32.mrf.mxu1 }
 0x2f3   : > { %v1530_v43 = vadd.f32 %v1529_v39, %v1499_v41 }
 0x2f5   : > { %v1543_v45 = vadd.f32 %v1540_v44, %v1530_v43 }
 0x2f7   : > { %v1608_v48 = vadd.f32 %v1543_v45, %v2357_v1 }
 0x2f9   : > { %v1613_v49 = vadd.f32 %v1608_v48, %v1607_v47 }
 0x2fa   : > { %v1564_v50 = vpop.f32.mrf.mxu1 }
 0x2fb   : > { %v1614_v51 = vrot.slane %v1613_v49, 4  ;;  %v1674_v55 = vadd.f32 %v1564_v50, %v2303_v58 }
 0x2fd   : > { %v1615_v52 = vadd.f32 %v1614_v51, %v1613_v49  ;;  %v1677_v0 = vmul.f32 %v1674_v55, %v1674_v55  ;;  %v1654_v49 = vpop.permute.xlu0 %1653 }
 0x2ff   : > { %v1616_v54 = vrot.slane %v1615_v52, 2 }
 0x301   : > { %v1617_v56 = vadd.f32 %v1616_v54, %v1615_v52  ;;  %v1661_v52 = vpop.permute.xlu1 %1660 }
 0x302   : > { %v1584_v61 = vpop.f32.mrf.mxu1 }
 0x303   : > { %v1618_v63 = vrot.slane %v1617_v56, 1  ;;  %v1675_v2 = vadd.f32 %v1584_v61, %v2305_v59 }
 0x305   : > { %v1619_v3 = vadd.f32 %v1618_v63, %v1617_v56  ;;  %v1678_v4 = vmul.f32 %v1675_v2, %v1675_v2 }
 0x307   : > { %v1620_v1 = vmul.f32 %v1619_v3, %v2324_v19  ;;  %v1679_v8 = vadd.f32 %v1678_v4, %v1677_v0 }
 0x309   : > { %v1621_v10 = vsub.f32 %v1607_v47, %v1620_v1  ;;  %v1622_v11 = vsub.f32 %v1608_v48, %v1620_v1  ;;  %v1681_v6 = vadd.f32 %v1680_v7, %v1679_v8 }
 0x30b   : > { %v1623_v12 = vmul.f32 %v1621_v10, %v1621_v10  ;;  %v1624_v13 = vmul.f32 %v1622_v11, %v1622_v11  ;;  %v1682_v58 = vmax.f32 %v1681_v6, 1e-08 }
 0x30d   : > { %v1625_v62 = vadd.f32 %v1624_v13, %v1623_v12  ;;  %v1683_v60 = vsel %vm947_vm0, %v1682_v58, 0.0 }
 0x30e   : > { %v1684_v9 = vrot.slane %v1683_v60, 4 }
 0x30f   : > { %v1626_v14 = vrot.slane %v1625_v62, 4 }
 0x310   : > { %v1685_v15 = vadd.f32 %v1684_v9, %v1683_v60 }
 0x311   : > { %v1627_v16 = vadd.f32 %v1626_v14, %v1625_v62 }
 0x312   : > { %v1686_v59 = vrot.slane %v1685_v15, 2 }
 0x313   : > { %v1628_v17 = vrot.slane %v1627_v16, 2 }
 0x314   : > { %v1687_v18 = vadd.f32 %v1686_v59, %v1685_v15 }
 0x315   : > { %v1629_v20 = vadd.f32 %v1628_v17, %v1627_v16 }
 0x316   : > { %v1688_v5 = vrot.slane %v1687_v18, 1 }
 0x317   : > { %v1630_v21 = vrot.slane %v1629_v20, 1 }
 0x318   : > { %v1689_v22 = vadd.f32 %v1688_v5, %v1687_v18 }
 0x319   : > { %v1631_v23 = vadd.f32 %v1630_v21, %v1629_v20 }
 0x31a   : > { %v1690_v24 = vmul.f32 %v1689_v22, %v2294_v46 }
 0x31b   : > { %v1632_v25 = vmul.f32 %v1631_v23, %v2324_v19 }
 0x31c   : > { %2079 = vrsqrt.f32 %v1690_v24  ;;  %vm1697_vm8 = vweird.f32 %v1690_v24 }
 0x31d   : > { %v1633_v26 = vadd.f32 1e-05, %v1632_v25 }
 0x31f   : > { %2081 = vrsqrt.f32 %v1633_v26  ;;  %vm1640_vm11 = vweird.f32 %v1633_v26 }
 0x322   : > { %v2080_v27 = vpop.eup %2079 }
 0x323   : > { %v1692_v28 = vmul.f32 %v2080_v27, %v1690_v24  ;;  %vm1698_vm0 = vweird.f32 %v2080_v27 }
 0x324   : > { %vm1699_vm10 = vmor %vm1697_vm8, %vm1698_vm0 }
 0x325   : > { %v2082_v29 = vpop.eup %2081  ;;  %v1693_v30 = vmul.f32 %v2080_v27, %v1692_v28 }
 0x326   : > { %v1635_v31 = vmul.f32 %v2082_v29, %v1633_v26  ;;  %vm1641_vm9 = vweird.f32 %v2082_v29 }
 0x327   : > { %v1694_v32 = vmul.f32 0.5, %v1693_v30  ;;  %vm1642_vm12 = vmor %vm1640_vm11, %vm1641_vm9 }
 0x328   : > { %v1636_v33 = vmul.f32 %v2082_v29, %v1635_v31 }
 0x329   : > { %v1695_v34 = vsub.f32 1.5, %v1694_v32 }
 0x32a   : > { %v1637_v36 = vmul.f32 0.5, %v1636_v33 }
 0x32b   : > { %v1696_v37 = vmul.f32 %v2080_v27, %v1695_v34 }
 0x32c   : > { %v1638_v38 = vsub.f32 1.5, %v1637_v36 }
 0x32d   : > { %v1700_v46 = vsel %vm1699_vm10, %v2080_v27, %v1696_v37 }
 0x32e   : > { %v1639_v19 = vmul.f32 %v2082_v29, %v1638_v38  ;;  %v1701_v39 = vmul.f32 %v1700_v46, %v1674_v55  ;;  %v1702_v40 = vmul.f32 %v1700_v46, %v1675_v2  ;;  %v1703_v41 = vmul.f32 %v1700_v46, %v1676_v57 }
 0x330   : > { %v1643_v42 = vsel %vm1642_vm12, %v2082_v29, %v1639_v19  ;;  %v1704_v43 = vpack.c.bf16 %v1701_v39, %v1701_v39  ;;  %v1706_v44 = vpack.c.bf16 %v1702_v40, %v1702_v40  ;;  %v1709_v45 = vpack.c.bf16 %v1703_v41, %v1703_v41 }
 0x331   : > { %v1644_v47 = vmul.f32 %v1643_v42, %v1621_v10  ;;  %v1645_v48 = vmul.f32 %v1643_v42, %v1622_v11 }
 0x332   : > { %1705 = vst [vmem:[%s843_s0] sm:$0x3] %v1704_v43 }
 0x333   : > { %v1656_v50 = vmul.f32 %v1649_v35, %v1644_v47  ;;  %v1657_v51 = vmul.f32 %v1654_v49, %v1645_v48  ;;  %2008 = vst [vmem:[%s843_s0 + $0x2] sm:$0x3] %v1706_v44 }
 0x334   : > { %2009 = vst [vmem:[%s843_s0 + $0x4] sm:$0x3] %v1709_v45 }
 0x335   : > { %v1668_v54 = vadd.f32 %v1661_v52, %v1656_v50  ;;  %v1669_v55 = vadd.f32 %v1666_v53, %v1657_v51  ;;  %1722 = sbr.rel (!%p2245_p5) target bundleno = 835 (0x343), region = 246 }
 0x337   : > { %v2026_v56 = vpack.c.bf16 %v1669_v55, %v1668_v54 }
 0x339   : > { %2027 = vst [vmem:[%s837_s24] sm:$0xff] %v2026_v56  }
 0x340   : > { %v1741_v57 = vld [vmem:[%s837_s24] sm:$0xf]  ;;  %v1743_v61 = vld [vmem:[%s837_s24 + $0x4] sm:$0xf] }
 0x341   : > { %1742 = vst [vmem:[%s1724_s18] sm:$0xf] %v1741_v57 }
 0x342   : > { %1744 = vst [vmem:[%s1724_s18 + $0x8] sm:$0xf] %v1743_v61 }
 0x343 PF: > { %1772 = sbr.rel (!%p2245_p5) target bundleno = 846 (0x34e), region = 287  ;;  %s2558_s22 = sld [smem:[#allocation8_spill]] (%p2245_p5)  ;;  %v1791_v63 = vld [vmem:[%s843_s0] sm:$0x3] (%p2245_p5)  ;;  %v1793_v0 = vld [vmem:[%s843_s0 + $0x2] sm:$0x3] (%p2245_p5) }
 0x344   : > { %s2559_s27 = sld [smem:[#allocation18_spill]] (%p2245_p5)  ;;  %v1795_v2 = vld [vmem:[%s843_s0 + $0x4] sm:$0x3] (%p2245_p5) }
 0x349   : > { %s2012_s23 = sshll.u32 %s2558_s22, 1 }
 0x34a   : > { %s1774_s28 = scalar_lea.vmem %s2559_s27, %s2012_s23 }
 0x34b   : > { %1792 = vst [vmem:[%s1774_s28] sm:$0x3] %v1791_v63 }
 0x34c   : > { %1794 = vst [vmem:[%s1774_s28 + $0x4] sm:$0x3] %v1793_v0 }
 0x34d   : > { %1796 = vst [vmem:[%s1774_s28 + $0x8] sm:$0x3] %v1795_v2 }
 0x34e PF: > { %s2560_s20 = sld [smem:[#allocation9_spill]]  ;;  %s2562_s0 = smov %s2101_s30 }
 0x34f   : > { %s2561_s24 = sld [smem:[#allocation10_spill]] }
 0x354   : > { %p27_p10 = scmp.ge.s32.totalorder %s2560_s20, 4  }
 0x355   : > { %s2563_s30 = smov %s2561_s24 }
 0x356   :  { %29 = sbr.rel (!%p27_p10) target bundleno = 10 (0xa), region = 394 }

</bundles_post_ra>
